<compile_context>
chip_gen: v5e
topology: v5e:2x2
jax: 0.10.0
libtpu: 0.0.40
codegen_flags: <defaults>
</compile_context>

<pallas_src>
import functools
import math

import jax
import jax.numpy as jnp
from jax import lax
from jax.experimental import pallas as pl
from jax.experimental.pallas import tpu as pltpu

IN_DIM = 19900          # fixed by the module definition
F_DIM = 128             # default f_dim
K_PAD = 19968           # 156 * 128: K padded to the next lane multiple (only 68 pad rows)
_INV_SQRT2 = 1.0 / math.sqrt(2.0)


def _gelu_exact(x):
    # PyTorch nn.GELU() default = exact erf formulation.
    return 0.5 * x * (1.0 + lax.erf(x * _INV_SQRT2))


# ----------------------------------------------------------------------------
# Kernels
# ----------------------------------------------------------------------------
def _fc_mlp_fused_kernel(x_ref, w1_ref, b1_ref, w2_ref, b2_ref, o_ref, *, tk):
    """Single-core path: K-streamed first matmul + fused bias/GELU/W2 epilogue."""
    k = pl.program_id(0)
    nk = pl.num_programs(0)

    # Mask the ragged K tail of the (unpadded) activation tile, then cast to bf16.
    col = lax.broadcasted_iota(jnp.int32, x_ref.shape, 1) + k * tk
    x_tile = jnp.where(col < IN_DIM, x_ref[...], 0.0).astype(jnp.bfloat16)

    part = jnp.dot(x_tile, w1_ref[...], preferred_element_type=jnp.float32)

    @pl.when(k == 0)
    def _():
        o_ref[...] = part               # direct store on the first step (no zero-fill)

    @pl.when(k > 0)
    def _():
        o_ref[...] += part

    @pl.when(k == nk - 1)
    def _():
        h = o_ref[...] + b1_ref[...]    # first Linear bias
        h = _gelu_exact(h)              # exact-erf GELU (PyTorch default)
        o_ref[...] = (jnp.dot(h, w2_ref[...], preferred_element_type=jnp.float32)
                      + b2_ref[...]).astype(o_ref.dtype)


def _fc_mlp_partial_kernel(x_ref, w1_ref, p_ref, *, tk, nk):
    """Multi-TensorCore path: each core accumulates its K chunk into its own partial."""
    c = pl.program_id(0)
    k = pl.program_id(1)

    col = lax.broadcasted_iota(jnp.int32, x_ref.shape, 1) + (c * nk + k) * tk
    x_tile = jnp.where(col < IN_DIM, x_ref[...], 0.0).astype(jnp.bfloat16)

    part = jnp.dot(x_tile, w1_ref[...], preferred_element_type=jnp.float32)

    @pl.when(k == 0)
    def _():
        p_ref[0] = part

    @pl.when(k > 0)
    def _():
        p_ref[0] += part


# ----------------------------------------------------------------------------
# Parameter prep (one-time) and forward wrapper
# ----------------------------------------------------------------------------
def prepare_params(w1, b1, w2, b2):
    """One-time prep: W1 cast to bf16 and zero-padded to K_PAD rows; 2-D biases."""
    K, f_dim = w1.shape
    assert K == IN_DIM and K_PAD >= K and K_PAD % 128 == 0
    w1_p = jnp.zeros((K_PAD, f_dim), jnp.bfloat16).at[:K, :].set(w1.astype(jnp.bfloat16))
    return w1_p, b1.reshape(1, f_dim), w2, b2.reshape(1, f_dim)


def _default_num_k_splits():
    # v7x has 2 TensorCores per chip; split the W1 HBM stream across both.
    try:
        kind = jax.devices()[0].device_kind.lower()
    except Exception:
        return 1
    return 2 if "v7" in kind else 1


@functools.partial(jax.jit, static_argnames=("num_k_splits",))
def fc_mlp_forward(x, w1_bf16, b1, w2, b2, num_k_splits=1):
    """x: (B, 19900) f32.  w1_bf16: (K_PAD, f_dim) pre-padded bf16 (see prepare_params)."""
    B, K = x.shape
    k_pad, f_dim = w1_bf16.shape
    assert K == IN_DIM and k_pad == K_PAD and f_dim % 128 == 0
    assert num_k_splits in (1, 2)

    if num_k_splits == 1:
        nk = 2                               # 2 K steps keeps DMA prefetch overlap
        tk = k_pad // nk                     # 9984
        assert tk % 128 == 0

        cost = pl.CostEstimate(
            flops=2 * B * k_pad * f_dim + 2 * B * f_dim * f_dim,
            transcendentals=B * f_dim,
            bytes_accessed=2 * k_pad * f_dim + 4 * B * K
                           + 4 * f_dim * f_dim + 4 * 2 * f_dim + 4 * B * f_dim,
        )

        return pl.pallas_call(
            functools.partial(_fc_mlp_fused_kernel, tk=tk),
            out_shape=jax.ShapeDtypeStruct((B, f_dim), jnp.float32),
            grid=(nk,),
            in_specs=[
                pl.BlockSpec((B, tk), lambda k: (0, k)),          # x tile (masked tail)
                pl.BlockSpec((tk, f_dim), lambda k: (k, 0)),      # W1 tile (bf16 stream)
                pl.BlockSpec((1, f_dim), lambda k: (0, 0)),       # b1 (resident)
                pl.BlockSpec((f_dim, f_dim), lambda k: (0, 0)),   # W2 (resident)
                pl.BlockSpec((1, f_dim), lambda k: (0, 0)),       # b2 (resident)
            ],
            out_specs=pl.BlockSpec((B, f_dim), lambda k: (0, 0)),
            compiler_params=pltpu.CompilerParams(
                dimension_semantics=("arbitrary",)),
            cost_estimate=cost,
        )(x, w1_bf16, b1, w2, b2)

    # num_k_splits == 2 : split the W1 stream across TensorCores (v7x).
    k_per_split = k_pad // num_k_splits      # 9984
    nk = 2                                   # 2 K steps per core (prefetch overlap)
    tk = k_per_split // nk                   # 4992
    assert tk % 128 == 0

    cost = pl.CostEstimate(
        flops=2 * B * k_pad * f_dim,
        transcendentals=0,
        bytes_accessed=2 * k_pad * f_dim + 4 * B * K + 4 * num_k_splits * B * f_dim,
    )

    partials = pl.pallas_call(
        functools.partial(_fc_mlp_partial_kernel, tk=tk, nk=nk),
        out_shape=jax.ShapeDtypeStruct((num_k_splits, B, f_dim), jnp.float32),
        grid=(num_k_splits, nk),
        in_specs=[
            pl.BlockSpec((B, tk), lambda c, k: (0, c * nk + k)),       # x tile
            pl.BlockSpec((tk, f_dim), lambda c, k: (c * nk + k, 0)),   # W1 tile (bf16)
        ],
        out_specs=pl.BlockSpec((1, B, f_dim), lambda c, k: (c, 0, 0)),  # per-core partial
        compiler_params=pltpu.CompilerParams(
            dimension_semantics=("parallel", "arbitrary")),
        cost_estimate=cost,
    )(x, w1_bf16)

    # Tiny combine + epilogue outside the per-core K loop (no cross-core race).
    h = partials.sum(axis=0) + b1
    h = _gelu_exact(h)
    return (h @ w2 + b2).astype(jnp.float32)


# ----------------------------------------------------------------------------
# Reference + example
# ----------------------------------------------------------------------------
def init_params(key, f_dim=F_DIM):
    # Deterministic init mimicking PyTorch Linear's U(-1/sqrt(fan_in), 1/sqrt(fan_in)).
    k1, k2, k3, k4 = jax.random.split(key, 4)
    lim1 = 1.0 / math.sqrt(IN_DIM)
    lim2 = 1.0 / math.sqrt(f_dim)
    w1 = jax.random.uniform(k1, (IN_DIM, f_dim), jnp.float32, -lim1, lim1)
    b1 = jax.random.uniform(k2, (f_dim,), jnp.float32, -lim1, lim1)
    w2 = jax.random.uniform(k3, (f_dim, f_dim), jnp.float32, -lim2, lim2)
    b2 = jax.random.uniform(k4, (f_dim,), jnp.float32, -lim2, lim2)
    return w1, b1, w2, b2


def reference_forward(x, w1, b1, w2, b2):
    h = x @ w1 + b1
    h = 0.5 * h * (1.0 + lax.erf(h * _INV_SQRT2))
    return h @ w2 + b2


if __name__ == "__main__":
    key = jax.random.PRNGKey(0)
    kx, kp = jax.random.split(key)

    batch = 2
    x = jax.random.normal(kx, (batch, IN_DIM), jnp.float32)
    w1, b1, w2, b2 = init_params(kp, F_DIM)

    # One-time parameter prep (bf16 cast + K padding of W1 happens here, not per call).
    params = prepare_params(w1, b1, w2, b2)

    ref = reference_forward(x, w1, b1, w2, b2)
    nsplit_default = _default_num_k_splits()

    # Exercise both code paths; the split path is also correct (just not faster)
    # on 1-TensorCore chips.  bf16 W1 -> relaxed tolerance vs. the f32 reference.
    for nsplit in sorted({1, 2, nsplit_default}):
        out = jax.block_until_ready(fc_mlp_forward(x, *params, num_k_splits=nsplit))
        assert out.shape == (batch, F_DIM)
        assert jnp.allclose(out, ref, atol=2e-2, rtol=2e-2), (
            f"num_k_splits={nsplit} max abs err {jnp.max(jnp.abs(out - ref))}")

    print("KERNEL_OK")
</pallas_src>

<mosaic_0001>
module attributes {stable_mosaic.version = 11 : i64} {
  func.func @_fc_mlp_fused_kernel(%arg0: i32, %arg1: memref<2x9984xf32, #tpu.memory_space<vmem>>, %arg2: memref<9984x128xbf16, #tpu.memory_space<vmem>>, %arg3: memref<1x128xf32, #tpu.memory_space<vmem>>, %arg4: memref<128x128xf32, #tpu.memory_space<vmem>>, %arg5: memref<1x128xf32, #tpu.memory_space<vmem>>, %arg6: memref<2x128xf32, #tpu.memory_space<vmem>>) attributes {dimension_semantics = [#tpu.dimension_semantics<arbitrary>], iteration_bounds = array<i64: 2>, scalar_prefetch = 0 : i64, scratch_operands = 0 : i64, tpu.core_type = #tpu.core_type<tc>, window_params = [{transform_indices = @transform_0, window_bounds = array<i64: 2, 9984>}, {transform_indices = @transform_1, window_bounds = array<i64: 9984, 128>}, {pipeline_mode = #tpu.pipeline_mode<synchronous>, transform_indices = @transform_2, window_bounds = array<i64: 1, 128>}, {pipeline_mode = #tpu.pipeline_mode<synchronous>, transform_indices = @transform_3, window_bounds = array<i64: 128, 128>}, {pipeline_mode = #tpu.pipeline_mode<synchronous>, transform_indices = @transform_4, window_bounds = array<i64: 1, 128>}, {pipeline_mode = #tpu.pipeline_mode<synchronous>, transform_indices = @transform_5, window_bounds = array<i64: 2, 128>}]} {
    %0 = tpu.iota {dimensions = array<i32: 1>} : vector<2x9984xi32>
    %c9984_i32 = arith.constant 9984 : i32
    %1 = arith.muli %arg0, %c9984_i32 : i32
    %2 = vector.broadcast %1 : i32 to vector<2x9984xi32>
    %3 = arith.addi %0, %2 : vector<2x9984xi32>
    %c19900_i32 = arith.constant 19900 : i32
    %4 = vector.broadcast %c19900_i32 : i32 to vector<2x9984xi32>
    %5 = arith.cmpi slt, %3, %4 : vector<2x9984xi32>
    %c0 = arith.constant 0 : index
    %c0_0 = arith.constant 0 : index
    %6 = vector.load %arg1[%c0, %c0_0] : memref<2x9984xf32, #tpu.memory_space<vmem>>, vector<2x9984xf32>
    %cst = arith.constant 0.000000e+00 : f32
    %7 = vector.broadcast %cst : f32 to vector<2x9984xf32>
    %8 = arith.select %5, %6, %7 : vector<2x9984xi1>, vector<2x9984xf32>
    %9 = arith.truncf %8 : vector<2x9984xf32> to vector<2x9984xbf16>
    %c0_1 = arith.constant 0 : index
    %c0_2 = arith.constant 0 : index
    %10 = vector.load %arg2[%c0_1, %c0_2] : memref<9984x128xbf16, #tpu.memory_space<vmem>>, vector<9984x128xbf16>
    %cst_3 = arith.constant dense<0.000000e+00> : vector<2x128xf32>
    %11 = tpu.matmul %9, %10, %cst_3 {dimension_numbers = #tpu.dot_dimension_numbers<[1], [0], [0], [1], [0, 0, 1, 1], [], []>} : vector<2x9984xbf16>, vector<9984x128xbf16>, vector<2x128xf32> -> vector<2x128xf32>
    %c0_i32 = arith.constant 0 : i32
    %12 = arith.cmpi eq, %arg0, %c0_i32 : i32
    %13 = arith.extui %12 : i1 to i32
    %c0_i32_4 = arith.constant 0 : i32
    %14 = arith.cmpi ne, %13, %c0_i32_4 : i32
    scf.if %14 {
      %c0_8 = arith.constant 0 : index
      %c0_9 = arith.constant 0 : index
      %21 = vector.load %arg6[%c0_8, %c0_9] : memref<2x128xf32, #tpu.memory_space<vmem>>, vector<2x128xf32>
      tpu.vector_store %arg6[%c0_8, %c0_9], %11 {strides = array<i32>} : memref<2x128xf32, #tpu.memory_space<vmem>>, vector<2x128xf32>,
    } else {
    }
    %c0_i32_5 = arith.constant 0 : i32
    %15 = arith.cmpi sgt, %arg0, %c0_i32_5 : i32
    %16 = arith.extui %15 : i1 to i32
    %c0_i32_6 = arith.constant 0 : i32
    %17 = arith.cmpi ne, %16, %c0_i32_6 : i32
    scf.if %17 {
      %c0_8 = arith.constant 0 : index
      %c0_9 = arith.constant 0 : index
      %21 = vector.load %arg6[%c0_8, %c0_9] : memref<2x128xf32, #tpu.memory_space<vmem>>, vector<2x128xf32>
      %22 = arith.addf %21, %11 : vector<2x128xf32>
      %c0_10 = arith.constant 0 : index
      %c0_11 = arith.constant 0 : index
      %23 = vector.load %arg6[%c0_10, %c0_11] : memref<2x128xf32, #tpu.memory_space<vmem>>, vector<2x128xf32>
      tpu.vector_store %arg6[%c0_10, %c0_11], %22 {strides = array<i32>} : memref<2x128xf32, #tpu.memory_space<vmem>>, vector<2x128xf32>,
    } else {
    }
    %c1_i32 = arith.constant 1 : i32
    %18 = arith.cmpi eq, %arg0, %c1_i32 : i32
    %19 = arith.extui %18 : i1 to i32
    %c0_i32_7 = arith.constant 0 : i32
    %20 = arith.cmpi ne, %19, %c0_i32_7 : i32
    scf.if %20 {
      %c0_8 = arith.constant 0 : index
      %c0_9 = arith.constant 0 : index
      %21 = vector.load %arg6[%c0_8, %c0_9] : memref<2x128xf32, #tpu.memory_space<vmem>>, vector<2x128xf32>
      %c0_10 = arith.constant 0 : index
      %c0_11 = arith.constant 0 : index
      %22 = vector.load %arg3[%c0_10, %c0_11] : memref<1x128xf32, #tpu.memory_space<vmem>>, vector<1x128xf32>
      %23 = vector.broadcast %22 : vector<1x128xf32> to vector<2x128xf32>
      %24 = arith.addf %21, %23 : vector<2x128xf32>
      %cst_12 = arith.constant 5.000000e-01 : f32
      %25 = vector.broadcast %cst_12 : f32 to vector<2x128xf32>
      %26 = arith.mulf %25, %24 : vector<2x128xf32>
      %cst_13 = arith.constant 0.707106769 : f32
      %27 = vector.broadcast %cst_13 : f32 to vector<2x128xf32>
      %28 = arith.mulf %24, %27 : vector<2x128xf32>
      %29 = math.erf %28 : vector<2x128xf32>
      %cst_14 = arith.constant 1.000000e+00 : f32
      %30 = vector.broadcast %cst_14 : f32 to vector<2x128xf32>
      %31 = arith.addf %30, %29 : vector<2x128xf32>
      %32 = arith.mulf %26, %31 : vector<2x128xf32>
      %c0_15 = arith.constant 0 : index
      %c0_16 = arith.constant 0 : index
      %33 = vector.load %arg4[%c0_15, %c0_16] : memref<128x128xf32, #tpu.memory_space<vmem>>, vector<128x128xf32>
      %cst_17 = arith.constant dense<0.000000e+00> : vector<2x128xf32>
      %34 = tpu.matmul %32, %33, %cst_17 {dimension_numbers = #tpu.dot_dimension_numbers<[1], [0], [0], [1], [0, 0, 1, 1], [], []>} : vector<2x128xf32>, vector<128x128xf32>, vector<2x128xf32> -> vector<2x128xf32>
      %c0_18 = arith.constant 0 : index
      %c0_19 = arith.constant 0 : index
      %35 = vector.load %arg5[%c0_18, %c0_19] : memref<1x128xf32, #tpu.memory_space<vmem>>, vector<1x128xf32>
      %36 = vector.broadcast %35 : vector<1x128xf32> to vector<2x128xf32>
      %37 = arith.addf %34, %36 : vector<2x128xf32>
      %c0_20 = arith.constant 0 : index
      %c0_21 = arith.constant 0 : index
      %38 = vector.load %arg6[%c0_20, %c0_21] : memref<2x128xf32, #tpu.memory_space<vmem>>, vector<2x128xf32>
      tpu.vector_store %arg6[%c0_20, %c0_21], %37 {strides = array<i32>} : memref<2x128xf32, #tpu.memory_space<vmem>>, vector<2x128xf32>,
    } else {
    }
    return
  }
  func.func @transform_0(%arg0: i32) -> (i32, i32) {
    %c0_i32 = arith.constant 0 : i32
    %c0_i32_0 = arith.constant 0 : i32
    return %c0_i32, %arg0 : i32, i32
  }
  func.func @transform_1(%arg0: i32) -> (i32, i32) {
    %c0_i32 = arith.constant 0 : i32
    %c0_i32_0 = arith.constant 0 : i32
    return %arg0, %c0_i32 : i32, i32
  }
  func.func @transform_2(%arg0: i32) -> (i32, i32) {
    %c0_i32 = arith.constant 0 : i32
    %c0_i32_0 = arith.constant 0 : i32
    %c0_i32_1 = arith.constant 0 : i32
    return %c0_i32, %c0_i32_0 : i32, i32
  }
  func.func @transform_3(%arg0: i32) -> (i32, i32) {
    %c0_i32 = arith.constant 0 : i32
    %c0_i32_0 = arith.constant 0 : i32
    %c0_i32_1 = arith.constant 0 : i32
    return %c0_i32, %c0_i32_0 : i32, i32
  }
  func.func @transform_4(%arg0: i32) -> (i32, i32) {
    %c0_i32 = arith.constant 0 : i32
    %c0_i32_0 = arith.constant 0 : i32
    %c0_i32_1 = arith.constant 0 : i32
    return %c0_i32, %c0_i32_0 : i32, i32
  }
  func.func @transform_5(%arg0: i32) -> (i32, i32) {
    %c0_i32 = arith.constant 0 : i32
    %c0_i32_0 = arith.constant 0 : i32
    %c0_i32_1 = arith.constant 0 : i32
    return %c0_i32, %c0_i32_0 : i32, i32
  }
}

</mosaic_0001>

<bundles_post_ra>
// kernel: fc_mlp_forward.1
= control target key start
LH: loop header
LB: loop body
LE: loop exit
PB: predicated region body
PF: predicated region fallthrough
CT: control target
= control target key end

     0   :  { %10 = vsyncpa [#allocation3], 0  ;;  %s12031_s0 = inlined_call_operand.hbm [shape: f32[2,19900], index: 0, kind: input, shape index: {}]   ;;  %s12032_s1 = inlined_call_operand.hbm [shape: bf16[19968,128], index: 1, kind: input, shape index: {}]   ;;  %s12033_s2 = inlined_call_operand.hbm [shape: f32[1,128], index: 2, kind: input, shape index: {}]   ;;  %s12034_s3 = inlined_call_operand.hbm [shape: f32[128,128], index: 3, kind: input, shape index: {}]   ;;  %s12035_s4 = inlined_call_operand.hbm [shape: f32[1,128], index: 4, kind: input, shape index: {}]   ;;  %s12036_s5 = inlined_call_operand.hbm [shape: f32[2,128], index: 5, kind: output, shape index: {}]  }
   0x1   :  { %12 = vsyncpa [#allocation3 + $0x1], 0 }
   0x2   :  { %13 = vsyncpa [#allocation6], 0 }
   0x3   :  { %15 = vsyncpa [#allocation6 + $0x1], 0 }
   0x4   :  { %16 = vsyncpa [#allocation9], 0 }
   0x5   :  { %17 = vsyncpa [#allocation4], 0  ;;  %s10891_s18 = smov 0   ;;  %s10893_s19 = smov 0  }
   0x6   :  { %s10895_s20 = smov 0   ;;  %s10897_s21 = smov 0  }
   0x7 LB: > { %s10910_s22 = sadd.s32 4294967295, %s10851_s21   ;;  %p43_p0 = scmp.ne.s32.totalorder %s10843_s19, %s10839_s18  ;;  %s10851_s21 = sphi %s10897_s21, %s12083_s21   ;;  %s10847_s20 = sphi %s10895_s20, %s12082_s20   ;;  %s10843_s19 = sphi %s10893_s19, %s12081_s19   ;;  %s10839_s18 = sphi %s10891_s18, %s12080_s18  }
   0x8   : > { %p44_p1 = scmp.eq.s32.totalorder %s10910_s22, 0  ;;  %p7154_p2 = scmp.ge.s32.totalorder %s10851_s21, 1 }
   0x9   : > { %p164_p3 = scmp.lt.s32.totalorder %s10851_s21, 3  ;;  %p7155_p4 = scmp.ne.s32.totalorder %s10910_s22, 0 }
   0xa   : > { %p10919_p5 = por %p44_p1, %p43_p0  ;;  %s176_s26 = sshll.u32 %s12033_s2, 4  ;;  %s177_s26 = int_to_ptr.hbm [resolvable:$true] %s176_s26 }
   0xb   : > { %p10926_p6 = pnand %p7154_p2, %p164_p3  ;;  %s10853_s28 = smov [#allocation7]  }
   0xc   : > { %s178_s29 = sshll.u32 %s10853_s28, 4  ;;  %s187_s7 = sshll.u32 %s12034_s3, 4  ;;  %s179_s29 = int_to_ptr.vmem [resolvable:$true] %s178_s29  ;;  %s188_s7 = int_to_ptr.hbm [resolvable:$true] %s187_s7 }
   0xd   : > { %p10553_p7 = pneg %p10926_p6  ;;  %s10854_s9 = smov [#allocation8]  }
   0xe   : > { %s189_s10 = sshll.u32 %s10854_s9, 4  ;;  %s10855_s11 = smov 128   ;;  %s190_s10 = int_to_ptr.vmem [resolvable:$true] %s189_s10 }
   0xf   : > { %p10937_p8 = pnand %p10553_p7, %p44_p1  ;;  %s10856_s12 = smov 8  }
  0x10   : > { %s202_s15 = sshll.u32 %s12035_s4, 4  ;;  %s10857_s16 = smov [#allocation10]   ;;  %s203_s15 = int_to_ptr.hbm [resolvable:$true] %s202_s15 }
  0x11   : > { %10556 = dma.hbm_to_vmem [thread:$0]  (!%p10937_p8), %s177_s26, 16, %s179_s29, [#allocation6]  }
  0x12   : > { %10559 = dma.hbm_to_vmem [thread:$0]  (!%p10937_p8), %s188_s7, 2048, %s190_s10, [#allocation9], %s10855_s11, %s10855_s11, %s10856_s12  }
  0x13   : > { %s204_s17 = sshll.u32 %s10857_s16, 4  ;;  %s10951_s18 = sadd.s32 1, %s10851_s21   ;;  %s205_s17 = int_to_ptr.vmem [resolvable:$true] %s204_s17 }
  0x14   : > { %10562 = dma.hbm_to_vmem [thread:$0]  (!%p10937_p8), %s203_s15, 16, %s205_s17, [#allocation9]  }
  0x15   : > { %s27_s24 = ssub.s32 %s10851_s21, %s10951_s18  ;;  %s30_s25 = sadd.s32 1, %s10847_s20 }
  0x16   : > { %p28_p9 = scmp.eq.s32.totalorder %s27_s24, 0  ;;  %p37_p10 = scmp.ne.s32.totalorder %s10847_s20, %s10843_s19 }
  0x17   : > { %p38_p11 = scmp.eq.s32.totalorder %s10851_s21, 0  ;;  %p10573_p12 = scmp.lt.s32.totalorder %s10851_s21, 2 }
  0x18   : > { %s10961_s26 = scalar_select %p28_p9, %s10847_s20, %s30_s25  }
  0x19   : > { %p39_p13 = por %p38_p11, %p37_p10  ;;  %s215_s28 = sand.u32 1, %s10847_s20  }
  0x1a   : > { %s10529_s29 = smul.u32 156, %s215_s28  ;;  %s216_s14 = scalar_lea.sflag [#allocation3], %s215_s28 }
  0x1b   : > { %s9903_s30 = smul.u32 156, %s10851_s21  ;;  %p10965_p0 = pnand %p10573_p12, %p39_p13 }
  0x1c   : > { %s10530_s7 = smul.u32 4992, %s215_s28  ;;  %s219_s11 = scalar_lea.vmem [#allocation2], %s10529_s29 }
  0x1d   : > { %s224_s10 = scalar_lea.hbm %s12031_s0, %s9903_s30  ;;  %s228_s12 = sshll.u32 %s219_s11, 4  ;;  %s229_s12 = int_to_ptr.vmem [resolvable:$true] %s228_s12 }
  0x1e   : > { %s226_s13 = sshll.u32 %s224_s10, 4  ;;  %p10717_p3 = pneg %p10965_p0  ;;  %s227_s13 = int_to_ptr.hbm [resolvable:$true] %s226_s13 }
  0x1f   : > { %s10713_s15 = sshra.s32 %s227_s13, 4  ;;  %s10720_s25 = scalar_lea.hbm %s12031_s0, 312  ;;  %s10714_s15 = int_to_ptr.hbm [resolvable:$true] %s10713_s15 }
  0x20   : > { %s10715_s16 = scalar_lea.hbm %s10714_s15, 156  ;;  %p10721_p9 = scmp.lt.s32.totalorder %s10714_s15, %s12031_s0 }
  0x21   : > { %p10716_p2 = scmp.ne.s32.totalorder %s10714_s15, %s10715_s16  ;;  %p10722_p10 = scmp.lt.s32.totalorder %s10720_s25, %s10715_s16 }
  0x23   : > { %p10718_p7 = pnand %p10717_p3, %p10716_p2  ;;  %p10723_p11 = por %p10722_p10, %p10721_p9 }
  0x25   : > { %p10719_p8 = pneg %p10718_p7 }
  0x27   : > { %p10724_p12 = pnand %p10723_p11, %p10719_p8 }
  0x29   : > { %10727 = shalt.err (!%p10724_p12)
}
  0x2a   : > { %10566 = dma.hbm_to_vmem [thread:$0]  (!%p10965_p0), %s227_s13, 2496, %s229_s12, %s216_s14  }
  0x2b   : > { %s235_s28 = sand.u32 1, %s10851_s21   ;;  %s239_s8 = scalar_lea.vmem [#allocation5], %s10530_s7 }
  0x2c   : > { %s247_s9 = sshll.u32 %s239_s8, 4  ;;  %s9904_s10 = smul.u32 4992, %s10851_s21  ;;  %s248_s9 = int_to_ptr.vmem [resolvable:$true] %s247_s9 }
  0x2d   : > { %s236_s16 = scalar_lea.sflag [#allocation6], %s235_s28  ;;  %s10750_s21 = scalar_lea.hbm %s12032_s1, 9984 }
  0x2e   : > { %s244_s24 = scalar_lea.hbm %s12032_s1, %s9904_s10 }
  0x2f   : > { %s245_s15 = sshll.u32 %s244_s24, 4  ;;  %s246_s15 = int_to_ptr.hbm [resolvable:$true] %s245_s15 }
  0x30   : > { %s10743_s25 = sshra.s32 %s246_s15, 4  ;;  %s10744_s25 = int_to_ptr.hbm [resolvable:$true] %s10743_s25 }
  0x31   : > { %s10745_s29 = scalar_lea.hbm %s10744_s25, 4992  ;;  %p10751_p8 = scmp.lt.s32.totalorder %s10744_s25, %s12032_s1 }
  0x32   : > { %p10746_p13 = scmp.ne.s32.totalorder %s10744_s25, %s10745_s29  ;;  %p10752_p9 = scmp.lt.s32.totalorder %s10750_s21, %s10745_s29 }
  0x34   : > { %p10748_p2 = pnand %p10746_p13, %p10717_p3  ;;  %p10753_p10 = por %p10752_p9, %p10751_p8 }
  0x36   : > { %p10749_p7 = pneg %p10748_p2 }
  0x38   : > { %p10754_p11 = pnand %p10753_p10, %p10749_p7 }
  0x3a   : > { %10757 = shalt.err (!%p10754_p11)
}
  0x3b   : > { %s10858_s30 = smov 64   ;;  %s10859_s28 = smov 4  }
  0x3c   : > { %10569 = dma.hbm_to_vmem [thread:$0]  (!%p10965_p0), %s246_s15, 79872, %s248_s9, %s236_s16, %s10858_s30, %s10858_s30, %s10859_s28  }
  0x3d   : > { %259 = sbr.rel (%p10926_p6) target bundleno = 1059 (0x423), region = 40  ;;  %s261_s8 = sand.u32 (!%p10926_p6), 1, %s10843_s19  }
  0x3e   : > { %s10531_s10 = smul.u32 (!%p10926_p6), 156, %s261_s8  ;;  %s262_s11 = scalar_lea.sflag (!%p10926_p6), [#allocation3], %s261_s8 }
  0x40   : > { %s11004_s17 = scalar_lea.vmem (!%p10926_p6), [#allocation2], %s10531_s10 }
  0x42   : > { %10818 = dma.done.wait (%p10919_p5), %s262_s11, 2496  }
  0x43   : > { %10820 = vsyncadd (%p10919_p5), %s262_s11, 4294964800  ;;  %s271_s24 = sand.u32 1, %s10910_s22   ;;  %s10532_s6 = smul.u32 4992, %s261_s8 }
  0x44   : > { %s272_s9 = scalar_lea.sflag [#allocation6], %s271_s24 }
  0x45   : > { %s11011_s15 = scalar_lea.vmem [#allocation5], %s10532_s6 }
  0x46   : > { %10822 = dma.done.wait (%p10919_p5), %s272_s9, 79872  }
  0x47   : > { %10824 = vsyncadd (%p10919_p5), %s272_s9, 4294887424 }
  0x48   : > { %10826 = dma.done.wait (%p44_p1), [#allocation6], 16  }
  0x49   : > { %10828 = vsyncadd (%p44_p1), [#allocation6], 4294967280 }
  0x4a   : > { %10830 = dma.done.wait (%p44_p1), [#allocation9], 2064  }
  0x4b   : > { %10832 = vsyncadd (%p44_p1), [#allocation9], 4294965232  ;;  %v9912_v0 = vld [vmem:[%s11011_s15 + $0x38] sm:$0xff]  ;;  %v9911_v4 = vld [vmem:[%s11011_s15 + $0x30] sm:$0xff]  ;;  %v320_v16 = vlaneseq  ;;  %s399_s23 = smul.u32 9984, %s10910_s22 }
  0x4c   : > { %v9920_v1 = vld [vmem:[%s11011_s15 + $0x78] sm:$0xff]  ;;  %5922 = vmatpush.bf16.msra.mxu0 %v9912_v0  ;;  %v9919_v5 = vld [vmem:[%s11011_s15 + $0x70] sm:$0xff]  ;;  %v9910_v8 = vld [vmem:[%s11011_s15 + $0x28] sm:$0xff] }
  0x4d   : > { %v9928_v2 = vld [vmem:[%s11011_s15 + $0xb8] sm:$0xff]  ;;  %5935 = vmatpush.bf16.msra.mxu1 %v9920_v1  ;;  %v9927_v6 = vld [vmem:[%s11011_s15 + $0xb0] sm:$0xff]  ;;  %v9918_v9 = vld [vmem:[%s11011_s15 + $0x68] sm:$0xff]  ;;  %v11045_v21 = vand.u32 127, %v320_v16  ;;  %v11054_v28 = vstv %s399_s23 }
  0x4e   : > { %v9936_v3 = vld [vmem:[%s11011_s15 + $0xf8] sm:$0xff]  ;;  %5948 = vmatpush.bf16.msra.mxu2 %v9928_v2  ;;  %v9935_v7 = vld [vmem:[%s11011_s15 + $0xf0] sm:$0xff]  ;;  %v9926_v10 = vld [vmem:[%s11011_s15 + $0xa8] sm:$0xff] }
  0x4f   : > { %5961 = vmatpush.bf16.msra.mxu3 %v9936_v3  ;;  %v9934_v11 = vld [vmem:[%s11011_s15 + $0xe8] sm:$0xff]  ;;  %v9909_v12 = vld [vmem:[%s11011_s15 + $0x20] sm:$0xff]  ;;  %v9908_v17 = vld [vmem:[%s11011_s15 + $0x18] sm:$0xff]  ;;  %v323_v27 = vadd.s32 256, %v11045_v21  ;;  %v322_v29 = vadd.s32 128, %v11045_v21  ;;  %v401_v34 = vadd.s32 %v11054_v28, %v11045_v21  ;;  %v324_v35 = vadd.s32 384, %v11045_v21 }
  0x50   : > { %5923 = vmatpush.bf16.msra.mxu0 %v9911_v4  ;;  %v9917_v13 = vld [vmem:[%s11011_s15 + $0x60] sm:$0xff]  ;;  %v9916_v18 = vld [vmem:[%s11011_s15 + $0x58] sm:$0xff]  ;;  %v9907_v23 = vld [vmem:[%s11011_s15 + $0x10] sm:$0xff] }
  0x51   : > { %5936 = vmatpush.bf16.msra.mxu1 %v9919_v5  ;;  %v9925_v14 = vld [vmem:[%s11011_s15 + $0xa0] sm:$0xff]  ;;  %v9924_v19 = vld [vmem:[%s11011_s15 + $0x98] sm:$0xff]  ;;  %v9915_v24 = vld [vmem:[%s11011_s15 + $0x50] sm:$0xff]  ;;  %v403_v39 = vadd.s32 %v11054_v28, %v323_v27  ;;  %v402_v43 = vadd.s32 %v11054_v28, %v322_v29  ;;  %vm479_vm0 = vcmp.lt.s32.totalorder %v401_v34, 19900  ;;  %v404_v48 = vadd.s32 %v11054_v28, %v324_v35 }
  0x52   : > { %5949 = vmatpush.bf16.msra.mxu2 %v9927_v6  ;;  %v9933_v15 = vld [vmem:[%s11011_s15 + $0xe0] sm:$0xff]  ;;  %v9932_v20 = vld [vmem:[%s11011_s15 + $0xd8] sm:$0xff]  ;;  %v9923_v25 = vld [vmem:[%s11011_s15 + $0x90] sm:$0xff] }
  0x53   : > { %5962 = vmatpush.bf16.msra.mxu3 %v9935_v7  ;;  %v557_v22 = vld [vmem:[%s11004_s17] sm:$0xff]  ;;  %v9931_v26 = vld [vmem:[%s11011_s15 + $0xd0] sm:$0xff]  ;;  %v9944_v47 = vld [vmem:[%s11011_s15 + $0x138] sm:$0xff]  ;;  %vm481_vm1 = vcmp.lt.s32.totalorder %v403_v39, 19900  ;;  %vm480_vm2 = vcmp.lt.s32.totalorder %v402_v43, 19900  ;;  %vm482_vm5 = vcmp.lt.s32.totalorder %v404_v48, 19900 }
  0x54   : > { %5924 = vmatpush.bf16.msra.mxu0 %v9910_v8  ;;  %597 = vst [vmem:[#allocation1] ss:$4 sm:$0xff] %v557_v22  ;;  %v9906_v30 = vld [vmem:[%s11011_s15 + $0x8] sm:$0xff]  ;;  %v9905_v37 = vld [vmem:[%s11011_s15] sm:$0xff]  ;;  %v559_v40 = vld [vmem:[%s11004_s17 + $0x10] sm:$0xff] }
  0x55   : > { %5937 = vmatpush.bf16.msra.mxu1 %v9918_v9  ;;  %v9914_v31 = vld [vmem:[%s11011_s15 + $0x48] sm:$0xff]  ;;  %v9913_v38 = vld [vmem:[%s11011_s15 + $0x40] sm:$0xff]  ;;  %v9952_v49 = vld [vmem:[%s11011_s15 + $0x178] sm:$0xff] }
  0x56   : > { %5950 = vmatpush.bf16.msra.mxu2 %v9926_v10  ;;  %v9922_v32 = vld [vmem:[%s11011_s15 + $0x88] sm:$0xff]  ;;  %v9921_v46 = vld [vmem:[%s11011_s15 + $0x80] sm:$0xff]  ;;  %v9960_v50 = vld [vmem:[%s11011_s15 + $0x1b8] sm:$0xff] }
  0x57   : > { %5963 = vmatpush.bf16.msra.mxu3 %v9934_v11  ;;  %v9930_v33 = vld [vmem:[%s11011_s15 + $0xc8] sm:$0xff]  ;;  %v9929_v51 = vld [vmem:[%s11011_s15 + $0xc0] sm:$0xff]  ;;  %v9968_v53 = vld [vmem:[%s11011_s15 + $0x1f8] sm:$0xff] }
  0x58   : > { %5925 = vmatpush.bf16.msra.mxu0 %v9909_v12  ;;  %v558_v36 = vld [vmem:[%s11004_s17 + $0x8] sm:$0xff]  ;;  %vm9661_vm3 = vmpackc.low %vm479_vm0, %vm479_vm0  ;;  %v560_v1 = vld [vmem:[%s11004_s17 + $0x18] sm:$0xff] }
  0x59   : > { %5938 = vmatpush.bf16.msra.mxu1 %v9917_v13  ;;  %599 = vst [vmem:[#allocation1 + $0x20] ss:$4 sm:$0xff] %v558_v36  ;;  %v9943_v55 = vld [vmem:[%s11011_s15 + $0x130] sm:$0xff]  ;;  %vm9667_vm4 = vmpackc.low %vm481_vm1, %vm481_vm1  ;;  %v9942_v0 = vld [vmem:[%s11011_s15 + $0x128] sm:$0xff] }
  0x5a   : > { %5951 = vmatpush.bf16.msra.mxu2 %v9925_v14  ;;  %v9951_v57 = vld [vmem:[%s11011_s15 + $0x170] sm:$0xff]  ;;  %vm9664_vm6 = vmpackc.low %vm480_vm2, %vm480_vm2  ;;  %v9950_v3 = vld [vmem:[%s11011_s15 + $0x168] sm:$0xff] }
  0x5b   : > { %5964 = vmatpush.bf16.msra.mxu3 %v9933_v15  ;;  %v602_v41 = vld.sshfl [vmem:[#allocation1 + $0x10] sm:$0xff pattern:$0x73625140]  ;;  %v600_v42 = vld.sshfl [vmem:[#allocation1] sm:$0xff pattern:$0x73625140]  ;;  %vm9670_vm7 = vmpackc.low %vm482_vm5, %vm482_vm5 }
  0x5c   : > { %5926 = vmatpush.bf16.msra.mxu0 %v9908_v17  ;;  %v603_v44 = vld.sshfl [vmem:[#allocation1 + $0x18] sm:$0xff pattern:$0x73625140]  ;;  %v601_v45 = vld.sshfl [vmem:[#allocation1 + $0x8] sm:$0xff pattern:$0x73625140]  ;;  %v9662_v52 = vpack.c.bf16 %v600_v42, %v600_v42  ;;  %v9668_v54 = vpack.c.bf16 %v602_v41, %v602_v41 }
  0x5d   : > { %5939 = vmatpush.bf16.msra.mxu1 %v9916_v18  ;;  %608 = vst [vmem:[#allocation1] ss:$4 sm:$0xff] %v559_v40  ;;  %v9665_v56 = vpack.c.bf16 %v601_v45, %v601_v45  ;;  %v9959_v58 = vld [vmem:[%s11011_s15 + $0x1b0] sm:$0xff]  ;;  %v9671_v60 = vpack.c.bf16 %v603_v44, %v603_v44  ;;  %v9958_v4 = vld [vmem:[%s11011_s15 + $0x1a8] sm:$0xff]  ;;  %v9941_v6 = vld [vmem:[%s11011_s15 + $0x120] sm:$0xff]  ;;  %v327_v17 = vadd.s32 768, %v11045_v21 }
  0x5e   : > { %5952 = vmatpush.bf16.msra.mxu2 %v9924_v19  ;;  %v9967_v59 = vld [vmem:[%s11011_s15 + $0x1f0] sm:$0xff]  ;;  %v9966_v5 = vld [vmem:[%s11011_s15 + $0x1e8] sm:$0xff]  ;;  %v9949_v7 = vld [vmem:[%s11011_s15 + $0x160] sm:$0xff]  ;;  %v325_v18 = vadd.s32 512, %v11045_v21 }
  0x5f   : > { %5965 = vmatpush.bf16.msra.mxu3 %v9932_v20  ;;  %v9957_v8 = vld [vmem:[%s11011_s15 + $0x1a0] sm:$0xff]  ;;  %v9940_v10 = vld [vmem:[%s11011_s15 + $0x118] sm:$0xff]  ;;  %v9939_v14 = vld [vmem:[%s11011_s15 + $0x110] sm:$0xff]  ;;  %v326_v20 = vadd.s32 640, %v11045_v21 }
  0x60   : > { %5927 = vmatpush.bf16.msra.mxu0 %v9907_v23  ;;  %v11083_v61 = vld.sshfl [vmem:[#allocation1 + $0x30] sm:$0xff pattern:$0x73625140]  ;;  %v11085_v62 = vld.sshfl [vmem:[#allocation1 + $0x20] sm:$0xff pattern:$0x73625140]  ;;  %v405_v27 = vadd.s32 %v11054_v28, %v325_v18 }
  0x61   : > { %5940 = vmatpush.bf16.msra.mxu1 %v9915_v24  ;;  %v11087_v63 = vld.sshfl [vmem:[#allocation1 + $0x38] sm:$0xff pattern:$0x73625140]  ;;  %v11091_v2 = vld.sshfl [vmem:[#allocation1 + $0x28] sm:$0xff pattern:$0x73625140]  ;;  %v9680_v41 = vpack.c.bf16 %v11083_v61, %v11083_v61  ;;  %v9674_v43 = vpack.c.bf16 %v11085_v62, %v11085_v62 }
  0x62   : > { %5953 = vmatpush.bf16.msra.mxu2 %v9923_v25  ;;  %609 = vst [vmem:[#allocation1 + $0x20] ss:$4 sm:$0xff] %v560_v1  ;;  %v9965_v9 = vld [vmem:[%s11011_s15 + $0x1e0] sm:$0xff]  ;;  %v9948_v11 = vld [vmem:[%s11011_s15 + $0x158] sm:$0xff]  ;;  %v9947_v15 = vld [vmem:[%s11011_s15 + $0x150] sm:$0xff]  ;;  %v407_v25 = vadd.s32 %v11054_v28, %v327_v17  ;;  %vm483_vm9 = vcmp.lt.s32.totalorder %v405_v27, 19900  ;;  %v9677_v44 = vpack.c.bf16 %v11091_v2, %v11091_v2  ;;  %v9683_v48 = vpack.c.bf16 %v11087_v63, %v11087_v63 }
  0x63   : > { %5966 = vmatpush.bf16.msra.mxu3 %v9931_v26  ;;  %v9956_v12 = vld [vmem:[%s11011_s15 + $0x198] sm:$0xff]  ;;  %v9955_v16 = vld [vmem:[%s11011_s15 + $0x190] sm:$0xff]  ;;  %v9938_v22 = vld [vmem:[%s11011_s15 + $0x108] sm:$0xff]  ;;  %v328_v26 = vadd.s32 896, %v11045_v21  ;;  %v329_v1 = vadd.s32 1024, %v11045_v21 }
  0x64   : > { %5928 = vmatpush.bf16.msra.mxu0 %v9906_v30  ;;  %v9964_v13 = vld [vmem:[%s11011_s15 + $0x1d8] sm:$0xff]  ;;  %v9963_v19 = vld [vmem:[%s11011_s15 + $0x1d0] sm:$0xff]  ;;  %v9946_v23 = vld [vmem:[%s11011_s15 + $0x148] sm:$0xff]  ;;  %v406_v30 = vadd.s32 %v11054_v28, %v326_v20  ;;  %vm485_vm8 = vcmp.lt.s32.totalorder %v407_v25, 19900 }
  0x65   : > { %5941 = vmatpush.bf16.msra.mxu1 %v9914_v31  ;;  %v9954_v24 = vld [vmem:[%s11011_s15 + $0x188] sm:$0xff]  ;;  %v9937_v31 = vld [vmem:[%s11011_s15 + $0x100] sm:$0xff]  ;;  %v408_v34 = vadd.s32 %v11054_v28, %v328_v26  ;;  %v9976_v35 = vld [vmem:[%s11011_s15 + $0x238] sm:$0xff] }
  0x66   : > { %5954 = vmatpush.bf16.msra.mxu2 %v9922_v32  ;;  %v9962_v29 = vld [vmem:[%s11011_s15 + $0x1c8] sm:$0xff]  ;;  %v9945_v32 = vld [vmem:[%s11011_s15 + $0x140] sm:$0xff]  ;;  %v9984_v36 = vld [vmem:[%s11011_s15 + $0x278] sm:$0xff]  ;;  %vm484_vm10 = vcmp.lt.s32.totalorder %v406_v30, 19900 }
  0x67   : > { %5967 = vmatpush.bf16.msra.mxu3 %v9930_v33  ;;  %v9953_v33 = vld [vmem:[%s11011_s15 + $0x180] sm:$0xff]  ;;  %v10000_v39 = vld [vmem:[%s11011_s15 + $0x2f8] sm:$0xff]  ;;  %vm11128_vm11 = vmpackc.low %vm485_vm8, %vm485_vm8  ;;  %vm486_vm13 = vcmp.lt.s32.totalorder %v408_v34, 19900 }
  0x68   : > { %5929 = vmatpush.bf16.msra.mxu0 %v9905_v37  ;;  %v9992_v37 = vld [vmem:[%s11011_s15 + $0x2b8] sm:$0xff]  ;;  %vm11134_vm12 = vmpackc.low %vm483_vm9, %vm483_vm9  ;;  %v9975_v45 = vld [vmem:[%s11011_s15 + $0x230] sm:$0xff] }
  0x69   : > { %5942 = vmatpush.bf16.msra.mxu1 %v9913_v38  ;;  %v9961_v38 = vld [vmem:[%s11011_s15 + $0x1c0] sm:$0xff]  ;;  %vm9676_vm14 = vmpackc.low %vm484_vm10, %vm484_vm10  ;;  %v9996_v61 = vld [vmem:[%s11011_s15 + $0x2d8] sm:$0xff] }
  0x6a   : > { %5955 = vmatpush.bf16.msra.mxu2 %v9921_v46  ;;  %v9983_v46 = vld [vmem:[%s11011_s15 + $0x270] sm:$0xff]  ;;  %vm9682_vm15 = vmpackc.low %vm486_vm13, %vm486_vm13  ;;  %v9985_v17 = vld [vmem:[%s11011_s15 + $0x280] sm:$0xff] }
  0x6b   : > { %5968 = vmatpush.bf16.msra.mxu3 %v9929_v51  ;;  %9663 = vmatmul.msk.bf16.vlgmr.msra.gmra.mxu0 %vm9661_vm3, %v9662_v52  ;;  %v9982_v51 = vld [vmem:[%s11011_s15 + $0x268] sm:$0xff]  ;;  %v9971_v62 = vld [vmem:[%s11011_s15 + $0x210] sm:$0xff]  ;;  %v10008_v18 = vld [vmem:[%s11011_s15 + $0x338] sm:$0xff] }
  0x6c   : > { %5974 = vmatpush.bf16.msrb.mxu0 %v9944_v47  ;;  %9666 = vmatmul.msk.bf16.vlgmr.msra.gmra.mxu1 %vm9664_vm6, %v9665_v56  ;;  %v9991_v47 = vld [vmem:[%s11011_s15 + $0x2b0] sm:$0xff]  ;;  %v9990_v52 = vld [vmem:[%s11011_s15 + $0x2a8] sm:$0xff]  ;;  %v9989_v56 = vld [vmem:[%s11011_s15 + $0x2a0] sm:$0xff] }
  0x6d   : > { %5987 = vmatpush.bf16.msrb.mxu1 %v9952_v49  ;;  %9669 = vmatmul.msk.bf16.vlgmr.msra.gmra.mxu2 %vm9667_vm4, %v9668_v54  ;;  %v9999_v49 = vld [vmem:[%s11011_s15 + $0x2f0] sm:$0xff]  ;;  %v9973_v54 = vld [vmem:[%s11011_s15 + $0x220] sm:$0xff]  ;;  %v10016_v20 = vld [vmem:[%s11011_s15 + $0x378] sm:$0xff] }
  0x6e   : > { %6000 = vmatpush.bf16.msrb.mxu2 %v9960_v50  ;;  %9672 = vmatmul.msk.bf16.vlgmr.msra.gmra.mxu3 %vm9670_vm7, %v9671_v60  ;;  %v9974_v50 = vld [vmem:[%s11011_s15 + $0x228] sm:$0xff]  ;;  %v9988_v60 = vld [vmem:[%s11011_s15 + $0x298] sm:$0xff]  ;;  %v9979_v63 = vld [vmem:[%s11011_s15 + $0x250] sm:$0xff] }
  0x6f   : > { %6013 = vmatpush.bf16.msrb.mxu3 %v9968_v53  ;;  %v9998_v53 = vld [vmem:[%s11011_s15 + $0x2e8] sm:$0xff]  ;;  %v9995_v2 = vld [vmem:[%s11011_s15 + $0x2d0] sm:$0xff]  ;;  %v613_v26 = vld.sshfl [vmem:[#allocation1 + $0x18] sm:$0xff pattern:$0x73625140] }
  0x70   : > { %5975 = vmatpush.bf16.msrb.mxu0 %v9943_v55  ;;  %v9981_v55 = vld [vmem:[%s11011_s15 + $0x260] sm:$0xff]  ;;  %v10023_v34 = vld [vmem:[%s11011_s15 + $0x3b0] sm:$0xff] }
  0x71   : > { %5988 = vmatpush.bf16.msrb.mxu1 %v9951_v57  ;;  %v9997_v57 = vld [vmem:[%s11011_s15 + $0x2e0] sm:$0xff] }
  0x72   : > { %6001 = vmatpush.bf16.msrb.mxu2 %v9959_v58  ;;  %v9972_v58 = vld [vmem:[%s11011_s15 + $0x218] sm:$0xff]  ;;  %v10005_v40 = vld [vmem:[%s11011_s15 + $0x320] sm:$0xff] }
  0x73   : > { %6014 = vmatpush.bf16.msrb.mxu3 %v9967_v59  ;;  %v9980_v59 = vld [vmem:[%s11011_s15 + $0x258] sm:$0xff]  ;;  %v10021_v42 = vld [vmem:[%s11011_s15 + $0x3a0] sm:$0xff] }
  0x74   : > { %5976 = vmatpush.bf16.msrb.mxu0 %v9942_v0  ;;  %v9987_v0 = vld [vmem:[%s11011_s15 + $0x290] sm:$0xff] }
  0x75   : > { %5989 = vmatpush.bf16.msrb.mxu1 %v9950_v3  ;;  %v331_v3 = vadd.s32 1280, %v11045_v21 }
  0x76   : > { %6002 = vmatpush.bf16.msrb.mxu2 %v9958_v4  ;;  %v330_v4 = vadd.s32 1152, %v11045_v21 }
  0x77   : > { %6015 = vmatpush.bf16.msrb.mxu3 %v9966_v5  ;;  %v9970_v5 = vld [vmem:[%s11011_s15 + $0x208] sm:$0xff] }
  0x78   : > { %5977 = vmatpush.bf16.msrb.mxu0 %v9941_v6  ;;  %v9978_v6 = vld [vmem:[%s11011_s15 + $0x248] sm:$0xff] }
  0x79   : > { %5990 = vmatpush.bf16.msrb.mxu1 %v9949_v7  ;;  %v332_v7 = vadd.s32 1408, %v11045_v21 }
  0x7a   : > { %6003 = vmatpush.bf16.msrb.mxu2 %v9957_v8  ;;  %v9986_v8 = vld [vmem:[%s11011_s15 + $0x288] sm:$0xff] }
  0x7b   : > { %6016 = vmatpush.bf16.msrb.mxu3 %v9965_v9  ;;  %v409_v9 = vadd.s32 %v11054_v28, %v329_v1  ;;  %v10009_v1 = vld [vmem:[%s11011_s15 + $0x340] sm:$0xff] }
  0x7c   : > { %5978 = vmatpush.bf16.msrb.mxu0 %v9940_v10  ;;  %v9994_v10 = vld [vmem:[%s11011_s15 + $0x2c8] sm:$0xff] }
  0x7d   : > { %5991 = vmatpush.bf16.msrb.mxu1 %v9948_v11  ;;  %v411_v11 = vadd.s32 %v11054_v28, %v331_v3  ;;  %vm487_vm0 = vcmp.lt.s32.totalorder %v409_v9, 19900  ;;  %v10040_v3 = vld [vmem:[%s11011_s15 + $0x438] sm:$0xff] }
  0x7e   : > { %6004 = vmatpush.bf16.msrb.mxu2 %v9956_v12  ;;  %v410_v12 = vadd.s32 %v11054_v28, %v330_v4  ;;  %vm9685_vm3 = vmpackc.low %vm487_vm0, %vm487_vm0  ;;  %v10056_v9 = vld [vmem:[%s11011_s15 + $0x4b8] sm:$0xff] }
  0x7f   : > { %6017 = vmatpush.bf16.msrb.mxu3 %v9964_v13  ;;  %v9969_v13 = vld [vmem:[%s11011_s15 + $0x200] sm:$0xff]  ;;  %vm489_vm1 = vcmp.lt.s32.totalorder %v411_v11, 19900  ;;  %v617_v11 = vld.sshfl [vmem:[#allocation1 + $0x38] sm:$0xff pattern:$0x73625140] }
  0x80   : > { %5979 = vmatpush.bf16.msrb.mxu0 %v9939_v14  ;;  %v9977_v14 = vld [vmem:[%s11011_s15 + $0x240] sm:$0xff]  ;;  %vm488_vm2 = vcmp.lt.s32.totalorder %v410_v12, 19900  ;;  %vm9691_vm5 = vmpackc.low %vm489_vm1, %vm489_vm1  ;;  %v10078_v12 = vld [vmem:[%s11011_s15 + $0x568] sm:$0xff] }
  0x81   : > { %5992 = vmatpush.bf16.msrb.mxu1 %v9947_v15  ;;  %v610_v15 = vld.sshfl [vmem:[#allocation1] sm:$0xff pattern:$0x73625140]  ;;  %vm9688_vm6 = vmpackc.low %vm488_vm2, %vm488_vm2 }
  0x82   : > { %6005 = vmatpush.bf16.msrb.mxu2 %v9955_v16  ;;  %v412_v16 = vadd.s32 %v11054_v28, %v332_v7  ;;  %v9686_v25 = vpack.c.bf16 %v610_v15, %v610_v15  ;;  %v616_v7 = vld.sshfl [vmem:[#allocation1 + $0x30] sm:$0xff pattern:$0x73625140]  ;;  %v10069_v15 = vld [vmem:[%s11011_s15 + $0x520] sm:$0xff] }
  0x83   : > { %6018 = vmatpush.bf16.msrb.mxu3 %v9963_v19  ;;  %v612_v19 = vld.sshfl [vmem:[#allocation1 + $0x10] sm:$0xff pattern:$0x73625140] }
  0x84   : > { %5980 = vmatpush.bf16.msrb.mxu0 %v9938_v22  ;;  %v10024_v22 = vld [vmem:[%s11011_s15 + $0x3b8] sm:$0xff]  ;;  %v9692_v27 = vpack.c.bf16 %v612_v19, %v612_v19  ;;  %vm490_vm4 = vcmp.lt.s32.totalorder %v412_v16, 19900  ;;  %v9704_v16 = vpack.c.bf16 %v616_v7, %v616_v7  ;;  %v10039_v19 = vld [vmem:[%s11011_s15 + $0x430] sm:$0xff] }
  0x85   : > { %5993 = vmatpush.bf16.msrb.mxu1 %v9946_v23  ;;  %v611_v23 = vld.sshfl [vmem:[#allocation1 + $0x8] sm:$0xff pattern:$0x73625140]  ;;  %vm9694_vm7 = vmpackc.low %vm490_vm4, %vm490_vm4  ;;  %v10071_v7 = vld [vmem:[%s11011_s15 + $0x530] sm:$0xff] }
  0x86   : > { %6006 = vmatpush.bf16.msrb.mxu2 %v9954_v24  ;;  %v9993_v24 = vld [vmem:[%s11011_s15 + $0x2c0] sm:$0xff]  ;;  %v9689_v30 = vpack.c.bf16 %v611_v23, %v611_v23  ;;  %v10063_v23 = vld [vmem:[%s11011_s15 + $0x4f0] sm:$0xff] }
  0x87   : > { %6019 = vmatpush.bf16.msrb.mxu3 %v9962_v29  ;;  %v10032_v29 = vld [vmem:[%s11011_s15 + $0x3f8] sm:$0xff] }
  0x88   : > { %5981 = vmatpush.bf16.msrb.mxu0 %v9937_v31  ;;  %v10007_v31 = vld [vmem:[%s11011_s15 + $0x330] sm:$0xff] }
  0x89   : > { %5994 = vmatpush.bf16.msrb.mxu1 %v9945_v32  ;;  %v9695_v32 = vpack.c.bf16 %v613_v26, %v613_v26  ;;  %v10054_v26 = vld [vmem:[%s11011_s15 + $0x4a8] sm:$0xff] }
  0x8a   : > { %6007 = vmatpush.bf16.msrb.mxu2 %v9953_v33  ;;  %v10015_v33 = vld [vmem:[%s11011_s15 + $0x370] sm:$0xff] }
  0x8b   : > { %6020 = vmatpush.bf16.msrb.mxu3 %v9961_v38  ;;  %9675 = vmatmul.msk.bf16.vlgmr.msrb.gmra.mxu0 %vm11134_vm12, %v9674_v43  ;;  %v10022_v38 = vld [vmem:[%s11011_s15 + $0x3a8] sm:$0xff]  ;;  %v10029_v43 = vld [vmem:[%s11011_s15 + $0x3e0] sm:$0xff] }
  0x8c   : > { %6026 = vmatpush.bf16.msra.mxu0 %v9976_v35  ;;  %9678 = vmatmul.msk.bf16.vlgmr.msrb.gmra.mxu1 %vm9676_vm14, %v9677_v44  ;;  %v10031_v35 = vld [vmem:[%s11011_s15 + $0x3f0] sm:$0xff]  ;;  %v10004_v44 = vld [vmem:[%s11011_s15 + $0x318] sm:$0xff] }
  0x8d   : > { %6039 = vmatpush.bf16.msra.mxu1 %v9984_v36  ;;  %9681 = vmatmul.msk.bf16.vlgmr.msrb.gmra.mxu2 %vm11128_vm11, %v9680_v41  ;;  %v10006_v36 = vld [vmem:[%s11011_s15 + $0x328] sm:$0xff]  ;;  %v10013_v41 = vld [vmem:[%s11011_s15 + $0x360] sm:$0xff] }
  0x8e   : > { %6052 = vmatpush.bf16.msra.mxu2 %v9992_v37  ;;  %9684 = vmatmul.msk.bf16.vlgmr.msrb.gmra.mxu3 %vm9682_vm15, %v9683_v48  ;;  %v10014_v37 = vld [vmem:[%s11011_s15 + $0x368] sm:$0xff]  ;;  %v10003_v48 = vld [vmem:[%s11011_s15 + $0x310] sm:$0xff] }
  0x8f   : > { %6065 = vmatpush.bf16.msra.mxu3 %v10000_v39  ;;  %v10030_v39 = vld [vmem:[%s11011_s15 + $0x3e8] sm:$0xff] }
  0x90   : > { %6027 = vmatpush.bf16.msra.mxu0 %v9975_v45  ;;  %v10012_v45 = vld [vmem:[%s11011_s15 + $0x358] sm:$0xff] }
  0x91   : > { %6040 = vmatpush.bf16.msra.mxu1 %v9983_v46  ;;  %v10020_v46 = vld [vmem:[%s11011_s15 + $0x398] sm:$0xff] }
  0x92   : > { %6053 = vmatpush.bf16.msra.mxu2 %v9991_v47  ;;  %v10028_v47 = vld [vmem:[%s11011_s15 + $0x3d8] sm:$0xff] }
  0x93   : > { %6066 = vmatpush.bf16.msra.mxu3 %v9999_v49  ;;  %v10011_v49 = vld [vmem:[%s11011_s15 + $0x350] sm:$0xff] }
  0x94   : > { %6028 = vmatpush.bf16.msra.mxu0 %v9974_v50  ;;  %v333_v50 = vadd.s32 1536, %v11045_v21 }
  0x95   : > { %6041 = vmatpush.bf16.msra.mxu1 %v9982_v51  ;;  %v335_v51 = vadd.s32 1792, %v11045_v21 }
  0x96   : > { %6054 = vmatpush.bf16.msra.mxu2 %v9990_v52  ;;  %v10019_v52 = vld [vmem:[%s11011_s15 + $0x390] sm:$0xff] }
  0x97   : > { %6067 = vmatpush.bf16.msra.mxu3 %v9998_v53  ;;  %v10027_v53 = vld [vmem:[%s11011_s15 + $0x3d0] sm:$0xff] }
  0x98   : > { %6029 = vmatpush.bf16.msra.mxu0 %v9973_v54  ;;  %v334_v54 = vadd.s32 1664, %v11045_v21 }
  0x99   : > { %6042 = vmatpush.bf16.msra.mxu1 %v9981_v55  ;;  %v10002_v55 = vld [vmem:[%s11011_s15 + $0x308] sm:$0xff] }
  0x9a   : > { %6055 = vmatpush.bf16.msra.mxu2 %v9989_v56  ;;  %v336_v56 = vadd.s32 1920, %v11045_v21 }
  0x9b   : > { %6068 = vmatpush.bf16.msra.mxu3 %v9997_v57  ;;  %v561_v57 = vld [vmem:[%s11004_s17 + $0x20] sm:$0xff] }
  0x9c   : > { %6030 = vmatpush.bf16.msra.mxu0 %v9972_v58  ;;  %v10010_v58 = vld [vmem:[%s11011_s15 + $0x348] sm:$0xff]  ;;  %618 = vst [vmem:[#allocation1] ss:$4 sm:$0xff] %v561_v57  ;;  %v416_v4 = vadd.s32 %v11054_v28, %v336_v56  ;;  %v10041_v56 = vld [vmem:[%s11011_s15 + $0x440] sm:$0xff] }
  0x9d   : > { %6043 = vmatpush.bf16.msra.mxu1 %v9980_v59  ;;  %v413_v59 = vadd.s32 %v11054_v28, %v333_v50  ;;  %v10058_v50 = vld [vmem:[%s11011_s15 + $0x4c8] sm:$0xff]  ;;  %v10049_v57 = vld [vmem:[%s11011_s15 + $0x480] sm:$0xff] }
  0x9e   : > { %6056 = vmatpush.bf16.msra.mxu2 %v9988_v60  ;;  %v415_v60 = vadd.s32 %v11054_v28, %v335_v51  ;;  %vm494_vm12 = vcmp.lt.s32.totalorder %v416_v4, 19900  ;;  %v10096_v4 = vld [vmem:[%s11011_s15 + $0x5f8] sm:$0xff] }
  0x9f   : > { %6069 = vmatpush.bf16.msra.mxu3 %v9996_v61  ;;  %v10018_v61 = vld [vmem:[%s11011_s15 + $0x388] sm:$0xff]  ;;  %vm491_vm8 = vcmp.lt.s32.totalorder %v413_v59, 19900  ;;  %vm9706_vm15 = vmpackc.low %vm494_vm12, %vm494_vm12  ;;  %v10072_v59 = vld [vmem:[%s11011_s15 + $0x538] sm:$0xff] }
  0xa0   : > { %6031 = vmatpush.bf16.msra.mxu0 %v9971_v62  ;;  %v10026_v62 = vld [vmem:[%s11011_s15 + $0x3c8] sm:$0xff]  ;;  %vm493_vm9 = vcmp.lt.s32.totalorder %v415_v60, 19900  ;;  %vm11228_vm11 = vmpackc.low %vm491_vm8, %vm491_vm8  ;;  %v10080_v60 = vld [vmem:[%s11011_s15 + $0x578] sm:$0xff] }
  0xa1   : > { %6044 = vmatpush.bf16.msra.mxu1 %v9979_v63  ;;  %v10001_v63 = vld [vmem:[%s11011_s15 + $0x300] sm:$0xff]  ;;  %vm11235_vm13 = vmpackc.low %vm493_vm9, %vm493_vm9 }
  0xa2   : > { %6057 = vmatpush.bf16.msra.mxu2 %v9987_v0  ;;  %v414_v0 = vadd.s32 %v11054_v28, %v334_v54 }
  0xa3   : > { %6070 = vmatpush.bf16.msra.mxu3 %v9995_v2  ;;  %v10017_v2 = vld [vmem:[%s11011_s15 + $0x380] sm:$0xff] }
  0xa4   : > { %6032 = vmatpush.bf16.msra.mxu0 %v9970_v5  ;;  %v10048_v5 = vld [vmem:[%s11011_s15 + $0x478] sm:$0xff]  ;;  %vm492_vm10 = vcmp.lt.s32.totalorder %v414_v0, 19900  ;;  %v620_v54 = vld.sshfl [vmem:[#allocation1] sm:$0xff pattern:$0x73625140] }
  0xa5   : > { %6045 = vmatpush.bf16.msra.mxu1 %v9978_v6  ;;  %v614_v6 = vld.sshfl [vmem:[#allocation1 + $0x20] sm:$0xff pattern:$0x73625140]  ;;  %vm9700_vm14 = vmpackc.low %vm492_vm10, %vm492_vm10  ;;  %v623_v0 = vld.sshfl [vmem:[#allocation1 + $0x18] sm:$0xff pattern:$0x73625140] }
  0xa6   : > { %6058 = vmatpush.bf16.msra.mxu2 %v9986_v8  ;;  %v615_v8 = vld.sshfl [vmem:[#allocation1 + $0x28] sm:$0xff pattern:$0x73625140] }
  0xa7   : > { %6071 = vmatpush.bf16.msra.mxu3 %v9994_v10  ;;  %v10025_v10 = vld [vmem:[%s11011_s15 + $0x3c0] sm:$0xff] }
  0xa8   : > { %6033 = vmatpush.bf16.msra.mxu0 %v9969_v13  ;;  %v9698_v13 = vpack.c.bf16 %v614_v6, %v614_v6  ;;  %v9719_v6 = vpack.c.bf16 %v623_v0, %v623_v0 }
  0xa9   : > { %6046 = vmatpush.bf16.msra.mxu1 %v9977_v14  ;;  %v10064_v14 = vld [vmem:[%s11011_s15 + $0x4f8] sm:$0xff] }
  0xaa   : > { %6059 = vmatpush.bf16.msra.mxu2 %v9985_v17  ;;  %v9701_v17 = vpack.c.bf16 %v615_v8, %v615_v8  ;;  %v10079_v8 = vld [vmem:[%s11011_s15 + $0x570] sm:$0xff] }
  0xab   : > { %6072 = vmatpush.bf16.msra.mxu3 %v9993_v24  ;;  %9687 = vmatmul.msk.bf16.vlgmr.msra.gmra.mxu0 %vm9685_vm3, %v9686_v25  ;;  %v10038_v24 = vld [vmem:[%s11011_s15 + $0x428] sm:$0xff] }
  0xac   : > { %6078 = vmatpush.bf16.msrb.mxu0 %v10008_v18  ;;  %9690 = vmatmul.msk.bf16.vlgmr.msra.gmra.mxu1 %vm9688_vm6, %v9689_v30  ;;  %v9707_v18 = vpack.c.bf16 %v617_v11, %v617_v11  ;;  %v10046_v25 = vld [vmem:[%s11011_s15 + $0x468] sm:$0xff]  ;;  %v10045_v30 = vld [vmem:[%s11011_s15 + $0x460] sm:$0xff] }
  0xad   : > { %6091 = vmatpush.bf16.msrb.mxu1 %v10016_v20  ;;  %9693 = vmatmul.msk.bf16.vlgmr.msra.gmra.mxu2 %vm9691_vm5, %v9692_v27  ;;  %v10047_v20 = vld [vmem:[%s11011_s15 + $0x470] sm:$0xff]  ;;  %v10062_v27 = vld [vmem:[%s11011_s15 + $0x4e8] sm:$0xff] }
  0xae   : > { %6104 = vmatpush.bf16.msrb.mxu2 %v10024_v22  ;;  %9696 = vmatmul.msk.bf16.vlgmr.msra.gmra.mxu3 %vm9694_vm7, %v9695_v32  ;;  %v10055_v22 = vld [vmem:[%s11011_s15 + $0x4b0] sm:$0xff]  ;;  %v10061_v32 = vld [vmem:[%s11011_s15 + $0x4e0] sm:$0xff]  ;;  %v10070_v11 = vld [vmem:[%s11011_s15 + $0x528] sm:$0xff] }
  0xaf   : > { %6117 = vmatpush.bf16.msrb.mxu3 %v10032_v29  ;;  %v10037_v29 = vld [vmem:[%s11011_s15 + $0x420] sm:$0xff] }
  0xb0   : > { %6079 = vmatpush.bf16.msrb.mxu0 %v10007_v31  ;;  %v10053_v31 = vld [vmem:[%s11011_s15 + $0x4a0] sm:$0xff] }
  0xb1   : > { %6092 = vmatpush.bf16.msrb.mxu1 %v10015_v33  ;;  %v10036_v33 = vld [vmem:[%s11011_s15 + $0x418] sm:$0xff] }
  0xb2   : > { %6105 = vmatpush.bf16.msrb.mxu2 %v10023_v34  ;;  %v10044_v34 = vld [vmem:[%s11011_s15 + $0x458] sm:$0xff] }
  0xb3   : > { %6118 = vmatpush.bf16.msrb.mxu3 %v10031_v35  ;;  %v10052_v35 = vld [vmem:[%s11011_s15 + $0x498] sm:$0xff] }
  0xb4   : > { %6080 = vmatpush.bf16.msrb.mxu0 %v10006_v36  ;;  %v10060_v36 = vld [vmem:[%s11011_s15 + $0x4d8] sm:$0xff] }
  0xb5   : > { %6093 = vmatpush.bf16.msrb.mxu1 %v10014_v37  ;;  %v10035_v37 = vld [vmem:[%s11011_s15 + $0x410] sm:$0xff] }
  0xb6   : > { %6106 = vmatpush.bf16.msrb.mxu2 %v10022_v38  ;;  %v10043_v38 = vld [vmem:[%s11011_s15 + $0x450] sm:$0xff] }
  0xb7   : > { %6119 = vmatpush.bf16.msrb.mxu3 %v10030_v39  ;;  %v10051_v39 = vld [vmem:[%s11011_s15 + $0x490] sm:$0xff] }
  0xb8   : > { %6081 = vmatpush.bf16.msrb.mxu0 %v10005_v40  ;;  %v337_v40 = vadd.s32 2048, %v11045_v21 }
  0xb9   : > { %6094 = vmatpush.bf16.msrb.mxu1 %v10013_v41  ;;  %v10059_v41 = vld [vmem:[%s11011_s15 + $0x4d0] sm:$0xff] }
  0xba   : > { %6107 = vmatpush.bf16.msrb.mxu2 %v10021_v42  ;;  %v339_v42 = vadd.s32 2304, %v11045_v21 }
  0xbb   : > { %6120 = vmatpush.bf16.msrb.mxu3 %v10029_v43  ;;  %v338_v43 = vadd.s32 2176, %v11045_v21 }
  0xbc   : > { %6082 = vmatpush.bf16.msrb.mxu0 %v10004_v44  ;;  %v10034_v44 = vld [vmem:[%s11011_s15 + $0x408] sm:$0xff]  ;;  %v419_v51 = vadd.s32 %v11054_v28, %v339_v42  ;;  %v344_v42 = vadd.s32 2944, %v11045_v21 }
  0xbd   : > { %6095 = vmatpush.bf16.msrb.mxu1 %v10012_v45  ;;  %v340_v45 = vadd.s32 2432, %v11045_v21 }
  0xbe   : > { %6108 = vmatpush.bf16.msrb.mxu2 %v10020_v46  ;;  %v562_v46 = vld [vmem:[%s11004_s17 + $0x28] sm:$0xff]  ;;  %vm497_vm1 = vcmp.lt.s32.totalorder %v419_v51, 19900  ;;  %v10065_v51 = vld [vmem:[%s11011_s15 + $0x500] sm:$0xff] }
  0xbf   : > { %6121 = vmatpush.bf16.msrb.mxu3 %v10028_v47  ;;  %v10042_v47 = vld [vmem:[%s11011_s15 + $0x448] sm:$0xff]  ;;  %619 = vst [vmem:[#allocation1 + $0x20] ss:$4 sm:$0xff] %v562_v46  ;;  %vm9715_vm5 = vmpackc.low %vm497_vm1, %vm497_vm1 }
  0xc0   : > { %6083 = vmatpush.bf16.msrb.mxu0 %v10003_v48  ;;  %v10050_v48 = vld [vmem:[%s11011_s15 + $0x488] sm:$0xff] }
  0xc1   : > { %6096 = vmatpush.bf16.msrb.mxu1 %v10011_v49  ;;  %v417_v49 = vadd.s32 %v11054_v28, %v337_v40 }
  0xc2   : > { %6109 = vmatpush.bf16.msrb.mxu2 %v10019_v52  ;;  %v418_v52 = vadd.s32 %v11054_v28, %v338_v43  ;;  %v563_v43 = vld [vmem:[%s11004_s17 + $0x30] sm:$0xff] }
  0xc3   : > { %6122 = vmatpush.bf16.msrb.mxu3 %v10027_v53  ;;  %v10033_v53 = vld [vmem:[%s11011_s15 + $0x400] sm:$0xff]  ;;  %vm495_vm0 = vcmp.lt.s32.totalorder %v417_v49, 19900 }
  0xc4   : > { %6084 = vmatpush.bf16.msrb.mxu0 %v10002_v55  ;;  %v420_v55 = vadd.s32 %v11054_v28, %v340_v45  ;;  %vm496_vm2 = vcmp.lt.s32.totalorder %v418_v52, 19900  ;;  %vm11283_vm3 = vmpackc.low %vm495_vm0, %vm495_vm0  ;;  %v10082_v45 = vld [vmem:[%s11011_s15 + $0x588] sm:$0xff] }
  0xc5   : > { %6097 = vmatpush.bf16.msrb.mxu1 %v10010_v58  ;;  %v622_v58 = vld.sshfl [vmem:[#allocation1 + $0x10] sm:$0xff pattern:$0x73625140]  ;;  %vm9712_vm6 = vmpackc.low %vm496_vm2, %vm496_vm2 }
  0xc6   : > { %6110 = vmatpush.bf16.msrb.mxu2 %v10018_v61  ;;  %v621_v61 = vld.sshfl [vmem:[#allocation1 + $0x8] sm:$0xff pattern:$0x73625140]  ;;  %vm498_vm4 = vcmp.lt.s32.totalorder %v420_v55, 19900  ;;  %v10081_v55 = vld [vmem:[%s11011_s15 + $0x580] sm:$0xff] }
  0xc7   : > { %6123 = vmatpush.bf16.msrb.mxu3 %v10026_v62  ;;  %v10088_v62 = vld [vmem:[%s11011_s15 + $0x5b8] sm:$0xff]  ;;  %vm9718_vm7 = vmpackc.low %vm498_vm4, %vm498_vm4  ;;  %628 = vst [vmem:[#allocation1] ss:$4 sm:$0xff] %v563_v43  ;;  %v624_v52 = vld.sshfl [vmem:[#allocation1 + $0x20] sm:$0xff pattern:$0x73625140] }
  0xc8   : > { %6085 = vmatpush.bf16.msrb.mxu0 %v10001_v63  ;;  %v10057_v63 = vld [vmem:[%s11011_s15 + $0x4c0] sm:$0xff] }
  0xc9   : > { %6098 = vmatpush.bf16.msrb.mxu1 %v10009_v1  ;;  %v9722_v1 = vpack.c.bf16 %v624_v52, %v624_v52  ;;  %v564_v43 = vld [vmem:[%s11004_s17 + $0x38] sm:$0xff] }
  0xca   : > { %6111 = vmatpush.bf16.msrb.mxu2 %v10017_v2  ;;  %v9710_v2 = vpack.c.bf16 %v620_v54, %v620_v54  ;;  %v10073_v54 = vld [vmem:[%s11011_s15 + $0x540] sm:$0xff] }
  0xcb   : > { %6124 = vmatpush.bf16.msrb.mxu3 %v10025_v10  ;;  %9699 = vmatmul.msk.bf16.vlgmr.msrb.gmra.mxu0 %vm11228_vm11, %v9698_v13  ;;  %v10095_v10 = vld [vmem:[%s11011_s15 + $0x5f0] sm:$0xff]  ;;  %v10086_v13 = vld [vmem:[%s11011_s15 + $0x5a8] sm:$0xff] }
  0xcc   : > { %6130 = vmatpush.bf16.msra.mxu0 %v10040_v3  ;;  %9702 = vmatmul.msk.bf16.vlgmr.msrb.gmra.mxu1 %vm9700_vm14, %v9701_v17  ;;  %v9716_v3 = vpack.c.bf16 %v622_v58, %v622_v58  ;;  %v10077_v17 = vld [vmem:[%s11011_s15 + $0x560] sm:$0xff]  ;;  %v10112_v58 = vld [vmem:[%s11011_s15 + $0x678] sm:$0xff] }
  0xcd   : > { %6143 = vmatpush.bf16.msra.mxu1 %v10048_v5  ;;  %9705 = vmatmul.msk.bf16.vlgmr.msrb.gmra.mxu2 %vm11235_vm13, %v9704_v16  ;;  %v9713_v5 = vpack.c.bf16 %v621_v61, %v621_v61  ;;  %v10120_v61 = vld [vmem:[%s11011_s15 + $0x6b8] sm:$0xff] }
  0xce   : > { %6156 = vmatpush.bf16.msra.mxu2 %v10056_v9  ;;  %9708 = vmatmul.msk.bf16.vlgmr.msrb.gmra.mxu3 %vm9706_vm15, %v9707_v18  ;;  %v10087_v9 = vld [vmem:[%s11011_s15 + $0x5b0] sm:$0xff]  ;;  %v10085_v18 = vld [vmem:[%s11011_s15 + $0x5a0] sm:$0xff] }
  0xcf   : > { %6169 = vmatpush.bf16.msra.mxu3 %v10064_v14  ;;  %v10094_v14 = vld [vmem:[%s11011_s15 + $0x5e8] sm:$0xff]  ;;  %v630_v52 = vld.sshfl [vmem:[#allocation1] sm:$0xff pattern:$0x73625140] }
  0xd0   : > { %6131 = vmatpush.bf16.msra.mxu0 %v10039_v19 }
  0xd1   : > { %6144 = vmatpush.bf16.msra.mxu1 %v10047_v20  ;;  %v10093_v20 = vld [vmem:[%s11011_s15 + $0x5e0] sm:$0xff] }
  0xd2   : > { %6157 = vmatpush.bf16.msra.mxu2 %v10055_v22 }
  0xd3   : > { %6170 = vmatpush.bf16.msra.mxu3 %v10063_v23  ;;  %v10068_v23 = vld [vmem:[%s11011_s15 + $0x518] sm:$0xff] }
  0xd4   : > { %6132 = vmatpush.bf16.msra.mxu0 %v10038_v24  ;;  %v10076_v24 = vld [vmem:[%s11011_s15 + $0x558] sm:$0xff] }
  0xd5   : > { %6145 = vmatpush.bf16.msra.mxu1 %v10046_v25  ;;  %v10084_v25 = vld [vmem:[%s11011_s15 + $0x598] sm:$0xff] }
  0xd6   : > { %6158 = vmatpush.bf16.msra.mxu2 %v10054_v26  ;;  %v10092_v26 = vld [vmem:[%s11011_s15 + $0x5d8] sm:$0xff] }
  0xd7   : > { %6171 = vmatpush.bf16.msra.mxu3 %v10062_v27 }
  0xd8   : > { %6133 = vmatpush.bf16.msra.mxu0 %v10037_v29  ;;  %v10067_v29 = vld [vmem:[%s11011_s15 + $0x510] sm:$0xff] }
  0xd9   : > { %6146 = vmatpush.bf16.msra.mxu1 %v10045_v30 }
  0xda   : > { %6159 = vmatpush.bf16.msra.mxu2 %v10053_v31 }
  0xdb   : > { %6172 = vmatpush.bf16.msra.mxu3 %v10061_v32  ;;  %v10075_v32 = vld [vmem:[%s11011_s15 + $0x550] sm:$0xff] }
  0xdc   : > { %6134 = vmatpush.bf16.msra.mxu0 %v10036_v33  ;;  %v10083_v33 = vld [vmem:[%s11011_s15 + $0x590] sm:$0xff] }
  0xdd   : > { %6147 = vmatpush.bf16.msra.mxu1 %v10044_v34  ;;  %v341_v34 = vadd.s32 2560, %v11045_v21 }
  0xde   : > { %6160 = vmatpush.bf16.msra.mxu2 %v10052_v35  ;;  %v343_v35 = vadd.s32 2816, %v11045_v21 }
  0xdf   : > { %6173 = vmatpush.bf16.msra.mxu3 %v10060_v36  ;;  %v421_v46 = vadd.s32 %v11054_v28, %v341_v34  ;;  %v345_v34 = vadd.s32 3072, %v11045_v21 }
  0xe0   : > { %6135 = vmatpush.bf16.msra.mxu0 %v10035_v37 }
  0xe1   : > { %6148 = vmatpush.bf16.msra.mxu1 %v10043_v38  ;;  %v10091_v38 = vld [vmem:[%s11011_s15 + $0x5d0] sm:$0xff]  ;;  %vm499_vm8 = vcmp.lt.s32.totalorder %v421_v46, 19900  ;;  %v425_v46 = vadd.s32 %v11054_v28, %v345_v34 }
  0xe2   : > { %6161 = vmatpush.bf16.msra.mxu2 %v10051_v39  ;;  %v342_v39 = vadd.s32 2688, %v11045_v21  ;;  %vm11332_vm11 = vmpackc.low %vm499_vm8, %vm499_vm8  ;;  %v10139_v34 = vld [vmem:[%s11011_s15 + $0x750] sm:$0xff] }
  0xe3   : > { %6174 = vmatpush.bf16.msra.mxu3 %v10059_v41  ;;  %v10066_v41 = vld [vmem:[%s11011_s15 + $0x508] sm:$0xff]  ;;  %vm503_vm0 = vcmp.lt.s32.totalorder %v425_v46, 19900 }
  0xe4   : > { %6136 = vmatpush.bf16.msra.mxu0 %v10034_v44  ;;  %v10074_v44 = vld [vmem:[%s11011_s15 + $0x548] sm:$0xff]  ;;  %v422_v49 = vadd.s32 %v11054_v28, %v342_v39  ;;  %v10123_v39 = vld [vmem:[%s11011_s15 + $0x6d0] sm:$0xff] }
  0xe5   : > { %6149 = vmatpush.bf16.msra.mxu1 %v10042_v47  ;;  %v423_v47 = vadd.s32 %v11054_v28, %v343_v35 }
  0xe6   : > { %6162 = vmatpush.bf16.msra.mxu2 %v10050_v48  ;;  %v10090_v48 = vld [vmem:[%s11011_s15 + $0x5c8] sm:$0xff]  ;;  %vm500_vm10 = vcmp.lt.s32.totalorder %v422_v49, 19900 }
  0xe7   : > { %6175 = vmatpush.bf16.msra.mxu3 %v10058_v50  ;;  %vm501_vm9 = vcmp.lt.s32.totalorder %v423_v47, 19900  ;;  %vm9724_vm14 = vmpackc.low %vm500_vm10, %vm500_vm10  ;;  %v10122_v49 = vld [vmem:[%s11011_s15 + $0x6c8] sm:$0xff] }
  0xe8   : > { %6137 = vmatpush.bf16.msra.mxu0 %v10033_v53  ;;  %v5931_v16 = vpop.f32.mrf.mxu0  ;;  %v424_v53 = vadd.s32 %v11054_v28, %v344_v42  ;;  %vm9727_vm13 = vmpackc.low %vm501_vm9, %vm501_vm9  ;;  %v348_v42 = vadd.s32 3456, %v11045_v21 }
  0xe9   : > { %6150 = vmatpush.bf16.msra.mxu1 %v10041_v56  ;;  %v5944_v19 = vpop.f32.mrf.mxu1  ;;  %v626_v56 = vld.sshfl [vmem:[#allocation1 + $0x30] sm:$0xff pattern:$0x73625140] }
  0xea   : > { %6163 = vmatpush.bf16.msra.mxu2 %v10049_v57  ;;  %v5945_v22 = vadd.f32 %v5944_v19, %v5931_v16  ;;  %v10104_v57 = vld [vmem:[%s11011_s15 + $0x638] sm:$0xff]  ;;  %vm502_vm12 = vcmp.lt.s32.totalorder %v424_v53, 19900  ;;  %v10117_v16 = vld [vmem:[%s11011_s15 + $0x6a0] sm:$0xff]  ;;  %v428_v53 = vadd.s32 %v11054_v28, %v348_v42  ;;  %v352_v42 = vadd.s32 3968, %v11045_v21 }
  0xeb   : > { %6176 = vmatpush.bf16.msra.mxu3 %v10057_v63  ;;  %9711 = vmatmul.msk.bf16.vlgmr.msra.gmra.mxu0 %vm11283_vm3, %v9710_v2  ;;  %v627_v63 = vld.sshfl [vmem:[#allocation1 + $0x38] sm:$0xff pattern:$0x73625140]  ;;  %v9728_v2 = vpack.c.bf16 %v626_v56, %v626_v56  ;;  %vm9730_vm15 = vmpackc.low %vm502_vm12, %vm502_vm12  ;;  %v632_v56 = vld.sshfl [vmem:[#allocation1 + $0x10] sm:$0xff pattern:$0x73625140] }
  0xec   : > { %6182 = vmatpush.bf16.msrb.mxu0 %v10072_v59  ;;  %9714 = vmatmul.msk.bf16.vlgmr.msra.gmra.mxu1 %vm9712_vm6, %v9713_v5  ;;  %v625_v59 = vld.sshfl [vmem:[#allocation1 + $0x28] sm:$0xff pattern:$0x73625140]  ;;  %v9731_v5 = vpack.c.bf16 %v627_v63, %v627_v63  ;;  %v633_v63 = vld.sshfl [vmem:[#allocation1 + $0x18] sm:$0xff pattern:$0x73625140]  ;;  %vm11382_vm3 = vmpackc.low %vm503_vm0, %vm503_vm0 }
  0xed   : > { %6195 = vmatpush.bf16.msrb.mxu1 %v10080_v60  ;;  %9717 = vmatmul.msk.bf16.vlgmr.msra.gmra.mxu2 %vm9715_vm5, %v9716_v3  ;;  %v10128_v3 = vld [vmem:[%s11011_s15 + $0x6f8] sm:$0xff]  ;;  %629 = vst [vmem:[#allocation1 + $0x20] ss:$4 sm:$0xff] %v564_v43  ;;  %vm506_vm4 = vcmp.lt.s32.totalorder %v428_v53, 19900  ;;  %v565_v43 = vld [vmem:[%s11004_s17 + $0x40] sm:$0xff]  ;;  %v432_v53 = vadd.s32 %v11054_v28, %v352_v42  ;;  %v356_v42 = vadd.s32 4480, %v11045_v21 }
  0xee   : > { %6208 = vmatpush.bf16.msrb.mxu2 %v10088_v62  ;;  %9720 = vmatmul.msk.bf16.vlgmr.msra.gmra.mxu3 %vm9718_vm7, %v9719_v6  ;;  %v10089_v62 = vld [vmem:[%s11011_s15 + $0x5c0] sm:$0xff]  ;;  %v10103_v6 = vld [vmem:[%s11011_s15 + $0x630] sm:$0xff]  ;;  %vm9742_vm7 = vmpackc.low %vm506_vm4, %vm506_vm4 }
  0xef   : > { %6221 = vmatpush.bf16.msrb.mxu3 %v10096_v4  ;;  %v9725_v4 = vpack.c.bf16 %v625_v59, %v625_v59  ;;  %v10144_v59 = vld [vmem:[%s11011_s15 + $0x778] sm:$0xff]  ;;  %vm510_vm12 = vcmp.lt.s32.totalorder %v432_v53, 19900 }
  0xf0   : > { %6183 = vmatpush.bf16.msrb.mxu0 %v10071_v7  ;;  %v5957_v27 = vpop.f32.mrf.mxu2  ;;  %v5933_v31 = vpop.f32.mrf.mxu0  ;;  %v10111_v7 = vld [vmem:[%s11011_s15 + $0x670] sm:$0xff] }
  0xf1   : > { %6196 = vmatpush.bf16.msrb.mxu1 %v10079_v8  ;;  %v5958_v30 = vadd.f32 %v5957_v27, %v5945_v22  ;;  %v5970_v36 = vpop.f32.mrf.mxu3  ;;  %v5946_v37 = vpop.f32.mrf.mxu1  ;;  %v10119_v8 = vld [vmem:[%s11011_s15 + $0x6b0] sm:$0xff]  ;;  %v10100_v22 = vld [vmem:[%s11011_s15 + $0x618] sm:$0xff] }
  0xf2   : > { %6209 = vmatpush.bf16.msrb.mxu2 %v10087_v9  ;;  %v10127_v9 = vld [vmem:[%s11011_s15 + $0x6f0] sm:$0xff]  ;;  %v10124_v27 = vld [vmem:[%s11011_s15 + $0x6d8] sm:$0xff]  ;;  %v347_v37 = vadd.s32 3328, %v11045_v21 }
  0xf3   : > { %6222 = vmatpush.bf16.msrb.mxu3 %v10095_v10  ;;  %v11313_v40 = vadd.f32 %v5970_v36, %v5958_v30  ;;  %v10102_v10 = vld [vmem:[%s11011_s15 + $0x628] sm:$0xff]  ;;  %v10099_v30 = vld [vmem:[%s11011_s15 + $0x610] sm:$0xff] }
  0xf4   : > { %6184 = vmatpush.bf16.msrb.mxu0 %v10070_v11  ;;  %v10110_v11 = vld [vmem:[%s11011_s15 + $0x668] sm:$0xff]  ;;  %v10107_v31 = vld [vmem:[%s11011_s15 + $0x650] sm:$0xff]  ;;  %v427_v47 = vadd.s32 %v11054_v28, %v347_v37 }
  0xf5   : > { %6197 = vmatpush.bf16.msrb.mxu1 %v10078_v12  ;;  %v10118_v12 = vld [vmem:[%s11011_s15 + $0x6a8] sm:$0xff] }
  0xf6   : > { %6210 = vmatpush.bf16.msrb.mxu2 %v10086_v13  ;;  %v10126_v13 = vld [vmem:[%s11011_s15 + $0x6e8] sm:$0xff]  ;;  %vm505_vm1 = vcmp.lt.s32.totalorder %v427_v47, 19900 }
  0xf7   : > { %6223 = vmatpush.bf16.msrb.mxu3 %v10094_v14  ;;  %v10101_v14 = vld [vmem:[%s11011_s15 + $0x620] sm:$0xff]  ;;  %vm9739_vm5 = vmpackc.low %vm505_vm1, %vm505_vm1 }
  0xf8   : > { %6185 = vmatpush.bf16.msrb.mxu0 %v10069_v15  ;;  %v5959_v50 = vpop.f32.mrf.mxu2  ;;  %v10109_v15 = vld [vmem:[%s11011_s15 + $0x660] sm:$0xff] }
  0xf9   : > { %6198 = vmatpush.bf16.msrb.mxu1 %v10077_v17  ;;  %v5972_v60 = vpop.f32.mrf.mxu3 }
  0xfa   : > { %6211 = vmatpush.bf16.msrb.mxu2 %v10085_v18  ;;  %v631_v60 = vld.sshfl [vmem:[#allocation1 + $0x8] sm:$0xff pattern:$0x73625140] }
  0xfb   : > { %6224 = vmatpush.bf16.msrb.mxu3 %v10093_v20  ;;  %v10125_v20 = vld [vmem:[%s11011_s15 + $0x6e0] sm:$0xff]  ;;  %638 = vst [vmem:[#allocation1] ss:$4 sm:$0xff] %v565_v43  ;;  %v566_v43 = vld [vmem:[%s11004_s17 + $0x48] sm:$0xff] }
  0xfc   : > { %6186 = vmatpush.bf16.msrb.mxu0 %v10068_v23 }
  0xfd   : > { %6199 = vmatpush.bf16.msrb.mxu1 %v10076_v24  ;;  %v10108_v24 = vld [vmem:[%s11011_s15 + $0x658] sm:$0xff] }
  0xfe   : > { %6212 = vmatpush.bf16.msrb.mxu2 %v10084_v25  ;;  %v10116_v25 = vld [vmem:[%s11011_s15 + $0x698] sm:$0xff] }
  0xff   : > { %6225 = vmatpush.bf16.msrb.mxu3 %v10092_v26 }
 0x100   : > { %6187 = vmatpush.bf16.msrb.mxu0 %v10067_v29 }
 0x101   : > { %6200 = vmatpush.bf16.msrb.mxu1 %v10075_v32  ;;  %v10115_v32 = vld [vmem:[%s11011_s15 + $0x690] sm:$0xff] }
 0x102   : > { %6213 = vmatpush.bf16.msrb.mxu2 %v10083_v33  ;;  %v640_v53 = vld.sshfl [vmem:[#allocation1] sm:$0xff pattern:$0x73625140] }
 0x103   : > { %6226 = vmatpush.bf16.msrb.mxu3 %v10091_v38 }
 0x104   : > { %6188 = vmatpush.bf16.msrb.mxu0 %v10066_v41  ;;  %v10098_v41 = vld [vmem:[%s11011_s15 + $0x608] sm:$0xff] }
 0x105   : > { %6201 = vmatpush.bf16.msrb.mxu1 %v10074_v44  ;;  %v10106_v44 = vld [vmem:[%s11011_s15 + $0x648] sm:$0xff] }
 0x106   : > { %6214 = vmatpush.bf16.msrb.mxu2 %v10082_v45  ;;  %v10114_v45 = vld [vmem:[%s11011_s15 + $0x688] sm:$0xff] }
 0x107   : > { %6227 = vmatpush.bf16.msrb.mxu3 %v10090_v48 }
 0x108   : > { %6189 = vmatpush.bf16.msrb.mxu0 %v10065_v51  ;;  %v5983_v17 = vpop.f32.mrf.mxu0  ;;  %v10097_v51 = vld [vmem:[%s11011_s15 + $0x600] sm:$0xff] }
 0x109   : > { %6202 = vmatpush.bf16.msrb.mxu1 %v10073_v54  ;;  %v5996_v18 = vpop.f32.mrf.mxu1  ;;  %v5984_v19 = vadd.f32 %v5983_v17, %v11313_v40  ;;  %v346_v40 = vadd.s32 3200, %v11045_v21  ;;  %v10105_v54 = vld [vmem:[%s11011_s15 + $0x640] sm:$0xff] }
 0x10a   : > { %6215 = vmatpush.bf16.msrb.mxu2 %v10081_v55  ;;  %v10113_v55 = vld [vmem:[%s11011_s15 + $0x680] sm:$0xff] }
 0x10b   : > { %6228 = vmatpush.bf16.msrb.mxu3 %v10089_v62  ;;  %9723 = vmatmul.msk.bf16.vlgmr.msrb.gmra.mxu0 %vm11332_vm11, %v9722_v1  ;;  %v5997_v23 = vadd.f32 %v5996_v18, %v5984_v19  ;;  %v426_v50 = vadd.s32 %v11054_v28, %v346_v40  ;;  %v10121_v62 = vld [vmem:[%s11011_s15 + $0x6c0] sm:$0xff]  ;;  %v9734_v1 = vpack.c.bf16 %v630_v52, %v630_v52  ;;  %v350_v40 = vadd.s32 3712, %v11045_v21 }
 0x10c   : > { %6234 = vmatpush.bf16.msra.mxu0 %v10104_v57  ;;  %9726 = vmatmul.msk.bf16.vlgmr.msrb.gmra.mxu1 %vm9724_vm14, %v9725_v4  ;;  %v9737_v4 = vpack.c.bf16 %v631_v60, %v631_v60  ;;  %v10141_v17 = vld [vmem:[%s11011_s15 + $0x760] sm:$0xff]  ;;  %v635_v60 = vld.sshfl [vmem:[#allocation1 + $0x28] sm:$0xff pattern:$0x73625140] }
 0x10d   : > { %6247 = vmatpush.bf16.msra.mxu1 %v10112_v58  ;;  %9729 = vmatmul.msk.bf16.vlgmr.msrb.gmra.mxu2 %vm9727_vm13, %v9728_v2  ;;  %v10136_v58 = vld [vmem:[%s11011_s15 + $0x738] sm:$0xff]  ;;  %vm504_vm2 = vcmp.lt.s32.totalorder %v426_v50, 19900  ;;  %v9740_v2 = vpack.c.bf16 %v632_v56, %v632_v56  ;;  %v10149_v18 = vld [vmem:[%s11011_s15 + $0x7a0] sm:$0xff]  ;;  %v430_v50 = vadd.s32 %v11054_v28, %v350_v40  ;;  %v354_v40 = vadd.s32 4224, %v11045_v21 }
 0x10e   : > { %6260 = vmatpush.bf16.msra.mxu2 %v10120_v61  ;;  %9732 = vmatmul.msk.bf16.vlgmr.msrb.gmra.mxu3 %vm9730_vm15, %v9731_v5  ;;  %v10152_v61 = vld [vmem:[%s11011_s15 + $0x7b8] sm:$0xff]  ;;  %vm9736_vm6 = vmpackc.low %vm504_vm2, %vm504_vm2  ;;  %v9743_v5 = vpack.c.bf16 %v633_v63, %v633_v63  ;;  %v634_v52 = vld.sshfl [vmem:[#allocation1 + $0x20] sm:$0xff pattern:$0x73625140] }
 0x10f   : > { %6273 = vmatpush.bf16.msra.mxu3 %v10128_v3  ;;  %v10160_v3 = vld [vmem:[%s11011_s15 + $0x7f8] sm:$0xff]  ;;  %v10145_v56 = vld [vmem:[%s11011_s15 + $0x780] sm:$0xff]  ;;  %vm508_vm10 = vcmp.lt.s32.totalorder %v430_v50, 19900  ;;  %vm9754_vm15 = vmpackc.low %vm510_vm12, %vm510_vm12  ;;  %v434_v50 = vadd.s32 %v11054_v28, %v354_v40  ;;  %v358_v40 = vadd.s32 4736, %v11045_v21 }
 0x110   : > { %6235 = vmatpush.bf16.msra.mxu0 %v10103_v6  ;;  %v6009_v26 = vpop.f32.mrf.mxu2  ;;  %v5985_v35 = vpop.f32.mrf.mxu0  ;;  %v10135_v6 = vld [vmem:[%s11011_s15 + $0x730] sm:$0xff]  ;;  %v637_v63 = vld.sshfl [vmem:[#allocation1 + $0x38] sm:$0xff pattern:$0x73625140]  ;;  %vm9748_vm14 = vmpackc.low %vm508_vm10, %vm508_vm10 }
 0x111   : > { %6248 = vmatpush.bf16.msra.mxu1 %v10111_v7  ;;  %v6010_v29 = vadd.f32 %v6009_v26, %v5997_v23  ;;  %v6022_v33 = vpop.f32.mrf.mxu3  ;;  %v5998_v38 = vpop.f32.mrf.mxu1  ;;  %v10143_v7 = vld [vmem:[%s11011_s15 + $0x770] sm:$0xff]  ;;  %v10132_v23 = vld [vmem:[%s11011_s15 + $0x718] sm:$0xff]  ;;  %vm512_vm2 = vcmp.lt.s32.totalorder %v434_v50, 19900  ;;  %v438_v50 = vadd.s32 %v11054_v28, %v358_v40  ;;  %v362_v40 = vadd.s32 5248, %v11045_v21 }
 0x112   : > { %6261 = vmatpush.bf16.msra.mxu2 %v10119_v8  ;;  %v10151_v8 = vld [vmem:[%s11011_s15 + $0x7b0] sm:$0xff]  ;;  %v351_v38 = vadd.s32 3840, %v11045_v21 }
 0x113   : > { %6274 = vmatpush.bf16.msra.mxu3 %v10127_v9  ;;  %v11360_v36 = vadd.f32 %v6022_v33, %v6010_v29  ;;  %v10159_v9 = vld [vmem:[%s11011_s15 + $0x7f0] sm:$0xff]  ;;  %v10156_v29 = vld [vmem:[%s11011_s15 + $0x7d8] sm:$0xff]  ;;  %vm516_vm10 = vcmp.lt.s32.totalorder %v438_v50, 19900  ;;  %v442_v50 = vadd.s32 %v11054_v28, %v362_v40  ;;  %v366_v40 = vadd.s32 5760, %v11045_v21 }
 0x114   : > { %6236 = vmatpush.bf16.msra.mxu0 %v10102_v10  ;;  %v10134_v10 = vld [vmem:[%s11011_s15 + $0x728] sm:$0xff]  ;;  %v10147_v35 = vld [vmem:[%s11011_s15 + $0x790] sm:$0xff]  ;;  %v431_v47 = vadd.s32 %v11054_v28, %v351_v38  ;;  %v355_v38 = vadd.s32 4352, %v11045_v21 }
 0x115   : > { %6249 = vmatpush.bf16.msra.mxu1 %v10110_v11  ;;  %v10142_v11 = vld [vmem:[%s11011_s15 + $0x768] sm:$0xff] }
 0x116   : > { %6262 = vmatpush.bf16.msra.mxu2 %v10118_v12  ;;  %v10150_v12 = vld [vmem:[%s11011_s15 + $0x7a8] sm:$0xff]  ;;  %vm509_vm9 = vcmp.lt.s32.totalorder %v431_v47, 19900  ;;  %v435_v47 = vadd.s32 %v11054_v28, %v355_v38  ;;  %v359_v38 = vadd.s32 4864, %v11045_v21 }
 0x117   : > { %6275 = vmatpush.bf16.msra.mxu3 %v10126_v13  ;;  %v10158_v13 = vld [vmem:[%s11011_s15 + $0x7e8] sm:$0xff]  ;;  %vm9751_vm13 = vmpackc.low %vm509_vm9, %vm509_vm9 }
 0x118   : > { %6237 = vmatpush.bf16.msra.mxu0 %v10101_v14  ;;  %v6011_v48 = vpop.f32.mrf.mxu2  ;;  %vm513_vm1 = vcmp.lt.s32.totalorder %v435_v47, 19900 }
 0x119   : > { %6250 = vmatpush.bf16.msra.mxu1 %v10109_v15  ;;  %v6024_v57 = vpop.f32.mrf.mxu3 }
 0x11a   : > { %6263 = vmatpush.bf16.msra.mxu2 %v10117_v16  ;;  %v10133_v16 = vld [vmem:[%s11011_s15 + $0x720] sm:$0xff]  ;;  %v636_v57 = vld.sshfl [vmem:[#allocation1 + $0x30] sm:$0xff pattern:$0x73625140] }
 0x11b   : > { %6276 = vmatpush.bf16.msra.mxu3 %v10125_v20  ;;  %639 = vst [vmem:[#allocation1 + $0x20] ss:$4 sm:$0xff] %v566_v43  ;;  %v567_v43 = vld [vmem:[%s11004_s17 + $0x50] sm:$0xff] }
 0x11c   : > { %6238 = vmatpush.bf16.msra.mxu0 %v10100_v22  ;;  %v10157_v22 = vld [vmem:[%s11011_s15 + $0x7e0] sm:$0xff] }
 0x11d   : > { %6251 = vmatpush.bf16.msra.mxu1 %v10108_v24  ;;  %v10140_v24 = vld [vmem:[%s11011_s15 + $0x758] sm:$0xff] }
 0x11e   : > { %6264 = vmatpush.bf16.msra.mxu2 %v10116_v25  ;;  %v10148_v25 = vld [vmem:[%s11011_s15 + $0x798] sm:$0xff] }
 0x11f   : > { %6277 = vmatpush.bf16.msra.mxu3 %v10124_v27 }
 0x120   : > { %6239 = vmatpush.bf16.msra.mxu0 %v10099_v30 }
 0x121   : > { %6252 = vmatpush.bf16.msra.mxu1 %v10107_v31 }
 0x122   : > { %6265 = vmatpush.bf16.msra.mxu2 %v10115_v32  ;;  %v10131_v32 = vld [vmem:[%s11011_s15 + $0x710] sm:$0xff] }
 0x123   : > { %6278 = vmatpush.bf16.msra.mxu3 %v10123_v39  ;;  %v10155_v39 = vld [vmem:[%s11011_s15 + $0x7d0] sm:$0xff] }
 0x124   : > { %6240 = vmatpush.bf16.msra.mxu0 %v10098_v41  ;;  %v10130_v41 = vld [vmem:[%s11011_s15 + $0x708] sm:$0xff] }
 0x125   : > { %6253 = vmatpush.bf16.msra.mxu1 %v10106_v44  ;;  %v10138_v44 = vld [vmem:[%s11011_s15 + $0x748] sm:$0xff] }
 0x126   : > { %6266 = vmatpush.bf16.msra.mxu2 %v10114_v45  ;;  %v10146_v45 = vld [vmem:[%s11011_s15 + $0x788] sm:$0xff] }
 0x127   : > { %6279 = vmatpush.bf16.msra.mxu3 %v10122_v49  ;;  %v10154_v49 = vld [vmem:[%s11011_s15 + $0x7c8] sm:$0xff] }
 0x128   : > { %6241 = vmatpush.bf16.msra.mxu0 %v10097_v51  ;;  %v6035_v14 = vpop.f32.mrf.mxu0  ;;  %v10129_v51 = vld [vmem:[%s11011_s15 + $0x700] sm:$0xff] }
 0x129   : > { %6254 = vmatpush.bf16.msra.mxu1 %v10105_v54  ;;  %v6036_v15 = vadd.f32 %v6035_v14, %v11360_v36  ;;  %v6048_v19 = vpop.f32.mrf.mxu1  ;;  %v349_v36 = vadd.s32 3584, %v11045_v21 }
 0x12a   : > { %6267 = vmatpush.bf16.msra.mxu2 %v10113_v55  ;;  %v10137_v55 = vld [vmem:[%s11011_s15 + $0x740] sm:$0xff] }
 0x12b   : > { %6280 = vmatpush.bf16.msra.mxu3 %v10121_v62  ;;  %9735 = vmatmul.msk.bf16.vlgmr.msra.gmra.mxu0 %vm11382_vm3, %v9734_v1  ;;  %v6049_v20 = vadd.f32 %v6048_v19, %v6036_v15  ;;  %v429_v46 = vadd.s32 %v11054_v28, %v349_v36  ;;  %v10153_v62 = vld [vmem:[%s11011_s15 + $0x7c0] sm:$0xff]  ;;  %v9746_v1 = vpack.c.bf16 %v634_v52, %v634_v52  ;;  %v10179_v36 = vld [vmem:[%s11011_s15 + $0x890] sm:$0xff] }
 0x12c   : > { %6286 = vmatpush.bf16.msrb.mxu0 %v10136_v58  ;;  %9738 = vmatmul.msk.bf16.vlgmr.msra.gmra.mxu1 %vm9736_vm6, %v9737_v4  ;;  %v10168_v58 = vld [vmem:[%s11011_s15 + $0x838] sm:$0xff]  ;;  %v9749_v4 = vpack.c.bf16 %v635_v60, %v635_v60  ;;  %v10181_v19 = vld [vmem:[%s11011_s15 + $0x8a0] sm:$0xff]  ;;  %v641_v60 = vld.sshfl [vmem:[#allocation1 + $0x8] sm:$0xff pattern:$0x73625140] }
 0x12d   : > { %6299 = vmatpush.bf16.msrb.mxu1 %v10144_v59  ;;  %9741 = vmatmul.msk.bf16.vlgmr.msra.gmra.mxu2 %vm9739_vm5, %v9740_v2  ;;  %vm507_vm8 = vcmp.lt.s32.totalorder %v429_v46, 19900  ;;  %v10176_v59 = vld [vmem:[%s11011_s15 + $0x878] sm:$0xff]  ;;  %v9752_v2 = vpack.c.bf16 %v636_v57, %v636_v57  ;;  %v10161_v52 = vld [vmem:[%s11011_s15 + $0x800] sm:$0xff]  ;;  %v642_v57 = vld.sshfl [vmem:[#allocation1 + $0x10] sm:$0xff pattern:$0x73625140] }
 0x12e   : > { %6312 = vmatpush.bf16.msrb.mxu2 %v10152_v61  ;;  %9744 = vmatmul.msk.bf16.vlgmr.msra.gmra.mxu3 %vm9742_vm7, %v9743_v5  ;;  %v10184_v61 = vld [vmem:[%s11011_s15 + $0x8b8] sm:$0xff]  ;;  %vm11432_vm11 = vmpackc.low %vm507_vm8, %vm507_vm8  ;;  %v9755_v5 = vpack.c.bf16 %v637_v63, %v637_v63 }
 0x12f   : > { %6325 = vmatpush.bf16.msrb.mxu3 %v10160_v3  ;;  %v10192_v3 = vld [vmem:[%s11011_s15 + $0x8f8] sm:$0xff]  ;;  %vm9763_vm5 = vmpackc.low %vm513_vm1, %vm513_vm1 }
 0x130   : > { %6287 = vmatpush.bf16.msrb.mxu0 %v10135_v6  ;;  %v6061_v26 = vpop.f32.mrf.mxu2  ;;  %v6037_v30 = vpop.f32.mrf.mxu0  ;;  %v10167_v6 = vld [vmem:[%s11011_s15 + $0x830] sm:$0xff]  ;;  %v643_v63 = vld.sshfl [vmem:[#allocation1 + $0x18] sm:$0xff pattern:$0x73625140]  ;;  %vm9760_vm6 = vmpackc.low %vm512_vm2, %vm512_vm2  ;;  %vm520_vm2 = vcmp.lt.s32.totalorder %v442_v50, 19900  ;;  %v446_v50 = vadd.s32 %v11054_v28, %v366_v40  ;;  %v370_v40 = vadd.s32 6272, %v11045_v21 }
 0x131   : > { %6300 = vmatpush.bf16.msrb.mxu1 %v10143_v7  ;;  %v6062_v27 = vadd.f32 %v6061_v26, %v6049_v20  ;;  %v6074_v31 = vpop.f32.mrf.mxu3  ;;  %v6050_v37 = vpop.f32.mrf.mxu1  ;;  %v10175_v7 = vld [vmem:[%s11011_s15 + $0x870] sm:$0xff]  ;;  %648 = vst [vmem:[#allocation1] ss:$4 sm:$0xff] %v567_v43  ;;  %v568_v43 = vld [vmem:[%s11004_s17 + $0x58] sm:$0xff] }
 0x132   : > { %6313 = vmatpush.bf16.msrb.mxu2 %v10151_v8  ;;  %v10183_v8 = vld [vmem:[%s11011_s15 + $0x8b0] sm:$0xff]  ;;  %v353_v37 = vadd.s32 4096, %v11045_v21 }
 0x133   : > { %6326 = vmatpush.bf16.msrb.mxu3 %v10159_v9  ;;  %v11407_v33 = vadd.f32 %v6074_v31, %v6062_v27  ;;  %v10191_v9 = vld [vmem:[%s11011_s15 + $0x8f0] sm:$0xff] }
 0x134   : > { %6288 = vmatpush.bf16.msrb.mxu0 %v10134_v10  ;;  %v10166_v10 = vld [vmem:[%s11011_s15 + $0x828] sm:$0xff]  ;;  %v433_v46 = vadd.s32 %v11054_v28, %v353_v37  ;;  %v357_v37 = vadd.s32 4608, %v11045_v21 }
 0x135   : > { %6301 = vmatpush.bf16.msrb.mxu1 %v10142_v11  ;;  %v10174_v11 = vld [vmem:[%s11011_s15 + $0x868] sm:$0xff] }
 0x136   : > { %6314 = vmatpush.bf16.msrb.mxu2 %v10150_v12  ;;  %v10182_v12 = vld [vmem:[%s11011_s15 + $0x8a8] sm:$0xff]  ;;  %vm511_vm0 = vcmp.lt.s32.totalorder %v433_v46, 19900  ;;  %v437_v46 = vadd.s32 %v11054_v28, %v357_v37  ;;  %v361_v37 = vadd.s32 5120, %v11045_v21 }
 0x137   : > { %6327 = vmatpush.bf16.msrb.mxu3 %v10158_v13  ;;  %v10190_v13 = vld [vmem:[%s11011_s15 + $0x8e8] sm:$0xff]  ;;  %vm11482_vm3 = vmpackc.low %vm511_vm0, %vm511_vm0 }
 0x138   : > { %6289 = vmatpush.bf16.msrb.mxu0 %v10133_v16  ;;  %v6063_v48 = vpop.f32.mrf.mxu2  ;;  %v10165_v16 = vld [vmem:[%s11011_s15 + $0x820] sm:$0xff]  ;;  %vm515_vm8 = vcmp.lt.s32.totalorder %v437_v46, 19900  ;;  %v441_v46 = vadd.s32 %v11054_v28, %v361_v37  ;;  %v365_v37 = vadd.s32 5632, %v11045_v21 }
 0x139   : > { %6302 = vmatpush.bf16.msrb.mxu1 %v10141_v17  ;;  %v6076_v54 = vpop.f32.mrf.mxu3 }
 0x13a   : > { %6315 = vmatpush.bf16.msrb.mxu2 %v10149_v18  ;;  %v10173_v18 = vld [vmem:[%s11011_s15 + $0x860] sm:$0xff]  ;;  %v436_v54 = vadd.s32 %v11054_v28, %v356_v42  ;;  %v360_v42 = vadd.s32 4992, %v11045_v21  ;;  %vm519_vm0 = vcmp.lt.s32.totalorder %v441_v46, 19900  ;;  %v445_v46 = vadd.s32 %v11054_v28, %v365_v37 }
 0x13b   : > { %6328 = vmatpush.bf16.msrb.mxu3 %v10157_v22  ;;  %v10189_v22 = vld [vmem:[%s11011_s15 + $0x8e0] sm:$0xff]  ;;  %v369_v37 = vadd.s32 6144, %v11045_v21 }
 0x13c   : > { %6290 = vmatpush.bf16.msrb.mxu0 %v10132_v23  ;;  %v10164_v23 = vld [vmem:[%s11011_s15 + $0x818] sm:$0xff]  ;;  %vm514_vm4 = vcmp.lt.s32.totalorder %v436_v54, 19900  ;;  %v440_v54 = vadd.s32 %v11054_v28, %v360_v42  ;;  %v364_v42 = vadd.s32 5504, %v11045_v21 }
 0x13d   : > { %6303 = vmatpush.bf16.msrb.mxu1 %v10140_v24  ;;  %v10172_v24 = vld [vmem:[%s11011_s15 + $0x858] sm:$0xff]  ;;  %vm9766_vm7 = vmpackc.low %vm514_vm4, %vm514_vm4 }
 0x13e   : > { %6316 = vmatpush.bf16.msrb.mxu2 %v10148_v25  ;;  %v10180_v25 = vld [vmem:[%s11011_s15 + $0x898] sm:$0xff]  ;;  %vm518_vm12 = vcmp.lt.s32.totalorder %v440_v54, 19900  ;;  %v444_v54 = vadd.s32 %v11054_v28, %v364_v42  ;;  %v368_v42 = vadd.s32 6016, %v11045_v21 }
 0x13f   : > { %6329 = vmatpush.bf16.msrb.mxu3 %v10156_v29  ;;  %v10188_v29 = vld [vmem:[%s11011_s15 + $0x8d8] sm:$0xff] }
 0x140   : > { %6291 = vmatpush.bf16.msrb.mxu0 %v10131_v32  ;;  %v10163_v32 = vld [vmem:[%s11011_s15 + $0x810] sm:$0xff]  ;;  %vm522_vm4 = vcmp.lt.s32.totalorder %v444_v54, 19900  ;;  %v448_v54 = vadd.s32 %v11054_v28, %v368_v42  ;;  %v372_v42 = vadd.s32 6528, %v11045_v21 }
 0x141   : > { %6304 = vmatpush.bf16.msrb.mxu1 %v10139_v34 }
 0x142   : > { %6317 = vmatpush.bf16.msrb.mxu2 %v10147_v35  ;;  %v10171_v35 = vld [vmem:[%s11011_s15 + $0x850] sm:$0xff] }
 0x143   : > { %6330 = vmatpush.bf16.msrb.mxu3 %v10155_v39  ;;  %v10187_v39 = vld [vmem:[%s11011_s15 + $0x8d0] sm:$0xff] }
 0x144   : > { %6292 = vmatpush.bf16.msrb.mxu0 %v10130_v41  ;;  %v10162_v41 = vld [vmem:[%s11011_s15 + $0x808] sm:$0xff] }
 0x145   : > { %6305 = vmatpush.bf16.msrb.mxu1 %v10138_v44  ;;  %v10170_v44 = vld [vmem:[%s11011_s15 + $0x848] sm:$0xff] }
 0x146   : > { %6318 = vmatpush.bf16.msrb.mxu2 %v10146_v45  ;;  %v10178_v45 = vld [vmem:[%s11011_s15 + $0x888] sm:$0xff] }
 0x147   : > { %6331 = vmatpush.bf16.msrb.mxu3 %v10154_v49  ;;  %v10186_v49 = vld [vmem:[%s11011_s15 + $0x8c8] sm:$0xff] }
 0x148   : > { %6293 = vmatpush.bf16.msrb.mxu0 %v10129_v51  ;;  %v6087_v14 = vpop.f32.mrf.mxu0 }
 0x149   : > { %6306 = vmatpush.bf16.msrb.mxu1 %v10137_v55  ;;  %v6088_v15 = vadd.f32 %v6087_v14, %v11407_v33  ;;  %v6100_v17 = vpop.f32.mrf.mxu1  ;;  %v10169_v55 = vld [vmem:[%s11011_s15 + $0x840] sm:$0xff] }
 0x14a   : > { %6319 = vmatpush.bf16.msrb.mxu2 %v10145_v56  ;;  %v10177_v56 = vld [vmem:[%s11011_s15 + $0x880] sm:$0xff] }
 0x14b   : > { %6332 = vmatpush.bf16.msrb.mxu3 %v10153_v62  ;;  %9747 = vmatmul.msk.bf16.vlgmr.msrb.gmra.mxu0 %vm11432_vm11, %v9746_v1  ;;  %v6101_v20 = vadd.f32 %v6100_v17, %v6088_v15  ;;  %v10185_v62 = vld [vmem:[%s11011_s15 + $0x8c0] sm:$0xff]  ;;  %v9758_v1 = vpack.c.bf16 %v640_v53, %v640_v53  ;;  %vm11532_vm11 = vmpackc.low %vm515_vm8, %vm515_vm8  ;;  %vm523_vm8 = vcmp.lt.s32.totalorder %v445_v46, 19900  ;;  %v449_v46 = vadd.s32 %v11054_v28, %v369_v37 }
 0x14c   : > { %6338 = vmatpush.bf16.msra.mxu0 %v10168_v58  ;;  %9750 = vmatmul.msk.bf16.vlgmr.msrb.gmra.mxu1 %vm9748_vm14, %v9749_v4  ;;  %v10200_v58 = vld [vmem:[%s11011_s15 + $0x938] sm:$0xff]  ;;  %v9761_v4 = vpack.c.bf16 %v641_v60, %v641_v60  ;;  %v644_v53 = vld.sshfl [vmem:[#allocation1 + $0x20] sm:$0xff pattern:$0x73625140]  ;;  %vm9772_vm14 = vmpackc.low %vm516_vm10, %vm516_vm10  ;;  %vm524_vm10 = vcmp.lt.s32.totalorder %v446_v50, 19900  ;;  %v450_v50 = vadd.s32 %v11054_v28, %v370_v40  ;;  %v373_v37 = vadd.s32 6656, %v11045_v21 }
 0x14d   : > { %6351 = vmatpush.bf16.msra.mxu1 %v10176_v59  ;;  %9753 = vmatmul.msk.bf16.vlgmr.msrb.gmra.mxu2 %vm9751_vm13, %v9752_v2  ;;  %v10208_v59 = vld [vmem:[%s11011_s15 + $0x978] sm:$0xff]  ;;  %v9764_v2 = vpack.c.bf16 %v642_v57, %v642_v57  ;;  %v646_v57 = vld.sshfl [vmem:[#allocation1 + $0x30] sm:$0xff pattern:$0x73625140]  ;;  %v374_v40 = vadd.s32 6784, %v11045_v21 }
 0x14e   : > { %6364 = vmatpush.bf16.msra.mxu2 %v10184_v61  ;;  %9756 = vmatmul.msk.bf16.vlgmr.msrb.gmra.mxu3 %vm9754_vm15, %v9755_v5  ;;  %v10216_v61 = vld [vmem:[%s11011_s15 + $0x9b8] sm:$0xff]  ;;  %v9767_v5 = vpack.c.bf16 %v643_v63, %v643_v63  ;;  %v645_v60 = vld.sshfl [vmem:[#allocation1 + $0x28] sm:$0xff pattern:$0x73625140]  ;;  %vm9778_vm15 = vmpackc.low %vm518_vm12, %vm518_vm12  ;;  %vm526_vm12 = vcmp.lt.s32.totalorder %v448_v54, 19900  ;;  %v452_v54 = vadd.s32 %v11054_v28, %v372_v42  ;;  %v376_v42 = vadd.s32 7040, %v11045_v21 }
 0x14f   : > { %6377 = vmatpush.bf16.msra.mxu3 %v10192_v3  ;;  %v10224_v3 = vld [vmem:[%s11011_s15 + $0x9f8] sm:$0xff] }
 0x150   : > { %6339 = vmatpush.bf16.msra.mxu0 %v10167_v6  ;;  %v6113_v26 = vpop.f32.mrf.mxu2  ;;  %v6089_v31 = vpop.f32.mrf.mxu0  ;;  %v10199_v6 = vld [vmem:[%s11011_s15 + $0x930] sm:$0xff]  ;;  %v647_v63 = vld.sshfl [vmem:[#allocation1 + $0x38] sm:$0xff pattern:$0x73625140] }
 0x151   : > { %6352 = vmatpush.bf16.msra.mxu1 %v10175_v7  ;;  %v6114_v27 = vadd.f32 %v6113_v26, %v6101_v20  ;;  %v6126_v30 = vpop.f32.mrf.mxu3  ;;  %v6102_v33 = vpop.f32.mrf.mxu1  ;;  %v10207_v7 = vld [vmem:[%s11011_s15 + $0x970] sm:$0xff]  ;;  %649 = vst [vmem:[#allocation1 + $0x20] ss:$4 sm:$0xff] %v568_v43  ;;  %v569_v43 = vld [vmem:[%s11004_s17 + $0x60] sm:$0xff] }
 0x152   : > { %6365 = vmatpush.bf16.msra.mxu2 %v10183_v8  ;;  %v10215_v8 = vld [vmem:[%s11011_s15 + $0x9b0] sm:$0xff] }
 0x153   : > { %6378 = vmatpush.bf16.msra.mxu3 %v10191_v9  ;;  %v11457_v34 = vadd.f32 %v6126_v30, %v6114_v27  ;;  %v10223_v9 = vld [vmem:[%s11011_s15 + $0x9f0] sm:$0xff] }
 0x154   : > { %6340 = vmatpush.bf16.msra.mxu0 %v10166_v10  ;;  %v10198_v10 = vld [vmem:[%s11011_s15 + $0x928] sm:$0xff]  ;;  %v10195_v33 = vld [vmem:[%s11011_s15 + $0x910] sm:$0xff] }
 0x155   : > { %6353 = vmatpush.bf16.msra.mxu1 %v10174_v11  ;;  %v10206_v11 = vld [vmem:[%s11011_s15 + $0x968] sm:$0xff] }
 0x156   : > { %6366 = vmatpush.bf16.msra.mxu2 %v10182_v12  ;;  %v10214_v12 = vld [vmem:[%s11011_s15 + $0x9a8] sm:$0xff] }
 0x157   : > { %6379 = vmatpush.bf16.msra.mxu3 %v10190_v13  ;;  %v10222_v13 = vld [vmem:[%s11011_s15 + $0x9e8] sm:$0xff] }
 0x158   : > { %6341 = vmatpush.bf16.msra.mxu0 %v10165_v16  ;;  %v6115_v48 = vpop.f32.mrf.mxu2  ;;  %v10197_v16 = vld [vmem:[%s11011_s15 + $0x920] sm:$0xff] }
 0x159   : > { %6354 = vmatpush.bf16.msra.mxu1 %v10173_v18  ;;  %v6128_v51 = vpop.f32.mrf.mxu3  ;;  %v10205_v18 = vld [vmem:[%s11011_s15 + $0x960] sm:$0xff]  ;;  %v439_v48 = vadd.s32 %v11054_v28, %v359_v38  ;;  %v363_v38 = vadd.s32 5376, %v11045_v21 }
 0x15a   : > { %6367 = vmatpush.bf16.msra.mxu2 %v10181_v19  ;;  %v10213_v19 = vld [vmem:[%s11011_s15 + $0x9a0] sm:$0xff] }
 0x15b   : > { %6380 = vmatpush.bf16.msra.mxu3 %v10189_v22  ;;  %v10221_v22 = vld [vmem:[%s11011_s15 + $0x9e0] sm:$0xff]  ;;  %vm517_vm9 = vcmp.lt.s32.totalorder %v439_v48, 19900  ;;  %v443_v48 = vadd.s32 %v11054_v28, %v363_v38  ;;  %v367_v38 = vadd.s32 5888, %v11045_v21 }
 0x15c   : > { %6342 = vmatpush.bf16.msra.mxu0 %v10164_v23  ;;  %v10196_v23 = vld [vmem:[%s11011_s15 + $0x918] sm:$0xff]  ;;  %vm9775_vm13 = vmpackc.low %vm517_vm9, %vm517_vm9 }
 0x15d   : > { %6355 = vmatpush.bf16.msra.mxu1 %v10172_v24  ;;  %v10204_v24 = vld [vmem:[%s11011_s15 + $0x958] sm:$0xff]  ;;  %vm521_vm1 = vcmp.lt.s32.totalorder %v443_v48, 19900  ;;  %v447_v48 = vadd.s32 %v11054_v28, %v367_v38  ;;  %v371_v38 = vadd.s32 6400, %v11045_v21 }
 0x15e   : > { %6368 = vmatpush.bf16.msra.mxu2 %v10180_v25  ;;  %v10212_v25 = vld [vmem:[%s11011_s15 + $0x998] sm:$0xff] }
 0x15f   : > { %6381 = vmatpush.bf16.msra.mxu3 %v10188_v29  ;;  %v10220_v29 = vld [vmem:[%s11011_s15 + $0x9d8] sm:$0xff]  ;;  %vm525_vm9 = vcmp.lt.s32.totalorder %v447_v48, 19900  ;;  %v451_v48 = vadd.s32 %v11054_v28, %v371_v38  ;;  %v375_v38 = vadd.s32 6912, %v11045_v21 }
 0x160   : > { %6343 = vmatpush.bf16.msra.mxu0 %v10163_v32 }
 0x161   : > { %6356 = vmatpush.bf16.msra.mxu1 %v10171_v35  ;;  %v10203_v35 = vld [vmem:[%s11011_s15 + $0x950] sm:$0xff] }
 0x162   : > { %6369 = vmatpush.bf16.msra.mxu2 %v10179_v36  ;;  %v10211_v36 = vld [vmem:[%s11011_s15 + $0x990] sm:$0xff] }
 0x163   : > { %6382 = vmatpush.bf16.msra.mxu3 %v10187_v39  ;;  %v10219_v39 = vld [vmem:[%s11011_s15 + $0x9d0] sm:$0xff] }
 0x164   : > { %6344 = vmatpush.bf16.msra.mxu0 %v10162_v41  ;;  %v10194_v41 = vld [vmem:[%s11011_s15 + $0x908] sm:$0xff] }
 0x165   : > { %6357 = vmatpush.bf16.msra.mxu1 %v10170_v44  ;;  %v10202_v44 = vld [vmem:[%s11011_s15 + $0x948] sm:$0xff] }
 0x166   : > { %6370 = vmatpush.bf16.msra.mxu2 %v10178_v45  ;;  %v10210_v45 = vld [vmem:[%s11011_s15 + $0x988] sm:$0xff] }
 0x167   : > { %6383 = vmatpush.bf16.msra.mxu3 %v10186_v49  ;;  %v10218_v49 = vld [vmem:[%s11011_s15 + $0x9c8] sm:$0xff] }
 0x168   : > { %6345 = vmatpush.bf16.msra.mxu0 %v10161_v52  ;;  %v6139_v14 = vpop.f32.mrf.mxu0  ;;  %v10193_v52 = vld [vmem:[%s11011_s15 + $0x900] sm:$0xff] }
 0x169   : > { %6358 = vmatpush.bf16.msra.mxu1 %v10169_v55  ;;  %v6140_v15 = vadd.f32 %v6139_v14, %v11457_v34  ;;  %v6152_v17 = vpop.f32.mrf.mxu1  ;;  %v10201_v55 = vld [vmem:[%s11011_s15 + $0x940] sm:$0xff] }
 0x16a   : > { %6371 = vmatpush.bf16.msra.mxu2 %v10177_v56  ;;  %v10209_v56 = vld [vmem:[%s11011_s15 + $0x980] sm:$0xff] }
 0x16b   : > { %6384 = vmatpush.bf16.msra.mxu3 %v10185_v62  ;;  %9759 = vmatmul.msk.bf16.vlgmr.msra.gmra.mxu0 %vm11482_vm3, %v9758_v1  ;;  %v6153_v20 = vadd.f32 %v6152_v17, %v6140_v15  ;;  %v10217_v62 = vld [vmem:[%s11011_s15 + $0x9c0] sm:$0xff]  ;;  %v9770_v1 = vpack.c.bf16 %v644_v53, %v644_v53  ;;  %vm11582_vm3 = vmpackc.low %vm519_vm0, %vm519_vm0  ;;  %vm527_vm0 = vcmp.lt.s32.totalorder %v449_v46, 19900  ;;  %v453_v46 = vadd.s32 %v11054_v28, %v373_v37 }
 0x16c   : > { %6390 = vmatpush.bf16.msrb.mxu0 %v10200_v58  ;;  %9762 = vmatmul.msk.bf16.vlgmr.msra.gmra.mxu1 %vm9760_vm6, %v9761_v4  ;;  %v10232_v58 = vld [vmem:[%s11011_s15 + $0xa38] sm:$0xff]  ;;  %v9773_v4 = vpack.c.bf16 %v645_v60, %v645_v60  ;;  %v650_v53 = vld.sshfl [vmem:[#allocation1] sm:$0xff pattern:$0x73625140]  ;;  %vm9784_vm6 = vmpackc.low %vm520_vm2, %vm520_vm2  ;;  %vm528_vm2 = vcmp.lt.s32.totalorder %v450_v50, 19900  ;;  %v454_v50 = vadd.s32 %v11054_v28, %v374_v40  ;;  %v377_v37 = vadd.s32 7168, %v11045_v21 }
 0x16d   : > { %6403 = vmatpush.bf16.msrb.mxu1 %v10208_v59  ;;  %9765 = vmatmul.msk.bf16.vlgmr.msra.gmra.mxu2 %vm9763_vm5, %v9764_v2  ;;  %v10240_v59 = vld [vmem:[%s11011_s15 + $0xa78] sm:$0xff]  ;;  %v9776_v2 = vpack.c.bf16 %v646_v57, %v646_v57  ;;  %v652_v57 = vld.sshfl [vmem:[#allocation1 + $0x10] sm:$0xff pattern:$0x73625140]  ;;  %vm9787_vm5 = vmpackc.low %vm521_vm1, %vm521_vm1  ;;  %vm529_vm1 = vcmp.lt.s32.totalorder %v451_v48, 19900  ;;  %v455_v48 = vadd.s32 %v11054_v28, %v375_v38  ;;  %v379_v38 = vadd.s32 7424, %v11045_v21 }
 0x16e   : > { %6416 = vmatpush.bf16.msrb.mxu2 %v10216_v61  ;;  %9768 = vmatmul.msk.bf16.vlgmr.msra.gmra.mxu3 %vm9766_vm7, %v9767_v5  ;;  %v10248_v61 = vld [vmem:[%s11011_s15 + $0xab8] sm:$0xff]  ;;  %v9779_v5 = vpack.c.bf16 %v647_v63, %v647_v63  ;;  %v651_v60 = vld.sshfl [vmem:[#allocation1 + $0x8] sm:$0xff pattern:$0x73625140]  ;;  %vm9790_vm7 = vmpackc.low %vm522_vm4, %vm522_vm4  ;;  %vm530_vm4 = vcmp.lt.s32.totalorder %v452_v54, 19900  ;;  %v456_v54 = vadd.s32 %v11054_v28, %v376_v42  ;;  %v378_v40 = vadd.s32 7296, %v11045_v21 }
 0x16f   : > { %6429 = vmatpush.bf16.msrb.mxu3 %v10224_v3  ;;  %v10256_v3 = vld [vmem:[%s11011_s15 + $0xaf8] sm:$0xff]  ;;  %v380_v42 = vadd.s32 7552, %v11045_v21 }
 0x170   : > { %6391 = vmatpush.bf16.msrb.mxu0 %v10199_v6  ;;  %v6165_v26 = vpop.f32.mrf.mxu2  ;;  %v6141_v31 = vpop.f32.mrf.mxu0  ;;  %v10231_v6 = vld [vmem:[%s11011_s15 + $0xa30] sm:$0xff]  ;;  %v653_v63 = vld.sshfl [vmem:[#allocation1 + $0x18] sm:$0xff pattern:$0x73625140] }
 0x171   : > { %6404 = vmatpush.bf16.msrb.mxu1 %v10207_v7  ;;  %v6166_v27 = vadd.f32 %v6165_v26, %v6153_v20  ;;  %v6178_v30 = vpop.f32.mrf.mxu3  ;;  %v6154_v34 = vpop.f32.mrf.mxu1  ;;  %v10239_v7 = vld [vmem:[%s11011_s15 + $0xa70] sm:$0xff]  ;;  %658 = vst [vmem:[#allocation1] ss:$4 sm:$0xff] %v569_v43 }
 0x172   : > { %6417 = vmatpush.bf16.msrb.mxu2 %v10215_v8  ;;  %v10247_v8 = vld [vmem:[%s11011_s15 + $0xab0] sm:$0xff] }
 0x173   : > { %6430 = vmatpush.bf16.msrb.mxu3 %v10223_v9  ;;  %v11506_v32 = vadd.f32 %v6178_v30, %v6166_v27  ;;  %v10255_v9 = vld [vmem:[%s11011_s15 + $0xaf0] sm:$0xff] }
 0x174   : > { %6392 = vmatpush.bf16.msrb.mxu0 %v10198_v10  ;;  %v10230_v10 = vld [vmem:[%s11011_s15 + $0xa28] sm:$0xff] }
 0x175   : > { %6405 = vmatpush.bf16.msrb.mxu1 %v10206_v11  ;;  %v10238_v11 = vld [vmem:[%s11011_s15 + $0xa68] sm:$0xff] }
 0x176   : > { %6418 = vmatpush.bf16.msrb.mxu2 %v10214_v12  ;;  %v10246_v12 = vld [vmem:[%s11011_s15 + $0xaa8] sm:$0xff] }
 0x177   : > { %6431 = vmatpush.bf16.msrb.mxu3 %v10222_v13  ;;  %v10254_v13 = vld [vmem:[%s11011_s15 + $0xae8] sm:$0xff] }
 0x178   : > { %6393 = vmatpush.bf16.msrb.mxu0 %v10197_v16  ;;  %v6167_v47 = vpop.f32.mrf.mxu2  ;;  %v10229_v16 = vld [vmem:[%s11011_s15 + $0xa20] sm:$0xff]  ;;  %v570_v43 = vld [vmem:[%s11004_s17 + $0x68] sm:$0xff] }
 0x179   : > { %6406 = vmatpush.bf16.msrb.mxu1 %v10205_v18  ;;  %v6180_v51 = vpop.f32.mrf.mxu3  ;;  %v10237_v18 = vld [vmem:[%s11011_s15 + $0xa60] sm:$0xff] }
 0x17a   : > { %6419 = vmatpush.bf16.msrb.mxu2 %v10213_v19  ;;  %v10245_v19 = vld [vmem:[%s11011_s15 + $0xaa0] sm:$0xff] }
 0x17b   : > { %6432 = vmatpush.bf16.msrb.mxu3 %v10221_v22  ;;  %v10253_v22 = vld [vmem:[%s11011_s15 + $0xae0] sm:$0xff] }
 0x17c   : > { %6394 = vmatpush.bf16.msrb.mxu0 %v10196_v23  ;;  %v10228_v23 = vld [vmem:[%s11011_s15 + $0xa18] sm:$0xff] }
 0x17d   : > { %6407 = vmatpush.bf16.msrb.mxu1 %v10204_v24  ;;  %v10236_v24 = vld [vmem:[%s11011_s15 + $0xa58] sm:$0xff] }
 0x17e   : > { %6420 = vmatpush.bf16.msrb.mxu2 %v10212_v25  ;;  %v10244_v25 = vld [vmem:[%s11011_s15 + $0xa98] sm:$0xff] }
 0x17f   : > { %6433 = vmatpush.bf16.msrb.mxu3 %v10220_v29  ;;  %v10252_v29 = vld [vmem:[%s11011_s15 + $0xad8] sm:$0xff] }
 0x180   : > { %6395 = vmatpush.bf16.msrb.mxu0 %v10195_v33  ;;  %v10227_v33 = vld [vmem:[%s11011_s15 + $0xa10] sm:$0xff] }
 0x181   : > { %6408 = vmatpush.bf16.msrb.mxu1 %v10203_v35  ;;  %v10235_v35 = vld [vmem:[%s11011_s15 + $0xa50] sm:$0xff] }
 0x182   : > { %6421 = vmatpush.bf16.msrb.mxu2 %v10211_v36  ;;  %v10243_v36 = vld [vmem:[%s11011_s15 + $0xa90] sm:$0xff] }
 0x183   : > { %6434 = vmatpush.bf16.msrb.mxu3 %v10219_v39  ;;  %v10251_v39 = vld [vmem:[%s11011_s15 + $0xad0] sm:$0xff] }
 0x184   : > { %6396 = vmatpush.bf16.msrb.mxu0 %v10194_v41  ;;  %v10226_v41 = vld [vmem:[%s11011_s15 + $0xa08] sm:$0xff] }
 0x185   : > { %6409 = vmatpush.bf16.msrb.mxu1 %v10202_v44  ;;  %v10234_v44 = vld [vmem:[%s11011_s15 + $0xa48] sm:$0xff] }
 0x186   : > { %6422 = vmatpush.bf16.msrb.mxu2 %v10210_v45  ;;  %v10242_v45 = vld [vmem:[%s11011_s15 + $0xa88] sm:$0xff] }
 0x187   : > { %6435 = vmatpush.bf16.msrb.mxu3 %v10218_v49  ;;  %v10250_v49 = vld [vmem:[%s11011_s15 + $0xac8] sm:$0xff] }
 0x188   : > { %6397 = vmatpush.bf16.msrb.mxu0 %v10193_v52  ;;  %v6191_v14 = vpop.f32.mrf.mxu0  ;;  %v10225_v52 = vld [vmem:[%s11011_s15 + $0xa00] sm:$0xff] }
 0x189   : > { %6410 = vmatpush.bf16.msrb.mxu1 %v10201_v55  ;;  %v6192_v15 = vadd.f32 %v6191_v14, %v11506_v32  ;;  %v6204_v17 = vpop.f32.mrf.mxu1  ;;  %v10233_v55 = vld [vmem:[%s11011_s15 + $0xa40] sm:$0xff] }
 0x18a   : > { %6423 = vmatpush.bf16.msrb.mxu2 %v10209_v56  ;;  %v10241_v56 = vld [vmem:[%s11011_s15 + $0xa80] sm:$0xff] }
 0x18b   : > { %6436 = vmatpush.bf16.msrb.mxu3 %v10217_v62  ;;  %9771 = vmatmul.msk.bf16.vlgmr.msrb.gmra.mxu0 %vm11532_vm11, %v9770_v1  ;;  %v6205_v20 = vadd.f32 %v6204_v17, %v6192_v15  ;;  %v10249_v62 = vld [vmem:[%s11011_s15 + $0xac0] sm:$0xff]  ;;  %v9782_v1 = vpack.c.bf16 %v650_v53, %v650_v53  ;;  %vm11632_vm11 = vmpackc.low %vm523_vm8, %vm523_vm8  ;;  %vm531_vm8 = vcmp.lt.s32.totalorder %v453_v46, 19900  ;;  %v457_v46 = vadd.s32 %v11054_v28, %v377_v37 }
 0x18c   : > { %6442 = vmatpush.bf16.msra.mxu0 %v10232_v58  ;;  %9774 = vmatmul.msk.bf16.vlgmr.msrb.gmra.mxu1 %vm9772_vm14, %v9773_v4  ;;  %v10264_v58 = vld [vmem:[%s11011_s15 + $0xb38] sm:$0xff]  ;;  %v9785_v4 = vpack.c.bf16 %v651_v60, %v651_v60  ;;  %v654_v53 = vld.sshfl [vmem:[#allocation1 + $0x20] sm:$0xff pattern:$0x73625140]  ;;  %vm9796_vm14 = vmpackc.low %vm524_vm10, %vm524_vm10  ;;  %vm532_vm10 = vcmp.lt.s32.totalorder %v454_v50, 19900  ;;  %v458_v50 = vadd.s32 %v11054_v28, %v378_v40  ;;  %v381_v37 = vadd.s32 7680, %v11045_v21 }
 0x18d   : > { %6455 = vmatpush.bf16.msra.mxu1 %v10240_v59  ;;  %9777 = vmatmul.msk.bf16.vlgmr.msrb.gmra.mxu2 %vm9775_vm13, %v9776_v2  ;;  %v10272_v59 = vld [vmem:[%s11011_s15 + $0xb78] sm:$0xff]  ;;  %v9788_v2 = vpack.c.bf16 %v652_v57, %v652_v57  ;;  %v656_v57 = vld.sshfl [vmem:[#allocation1 + $0x30] sm:$0xff pattern:$0x73625140]  ;;  %vm9799_vm13 = vmpackc.low %vm525_vm9, %vm525_vm9  ;;  %vm533_vm9 = vcmp.lt.s32.totalorder %v455_v48, 19900  ;;  %v459_v48 = vadd.s32 %v11054_v28, %v379_v38  ;;  %v383_v38 = vadd.s32 7936, %v11045_v21 }
 0x18e   : > { %6468 = vmatpush.bf16.msra.mxu2 %v10248_v61  ;;  %9780 = vmatmul.msk.bf16.vlgmr.msrb.gmra.mxu3 %vm9778_vm15, %v9779_v5  ;;  %v10280_v61 = vld [vmem:[%s11011_s15 + $0xbb8] sm:$0xff]  ;;  %v9791_v5 = vpack.c.bf16 %v653_v63, %v653_v63  ;;  %v655_v60 = vld.sshfl [vmem:[#allocation1 + $0x28] sm:$0xff pattern:$0x73625140]  ;;  %vm9802_vm15 = vmpackc.low %vm526_vm12, %vm526_vm12  ;;  %vm534_vm12 = vcmp.lt.s32.totalorder %v456_v54, 19900  ;;  %v460_v54 = vadd.s32 %v11054_v28, %v380_v42  ;;  %v382_v40 = vadd.s32 7808, %v11045_v21 }
 0x18f   : > { %6481 = vmatpush.bf16.msra.mxu3 %v10256_v3  ;;  %v10288_v3 = vld [vmem:[%s11011_s15 + $0xbf8] sm:$0xff]  ;;  %v384_v42 = vadd.s32 8064, %v11045_v21 }
 0x190   : > { %6443 = vmatpush.bf16.msra.mxu0 %v10231_v6  ;;  %v6217_v26 = vpop.f32.mrf.mxu2  ;;  %v6193_v31 = vpop.f32.mrf.mxu0  ;;  %v10263_v6 = vld [vmem:[%s11011_s15 + $0xb30] sm:$0xff]  ;;  %v657_v63 = vld.sshfl [vmem:[#allocation1 + $0x38] sm:$0xff pattern:$0x73625140] }
 0x191   : > { %6456 = vmatpush.bf16.msra.mxu1 %v10239_v7  ;;  %v6218_v27 = vadd.f32 %v6217_v26, %v6205_v20  ;;  %v6230_v30 = vpop.f32.mrf.mxu3  ;;  %v6206_v34 = vpop.f32.mrf.mxu1  ;;  %v10271_v7 = vld [vmem:[%s11011_s15 + $0xb70] sm:$0xff]  ;;  %659 = vst [vmem:[#allocation1 + $0x20] ss:$4 sm:$0xff] %v570_v43 }
 0x192   : > { %6469 = vmatpush.bf16.msra.mxu2 %v10247_v8  ;;  %v10279_v8 = vld [vmem:[%s11011_s15 + $0xbb0] sm:$0xff] }
 0x193   : > { %6482 = vmatpush.bf16.msra.mxu3 %v10255_v9  ;;  %v11556_v32 = vadd.f32 %v6230_v30, %v6218_v27  ;;  %v10287_v9 = vld [vmem:[%s11011_s15 + $0xbf0] sm:$0xff] }
 0x194   : > { %6444 = vmatpush.bf16.msra.mxu0 %v10230_v10  ;;  %v10262_v10 = vld [vmem:[%s11011_s15 + $0xb28] sm:$0xff]  ;;  %v571_v43 = vld [vmem:[%s11004_s17 + $0x70] sm:$0xff] }
 0x195   : > { %6457 = vmatpush.bf16.msra.mxu1 %v10238_v11  ;;  %v10270_v11 = vld [vmem:[%s11011_s15 + $0xb68] sm:$0xff] }
 0x196   : > { %6470 = vmatpush.bf16.msra.mxu2 %v10246_v12  ;;  %v10278_v12 = vld [vmem:[%s11011_s15 + $0xba8] sm:$0xff] }
 0x197   : > { %6483 = vmatpush.bf16.msra.mxu3 %v10254_v13  ;;  %v10286_v13 = vld [vmem:[%s11011_s15 + $0xbe8] sm:$0xff] }
 0x198   : > { %6445 = vmatpush.bf16.msra.mxu0 %v10229_v16  ;;  %v6219_v47 = vpop.f32.mrf.mxu2  ;;  %v10261_v16 = vld [vmem:[%s11011_s15 + $0xb20] sm:$0xff] }
 0x199   : > { %6458 = vmatpush.bf16.msra.mxu1 %v10237_v18  ;;  %v6232_v51 = vpop.f32.mrf.mxu3  ;;  %v10269_v18 = vld [vmem:[%s11011_s15 + $0xb60] sm:$0xff] }
 0x19a   : > { %6471 = vmatpush.bf16.msra.mxu2 %v10245_v19  ;;  %v10277_v19 = vld [vmem:[%s11011_s15 + $0xba0] sm:$0xff] }
 0x19b   : > { %6484 = vmatpush.bf16.msra.mxu3 %v10253_v22  ;;  %v10285_v22 = vld [vmem:[%s11011_s15 + $0xbe0] sm:$0xff] }
 0x19c   : > { %6446 = vmatpush.bf16.msra.mxu0 %v10228_v23  ;;  %v10260_v23 = vld [vmem:[%s11011_s15 + $0xb18] sm:$0xff] }
 0x19d   : > { %6459 = vmatpush.bf16.msra.mxu1 %v10236_v24  ;;  %v10268_v24 = vld [vmem:[%s11011_s15 + $0xb58] sm:$0xff] }
 0x19e   : > { %6472 = vmatpush.bf16.msra.mxu2 %v10244_v25  ;;  %v10276_v25 = vld [vmem:[%s11011_s15 + $0xb98] sm:$0xff] }
 0x19f   : > { %6485 = vmatpush.bf16.msra.mxu3 %v10252_v29  ;;  %v10284_v29 = vld [vmem:[%s11011_s15 + $0xbd8] sm:$0xff] }
 0x1a0   : > { %6447 = vmatpush.bf16.msra.mxu0 %v10227_v33  ;;  %v10259_v33 = vld [vmem:[%s11011_s15 + $0xb10] sm:$0xff] }
 0x1a1   : > { %6460 = vmatpush.bf16.msra.mxu1 %v10235_v35  ;;  %v10267_v35 = vld [vmem:[%s11011_s15 + $0xb50] sm:$0xff] }
 0x1a2   : > { %6473 = vmatpush.bf16.msra.mxu2 %v10243_v36  ;;  %v10275_v36 = vld [vmem:[%s11011_s15 + $0xb90] sm:$0xff] }
 0x1a3   : > { %6486 = vmatpush.bf16.msra.mxu3 %v10251_v39  ;;  %v10283_v39 = vld [vmem:[%s11011_s15 + $0xbd0] sm:$0xff] }
 0x1a4   : > { %6448 = vmatpush.bf16.msra.mxu0 %v10226_v41  ;;  %v10258_v41 = vld [vmem:[%s11011_s15 + $0xb08] sm:$0xff] }
 0x1a5   : > { %6461 = vmatpush.bf16.msra.mxu1 %v10234_v44  ;;  %v10266_v44 = vld [vmem:[%s11011_s15 + $0xb48] sm:$0xff] }
 0x1a6   : > { %6474 = vmatpush.bf16.msra.mxu2 %v10242_v45  ;;  %v10274_v45 = vld [vmem:[%s11011_s15 + $0xb88] sm:$0xff] }
 0x1a7   : > { %6487 = vmatpush.bf16.msra.mxu3 %v10250_v49  ;;  %v10282_v49 = vld [vmem:[%s11011_s15 + $0xbc8] sm:$0xff] }
 0x1a8   : > { %6449 = vmatpush.bf16.msra.mxu0 %v10225_v52  ;;  %v6243_v14 = vpop.f32.mrf.mxu0  ;;  %v10257_v52 = vld [vmem:[%s11011_s15 + $0xb00] sm:$0xff] }
 0x1a9   : > { %6462 = vmatpush.bf16.msra.mxu1 %v10233_v55  ;;  %v6244_v15 = vadd.f32 %v6243_v14, %v11556_v32  ;;  %v6256_v17 = vpop.f32.mrf.mxu1  ;;  %v10265_v55 = vld [vmem:[%s11011_s15 + $0xb40] sm:$0xff] }
 0x1aa   : > { %6475 = vmatpush.bf16.msra.mxu2 %v10241_v56  ;;  %v10273_v56 = vld [vmem:[%s11011_s15 + $0xb80] sm:$0xff] }
 0x1ab   : > { %6488 = vmatpush.bf16.msra.mxu3 %v10249_v62  ;;  %9783 = vmatmul.msk.bf16.vlgmr.msra.gmra.mxu0 %vm11582_vm3, %v9782_v1  ;;  %v6257_v20 = vadd.f32 %v6256_v17, %v6244_v15  ;;  %v10281_v62 = vld [vmem:[%s11011_s15 + $0xbc0] sm:$0xff]  ;;  %v9794_v1 = vpack.c.bf16 %v654_v53, %v654_v53  ;;  %vm11682_vm3 = vmpackc.low %vm527_vm0, %vm527_vm0  ;;  %vm535_vm0 = vcmp.lt.s32.totalorder %v457_v46, 19900  ;;  %v461_v46 = vadd.s32 %v11054_v28, %v381_v37 }
 0x1ac   : > { %6494 = vmatpush.bf16.msrb.mxu0 %v10264_v58  ;;  %9786 = vmatmul.msk.bf16.vlgmr.msra.gmra.mxu1 %vm9784_vm6, %v9785_v4  ;;  %v10296_v58 = vld [vmem:[%s11011_s15 + $0xc38] sm:$0xff]  ;;  %v9797_v4 = vpack.c.bf16 %v655_v60, %v655_v60  ;;  %v660_v53 = vld.sshfl [vmem:[#allocation1] sm:$0xff pattern:$0x73625140]  ;;  %vm9808_vm6 = vmpackc.low %vm528_vm2, %vm528_vm2  ;;  %vm536_vm2 = vcmp.lt.s32.totalorder %v458_v50, 19900  ;;  %v462_v50 = vadd.s32 %v11054_v28, %v382_v40  ;;  %v385_v37 = vadd.s32 8192, %v11045_v21 }
 0x1ad   : > { %6507 = vmatpush.bf16.msrb.mxu1 %v10272_v59  ;;  %9789 = vmatmul.msk.bf16.vlgmr.msra.gmra.mxu2 %vm9787_vm5, %v9788_v2  ;;  %v10304_v59 = vld [vmem:[%s11011_s15 + $0xc78] sm:$0xff]  ;;  %v9800_v2 = vpack.c.bf16 %v656_v57, %v656_v57  ;;  %v662_v57 = vld.sshfl [vmem:[#allocation1 + $0x10] sm:$0xff pattern:$0x73625140]  ;;  %vm9811_vm5 = vmpackc.low %vm529_vm1, %vm529_vm1  ;;  %vm537_vm1 = vcmp.lt.s32.totalorder %v459_v48, 19900  ;;  %v463_v48 = vadd.s32 %v11054_v28, %v383_v38  ;;  %v387_v38 = vadd.s32 8448, %v11045_v21 }
 0x1ae   : > { %6520 = vmatpush.bf16.msrb.mxu2 %v10280_v61  ;;  %9792 = vmatmul.msk.bf16.vlgmr.msra.gmra.mxu3 %vm9790_vm7, %v9791_v5  ;;  %v10312_v61 = vld [vmem:[%s11011_s15 + $0xcb8] sm:$0xff]  ;;  %v9803_v5 = vpack.c.bf16 %v657_v63, %v657_v63  ;;  %v661_v60 = vld.sshfl [vmem:[#allocation1 + $0x8] sm:$0xff pattern:$0x73625140]  ;;  %vm9814_vm7 = vmpackc.low %vm530_vm4, %vm530_vm4  ;;  %vm538_vm4 = vcmp.lt.s32.totalorder %v460_v54, 19900  ;;  %v464_v54 = vadd.s32 %v11054_v28, %v384_v42  ;;  %v386_v40 = vadd.s32 8320, %v11045_v21 }
 0x1af   : > { %6533 = vmatpush.bf16.msrb.mxu3 %v10288_v3  ;;  %v10320_v3 = vld [vmem:[%s11011_s15 + $0xcf8] sm:$0xff]  ;;  %v388_v42 = vadd.s32 8576, %v11045_v21 }
 0x1b0   : > { %6495 = vmatpush.bf16.msrb.mxu0 %v10263_v6  ;;  %v6269_v26 = vpop.f32.mrf.mxu2  ;;  %v6245_v31 = vpop.f32.mrf.mxu0  ;;  %v10295_v6 = vld [vmem:[%s11011_s15 + $0xc30] sm:$0xff]  ;;  %v663_v63 = vld.sshfl [vmem:[#allocation1 + $0x18] sm:$0xff pattern:$0x73625140] }
 0x1b1   : > { %6508 = vmatpush.bf16.msrb.mxu1 %v10271_v7  ;;  %v6270_v27 = vadd.f32 %v6269_v26, %v6257_v20  ;;  %v6282_v30 = vpop.f32.mrf.mxu3  ;;  %v6258_v34 = vpop.f32.mrf.mxu1  ;;  %v10303_v7 = vld [vmem:[%s11011_s15 + $0xc70] sm:$0xff]  ;;  %668 = vst [vmem:[#allocation1] ss:$4 sm:$0xff] %v571_v43  ;;  %v572_v43 = vld [vmem:[%s11004_s17 + $0x78] sm:$0xff] }
 0x1b2   : > { %6521 = vmatpush.bf16.msrb.mxu2 %v10279_v8  ;;  %v10311_v8 = vld [vmem:[%s11011_s15 + $0xcb0] sm:$0xff] }
 0x1b3   : > { %6534 = vmatpush.bf16.msrb.mxu3 %v10287_v9  ;;  %v11606_v32 = vadd.f32 %v6282_v30, %v6270_v27  ;;  %v10319_v9 = vld [vmem:[%s11011_s15 + $0xcf0] sm:$0xff] }
 0x1b4   : > { %6496 = vmatpush.bf16.msrb.mxu0 %v10262_v10  ;;  %v10294_v10 = vld [vmem:[%s11011_s15 + $0xc28] sm:$0xff] }
 0x1b5   : > { %6509 = vmatpush.bf16.msrb.mxu1 %v10270_v11  ;;  %v10302_v11 = vld [vmem:[%s11011_s15 + $0xc68] sm:$0xff] }
 0x1b6   : > { %6522 = vmatpush.bf16.msrb.mxu2 %v10278_v12  ;;  %v10310_v12 = vld [vmem:[%s11011_s15 + $0xca8] sm:$0xff] }
 0x1b7   : > { %6535 = vmatpush.bf16.msrb.mxu3 %v10286_v13  ;;  %v10318_v13 = vld [vmem:[%s11011_s15 + $0xce8] sm:$0xff] }
 0x1b8   : > { %6497 = vmatpush.bf16.msrb.mxu0 %v10261_v16  ;;  %v6271_v47 = vpop.f32.mrf.mxu2  ;;  %v10293_v16 = vld [vmem:[%s11011_s15 + $0xc20] sm:$0xff] }
 0x1b9   : > { %6510 = vmatpush.bf16.msrb.mxu1 %v10269_v18  ;;  %v6284_v51 = vpop.f32.mrf.mxu3  ;;  %v10301_v18 = vld [vmem:[%s11011_s15 + $0xc60] sm:$0xff] }
 0x1ba   : > { %6523 = vmatpush.bf16.msrb.mxu2 %v10277_v19  ;;  %v10309_v19 = vld [vmem:[%s11011_s15 + $0xca0] sm:$0xff] }
 0x1bb   : > { %6536 = vmatpush.bf16.msrb.mxu3 %v10285_v22  ;;  %v10317_v22 = vld [vmem:[%s11011_s15 + $0xce0] sm:$0xff] }
 0x1bc   : > { %6498 = vmatpush.bf16.msrb.mxu0 %v10260_v23  ;;  %v10292_v23 = vld [vmem:[%s11011_s15 + $0xc18] sm:$0xff] }
 0x1bd   : > { %6511 = vmatpush.bf16.msrb.mxu1 %v10268_v24  ;;  %v10300_v24 = vld [vmem:[%s11011_s15 + $0xc58] sm:$0xff] }
 0x1be   : > { %6524 = vmatpush.bf16.msrb.mxu2 %v10276_v25  ;;  %v10308_v25 = vld [vmem:[%s11011_s15 + $0xc98] sm:$0xff] }
 0x1bf   : > { %6537 = vmatpush.bf16.msrb.mxu3 %v10284_v29  ;;  %v10316_v29 = vld [vmem:[%s11011_s15 + $0xcd8] sm:$0xff] }
 0x1c0   : > { %6499 = vmatpush.bf16.msrb.mxu0 %v10259_v33  ;;  %v10291_v33 = vld [vmem:[%s11011_s15 + $0xc10] sm:$0xff] }
 0x1c1   : > { %6512 = vmatpush.bf16.msrb.mxu1 %v10267_v35  ;;  %v10299_v35 = vld [vmem:[%s11011_s15 + $0xc50] sm:$0xff] }
 0x1c2   : > { %6525 = vmatpush.bf16.msrb.mxu2 %v10275_v36  ;;  %v10307_v36 = vld [vmem:[%s11011_s15 + $0xc90] sm:$0xff] }
 0x1c3   : > { %6538 = vmatpush.bf16.msrb.mxu3 %v10283_v39  ;;  %v10315_v39 = vld [vmem:[%s11011_s15 + $0xcd0] sm:$0xff] }
 0x1c4   : > { %6500 = vmatpush.bf16.msrb.mxu0 %v10258_v41  ;;  %v10290_v41 = vld [vmem:[%s11011_s15 + $0xc08] sm:$0xff] }
 0x1c5   : > { %6513 = vmatpush.bf16.msrb.mxu1 %v10266_v44  ;;  %v10298_v44 = vld [vmem:[%s11011_s15 + $0xc48] sm:$0xff] }
 0x1c6   : > { %6526 = vmatpush.bf16.msrb.mxu2 %v10274_v45  ;;  %v10306_v45 = vld [vmem:[%s11011_s15 + $0xc88] sm:$0xff] }
 0x1c7   : > { %6539 = vmatpush.bf16.msrb.mxu3 %v10282_v49  ;;  %v10314_v49 = vld [vmem:[%s11011_s15 + $0xcc8] sm:$0xff] }
 0x1c8   : > { %6501 = vmatpush.bf16.msrb.mxu0 %v10257_v52  ;;  %v6295_v14 = vpop.f32.mrf.mxu0  ;;  %v10289_v52 = vld [vmem:[%s11011_s15 + $0xc00] sm:$0xff] }
 0x1c9   : > { %6514 = vmatpush.bf16.msrb.mxu1 %v10265_v55  ;;  %v6296_v15 = vadd.f32 %v6295_v14, %v11606_v32  ;;  %v6308_v17 = vpop.f32.mrf.mxu1  ;;  %v10297_v55 = vld [vmem:[%s11011_s15 + $0xc40] sm:$0xff] }
 0x1ca   : > { %6527 = vmatpush.bf16.msrb.mxu2 %v10273_v56  ;;  %v10305_v56 = vld [vmem:[%s11011_s15 + $0xc80] sm:$0xff] }
 0x1cb   : > { %6540 = vmatpush.bf16.msrb.mxu3 %v10281_v62  ;;  %9795 = vmatmul.msk.bf16.vlgmr.msrb.gmra.mxu0 %vm11632_vm11, %v9794_v1  ;;  %v6309_v20 = vadd.f32 %v6308_v17, %v6296_v15  ;;  %v10313_v62 = vld [vmem:[%s11011_s15 + $0xcc0] sm:$0xff]  ;;  %v9806_v1 = vpack.c.bf16 %v660_v53, %v660_v53  ;;  %vm11732_vm11 = vmpackc.low %vm531_vm8, %vm531_vm8  ;;  %vm539_vm8 = vcmp.lt.s32.totalorder %v461_v46, 19900  ;;  %v465_v46 = vadd.s32 %v11054_v28, %v385_v37 }
 0x1cc   : > { %6546 = vmatpush.bf16.msra.mxu0 %v10296_v58  ;;  %9798 = vmatmul.msk.bf16.vlgmr.msrb.gmra.mxu1 %vm9796_vm14, %v9797_v4  ;;  %v10328_v58 = vld [vmem:[%s11011_s15 + $0xd38] sm:$0xff]  ;;  %v9809_v4 = vpack.c.bf16 %v661_v60, %v661_v60  ;;  %v664_v53 = vld.sshfl [vmem:[#allocation1 + $0x20] sm:$0xff pattern:$0x73625140]  ;;  %vm9820_vm14 = vmpackc.low %vm532_vm10, %vm532_vm10  ;;  %vm540_vm10 = vcmp.lt.s32.totalorder %v462_v50, 19900  ;;  %v466_v50 = vadd.s32 %v11054_v28, %v386_v40  ;;  %v389_v37 = vadd.s32 8704, %v11045_v21 }
 0x1cd   : > { %6559 = vmatpush.bf16.msra.mxu1 %v10304_v59  ;;  %9801 = vmatmul.msk.bf16.vlgmr.msrb.gmra.mxu2 %vm9799_vm13, %v9800_v2  ;;  %v10336_v59 = vld [vmem:[%s11011_s15 + $0xd78] sm:$0xff]  ;;  %v9812_v2 = vpack.c.bf16 %v662_v57, %v662_v57  ;;  %v666_v57 = vld.sshfl [vmem:[#allocation1 + $0x30] sm:$0xff pattern:$0x73625140]  ;;  %vm9823_vm13 = vmpackc.low %vm533_vm9, %vm533_vm9  ;;  %vm541_vm9 = vcmp.lt.s32.totalorder %v463_v48, 19900  ;;  %v467_v48 = vadd.s32 %v11054_v28, %v387_v38  ;;  %v391_v38 = vadd.s32 8960, %v11045_v21 }
 0x1ce   : > { %6572 = vmatpush.bf16.msra.mxu2 %v10312_v61  ;;  %9804 = vmatmul.msk.bf16.vlgmr.msrb.gmra.mxu3 %vm9802_vm15, %v9803_v5  ;;  %v10344_v61 = vld [vmem:[%s11011_s15 + $0xdb8] sm:$0xff]  ;;  %v9815_v5 = vpack.c.bf16 %v663_v63, %v663_v63  ;;  %v665_v60 = vld.sshfl [vmem:[#allocation1 + $0x28] sm:$0xff pattern:$0x73625140]  ;;  %vm9826_vm15 = vmpackc.low %vm534_vm12, %vm534_vm12  ;;  %vm542_vm12 = vcmp.lt.s32.totalorder %v464_v54, 19900  ;;  %v468_v54 = vadd.s32 %v11054_v28, %v388_v42  ;;  %v390_v40 = vadd.s32 8832, %v11045_v21 }
 0x1cf   : > { %6585 = vmatpush.bf16.msra.mxu3 %v10320_v3  ;;  %v10352_v3 = vld [vmem:[%s11011_s15 + $0xdf8] sm:$0xff]  ;;  %v10450_v42 = vld [vmem:[%s11011_s15 + $0x1108] sm:$0xff] }
 0x1d0   : > { %6547 = vmatpush.bf16.msra.mxu0 %v10295_v6  ;;  %v6321_v26 = vpop.f32.mrf.mxu2  ;;  %v6297_v31 = vpop.f32.mrf.mxu0  ;;  %v10327_v6 = vld [vmem:[%s11011_s15 + $0xd30] sm:$0xff]  ;;  %v667_v63 = vld.sshfl [vmem:[#allocation1 + $0x38] sm:$0xff pattern:$0x73625140] }
 0x1d1   : > { %6560 = vmatpush.bf16.msra.mxu1 %v10303_v7  ;;  %v6322_v27 = vadd.f32 %v6321_v26, %v6309_v20  ;;  %v6334_v30 = vpop.f32.mrf.mxu3  ;;  %v6310_v34 = vpop.f32.mrf.mxu1  ;;  %v10335_v7 = vld [vmem:[%s11011_s15 + $0xd70] sm:$0xff]  ;;  %669 = vst [vmem:[#allocation1 + $0x20] ss:$4 sm:$0xff] %v572_v43  ;;  %v573_v43 = vld [vmem:[%s11004_s17 + $0x80] sm:$0xff] }
 0x1d2   : > { %6573 = vmatpush.bf16.msra.mxu2 %v10311_v8  ;;  %v10343_v8 = vld [vmem:[%s11011_s15 + $0xdb0] sm:$0xff] }
 0x1d3   : > { %6586 = vmatpush.bf16.msra.mxu3 %v10319_v9  ;;  %v11656_v32 = vadd.f32 %v6334_v30, %v6322_v27  ;;  %v10351_v9 = vld [vmem:[%s11011_s15 + $0xdf0] sm:$0xff] }
 0x1d4   : > { %6548 = vmatpush.bf16.msra.mxu0 %v10294_v10  ;;  %v10326_v10 = vld [vmem:[%s11011_s15 + $0xd28] sm:$0xff] }
 0x1d5   : > { %6561 = vmatpush.bf16.msra.mxu1 %v10302_v11  ;;  %v10334_v11 = vld [vmem:[%s11011_s15 + $0xd68] sm:$0xff] }
 0x1d6   : > { %6574 = vmatpush.bf16.msra.mxu2 %v10310_v12  ;;  %v10342_v12 = vld [vmem:[%s11011_s15 + $0xda8] sm:$0xff] }
 0x1d7   : > { %6587 = vmatpush.bf16.msra.mxu3 %v10318_v13  ;;  %v10350_v13 = vld [vmem:[%s11011_s15 + $0xde8] sm:$0xff] }
 0x1d8   : > { %6549 = vmatpush.bf16.msra.mxu0 %v10293_v16  ;;  %v6323_v47 = vpop.f32.mrf.mxu2  ;;  %v10325_v16 = vld [vmem:[%s11011_s15 + $0xd20] sm:$0xff] }
 0x1d9   : > { %6562 = vmatpush.bf16.msra.mxu1 %v10301_v18  ;;  %v6336_v51 = vpop.f32.mrf.mxu3  ;;  %v10333_v18 = vld [vmem:[%s11011_s15 + $0xd60] sm:$0xff] }
 0x1da   : > { %6575 = vmatpush.bf16.msra.mxu2 %v10309_v19  ;;  %v10341_v19 = vld [vmem:[%s11011_s15 + $0xda0] sm:$0xff] }
 0x1db   : > { %6588 = vmatpush.bf16.msra.mxu3 %v10317_v22  ;;  %v10349_v22 = vld [vmem:[%s11011_s15 + $0xde0] sm:$0xff] }
 0x1dc   : > { %6550 = vmatpush.bf16.msra.mxu0 %v10292_v23  ;;  %v10324_v23 = vld [vmem:[%s11011_s15 + $0xd18] sm:$0xff] }
 0x1dd   : > { %6563 = vmatpush.bf16.msra.mxu1 %v10300_v24  ;;  %v10332_v24 = vld [vmem:[%s11011_s15 + $0xd58] sm:$0xff] }
 0x1de   : > { %6576 = vmatpush.bf16.msra.mxu2 %v10308_v25  ;;  %v10340_v25 = vld [vmem:[%s11011_s15 + $0xd98] sm:$0xff] }
 0x1df   : > { %6589 = vmatpush.bf16.msra.mxu3 %v10316_v29  ;;  %v10348_v29 = vld [vmem:[%s11011_s15 + $0xdd8] sm:$0xff] }
 0x1e0   : > { %6551 = vmatpush.bf16.msra.mxu0 %v10291_v33  ;;  %v10323_v33 = vld [vmem:[%s11011_s15 + $0xd10] sm:$0xff] }
 0x1e1   : > { %6564 = vmatpush.bf16.msra.mxu1 %v10299_v35  ;;  %v10331_v35 = vld [vmem:[%s11011_s15 + $0xd50] sm:$0xff] }
 0x1e2   : > { %6577 = vmatpush.bf16.msra.mxu2 %v10307_v36  ;;  %v10339_v36 = vld [vmem:[%s11011_s15 + $0xd90] sm:$0xff] }
 0x1e3   : > { %6590 = vmatpush.bf16.msra.mxu3 %v10315_v39  ;;  %v10347_v39 = vld [vmem:[%s11011_s15 + $0xdd0] sm:$0xff] }
 0x1e4   : > { %6552 = vmatpush.bf16.msra.mxu0 %v10290_v41  ;;  %v10322_v41 = vld [vmem:[%s11011_s15 + $0xd08] sm:$0xff] }
 0x1e5   : > { %6565 = vmatpush.bf16.msra.mxu1 %v10298_v44  ;;  %v10330_v44 = vld [vmem:[%s11011_s15 + $0xd48] sm:$0xff] }
 0x1e6   : > { %6578 = vmatpush.bf16.msra.mxu2 %v10306_v45  ;;  %v10338_v45 = vld [vmem:[%s11011_s15 + $0xd88] sm:$0xff] }
 0x1e7   : > { %6591 = vmatpush.bf16.msra.mxu3 %v10314_v49  ;;  %v10346_v49 = vld [vmem:[%s11011_s15 + $0xdc8] sm:$0xff] }
 0x1e8   : > { %6553 = vmatpush.bf16.msra.mxu0 %v10289_v52  ;;  %v6347_v14 = vpop.f32.mrf.mxu0  ;;  %v10321_v52 = vld [vmem:[%s11011_s15 + $0xd00] sm:$0xff] }
 0x1e9   : > { %6566 = vmatpush.bf16.msra.mxu1 %v10297_v55  ;;  %v6348_v15 = vadd.f32 %v6347_v14, %v11656_v32  ;;  %v6360_v17 = vpop.f32.mrf.mxu1  ;;  %v10329_v55 = vld [vmem:[%s11011_s15 + $0xd40] sm:$0xff] }
 0x1ea   : > { %6579 = vmatpush.bf16.msra.mxu2 %v10305_v56  ;;  %v10337_v56 = vld [vmem:[%s11011_s15 + $0xd80] sm:$0xff] }
 0x1eb   : > { %6592 = vmatpush.bf16.msra.mxu3 %v10313_v62  ;;  %9807 = vmatmul.msk.bf16.vlgmr.msra.gmra.mxu0 %vm11682_vm3, %v9806_v1  ;;  %v6361_v20 = vadd.f32 %v6360_v17, %v6348_v15  ;;  %v10345_v62 = vld [vmem:[%s11011_s15 + $0xdc0] sm:$0xff]  ;;  %v9818_v1 = vpack.c.bf16 %v664_v53, %v664_v53  ;;  %vm11782_vm3 = vmpackc.low %vm535_vm0, %vm535_vm0  ;;  %vm543_vm0 = vcmp.lt.s32.totalorder %v465_v46, 19900  ;;  %v469_v46 = vadd.s32 %v11054_v28, %v389_v37  ;;  %v10491_v37 = vld [vmem:[%s11011_s15 + $0x1250] sm:$0xff] }
 0x1ec   : > { %6598 = vmatpush.bf16.msrb.mxu0 %v10328_v58  ;;  %9810 = vmatmul.msk.bf16.vlgmr.msra.gmra.mxu1 %vm9808_vm6, %v9809_v4  ;;  %v10360_v58 = vld [vmem:[%s11011_s15 + $0xe38] sm:$0xff]  ;;  %v9821_v4 = vpack.c.bf16 %v665_v60, %v665_v60  ;;  %v670_v53 = vld.sshfl [vmem:[#allocation1] sm:$0xff pattern:$0x73625140]  ;;  %vm9832_vm6 = vmpackc.low %vm536_vm2, %vm536_vm2  ;;  %vm544_vm2 = vcmp.lt.s32.totalorder %v466_v50, 19900  ;;  %v470_v50 = vadd.s32 %v11054_v28, %v390_v40 }
 0x1ed   : > { %6611 = vmatpush.bf16.msrb.mxu1 %v10336_v59  ;;  %9813 = vmatmul.msk.bf16.vlgmr.msra.gmra.mxu2 %vm9811_vm5, %v9812_v2  ;;  %v10368_v59 = vld [vmem:[%s11011_s15 + $0xe78] sm:$0xff]  ;;  %v9824_v2 = vpack.c.bf16 %v666_v57, %v666_v57  ;;  %v672_v57 = vld.sshfl [vmem:[#allocation1 + $0x10] sm:$0xff pattern:$0x73625140]  ;;  %vm9835_vm5 = vmpackc.low %vm537_vm1, %vm537_vm1  ;;  %vm545_vm1 = vcmp.lt.s32.totalorder %v467_v48, 19900  ;;  %v471_v48 = vadd.s32 %v11054_v28, %v391_v38 }
 0x1ee   : > { %6624 = vmatpush.bf16.msrb.mxu2 %v10344_v61  ;;  %9816 = vmatmul.msk.bf16.vlgmr.msra.gmra.mxu3 %vm9814_vm7, %v9815_v5  ;;  %v10376_v61 = vld [vmem:[%s11011_s15 + $0xeb8] sm:$0xff]  ;;  %v9827_v5 = vpack.c.bf16 %v667_v63, %v667_v63  ;;  %v671_v60 = vld.sshfl [vmem:[#allocation1 + $0x8] sm:$0xff pattern:$0x73625140]  ;;  %vm9838_vm7 = vmpackc.low %vm538_vm4, %vm538_vm4  ;;  %vm546_vm4 = vcmp.lt.s32.totalorder %v468_v54, 19900 }
 0x1ef   : > { %6637 = vmatpush.bf16.msrb.mxu3 %v10352_v3  ;;  %v10384_v3 = vld [vmem:[%s11011_s15 + $0xef8] sm:$0xff]  ;;  %v10499_v38 = vld [vmem:[%s11011_s15 + $0x1290] sm:$0xff] }
 0x1f0   : > { %6599 = vmatpush.bf16.msrb.mxu0 %v10327_v6  ;;  %v6373_v26 = vpop.f32.mrf.mxu2  ;;  %v6349_v31 = vpop.f32.mrf.mxu0  ;;  %v10359_v6 = vld [vmem:[%s11011_s15 + $0xe30] sm:$0xff]  ;;  %v673_v63 = vld.sshfl [vmem:[#allocation1 + $0x18] sm:$0xff pattern:$0x73625140] }
 0x1f1   : > { %6612 = vmatpush.bf16.msrb.mxu1 %v10335_v7  ;;  %v6374_v27 = vadd.f32 %v6373_v26, %v6361_v20  ;;  %v6386_v30 = vpop.f32.mrf.mxu3  ;;  %v6362_v34 = vpop.f32.mrf.mxu1  ;;  %v10367_v7 = vld [vmem:[%s11011_s15 + $0xe70] sm:$0xff]  ;;  %678 = vst [vmem:[#allocation1] ss:$4 sm:$0xff] %v573_v43 }
 0x1f2   : > { %6625 = vmatpush.bf16.msrb.mxu2 %v10343_v8  ;;  %v10375_v8 = vld [vmem:[%s11011_s15 + $0xeb0] sm:$0xff] }
 0x1f3   : > { %6638 = vmatpush.bf16.msrb.mxu3 %v10351_v9  ;;  %v11706_v32 = vadd.f32 %v6386_v30, %v6374_v27  ;;  %v10383_v9 = vld [vmem:[%s11011_s15 + $0xef0] sm:$0xff] }
 0x1f4   : > { %6600 = vmatpush.bf16.msrb.mxu0 %v10326_v10  ;;  %v10358_v10 = vld [vmem:[%s11011_s15 + $0xe28] sm:$0xff]  ;;  %v10507_v40 = vld [vmem:[%s11011_s15 + $0x12d0] sm:$0xff] }
 0x1f5   : > { %6613 = vmatpush.bf16.msrb.mxu1 %v10334_v11  ;;  %v10366_v11 = vld [vmem:[%s11011_s15 + $0xe68] sm:$0xff] }
 0x1f6   : > { %6626 = vmatpush.bf16.msrb.mxu2 %v10342_v12  ;;  %v10374_v12 = vld [vmem:[%s11011_s15 + $0xea8] sm:$0xff] }
 0x1f7   : > { %6639 = vmatpush.bf16.msrb.mxu3 %v10350_v13  ;;  %v10382_v13 = vld [vmem:[%s11011_s15 + $0xee8] sm:$0xff] }
 0x1f8   : > { %6601 = vmatpush.bf16.msrb.mxu0 %v10325_v16  ;;  %v6375_v47 = vpop.f32.mrf.mxu2  ;;  %v10357_v16 = vld [vmem:[%s11011_s15 + $0xe20] sm:$0xff]  ;;  %v574_v43 = vld [vmem:[%s11004_s17 + $0x88] sm:$0xff] }
 0x1f9   : > { %6614 = vmatpush.bf16.msrb.mxu1 %v10333_v18  ;;  %v6388_v51 = vpop.f32.mrf.mxu3  ;;  %v10365_v18 = vld [vmem:[%s11011_s15 + $0xe60] sm:$0xff] }
 0x1fa   : > { %6627 = vmatpush.bf16.msrb.mxu2 %v10341_v19  ;;  %v10373_v19 = vld [vmem:[%s11011_s15 + $0xea0] sm:$0xff] }
 0x1fb   : > { %6640 = vmatpush.bf16.msrb.mxu3 %v10349_v22  ;;  %v10381_v22 = vld [vmem:[%s11011_s15 + $0xee0] sm:$0xff] }
 0x1fc   : > { %6602 = vmatpush.bf16.msrb.mxu0 %v10324_v23  ;;  %v10356_v23 = vld [vmem:[%s11011_s15 + $0xe18] sm:$0xff] }
 0x1fd   : > { %6615 = vmatpush.bf16.msrb.mxu1 %v10332_v24  ;;  %v10364_v24 = vld [vmem:[%s11011_s15 + $0xe58] sm:$0xff] }
 0x1fe   : > { %6628 = vmatpush.bf16.msrb.mxu2 %v10340_v25  ;;  %v10372_v25 = vld [vmem:[%s11011_s15 + $0xe98] sm:$0xff] }
 0x1ff   : > { %6641 = vmatpush.bf16.msrb.mxu3 %v10348_v29  ;;  %v10380_v29 = vld [vmem:[%s11011_s15 + $0xed8] sm:$0xff] }
 0x200   : > { %6603 = vmatpush.bf16.msrb.mxu0 %v10323_v33  ;;  %v10355_v33 = vld [vmem:[%s11011_s15 + $0xe10] sm:$0xff] }
 0x201   : > { %6616 = vmatpush.bf16.msrb.mxu1 %v10331_v35  ;;  %v10363_v35 = vld [vmem:[%s11011_s15 + $0xe50] sm:$0xff] }
 0x202   : > { %6629 = vmatpush.bf16.msrb.mxu2 %v10339_v36  ;;  %v10371_v36 = vld [vmem:[%s11011_s15 + $0xe90] sm:$0xff] }
 0x203   : > { %6642 = vmatpush.bf16.msrb.mxu3 %v10347_v39  ;;  %v10379_v39 = vld [vmem:[%s11011_s15 + $0xed0] sm:$0xff] }
 0x204   : > { %6604 = vmatpush.bf16.msrb.mxu0 %v10322_v41  ;;  %v10354_v41 = vld [vmem:[%s11011_s15 + $0xe08] sm:$0xff] }
 0x205   : > { %6617 = vmatpush.bf16.msrb.mxu1 %v10330_v44  ;;  %v10362_v44 = vld [vmem:[%s11011_s15 + $0xe48] sm:$0xff] }
 0x206   : > { %6630 = vmatpush.bf16.msrb.mxu2 %v10338_v45  ;;  %v10370_v45 = vld [vmem:[%s11011_s15 + $0xe88] sm:$0xff] }
 0x207   : > { %6643 = vmatpush.bf16.msrb.mxu3 %v10346_v49  ;;  %v10378_v49 = vld [vmem:[%s11011_s15 + $0xec8] sm:$0xff] }
 0x208   : > { %6605 = vmatpush.bf16.msrb.mxu0 %v10321_v52  ;;  %v6399_v14 = vpop.f32.mrf.mxu0  ;;  %v10353_v52 = vld [vmem:[%s11011_s15 + $0xe00] sm:$0xff] }
 0x209   : > { %6618 = vmatpush.bf16.msrb.mxu1 %v10329_v55  ;;  %v6400_v15 = vadd.f32 %v6399_v14, %v11706_v32  ;;  %v6412_v17 = vpop.f32.mrf.mxu1  ;;  %v10361_v55 = vld [vmem:[%s11011_s15 + $0xe40] sm:$0xff] }
 0x20a   : > { %6631 = vmatpush.bf16.msrb.mxu2 %v10337_v56  ;;  %v10369_v56 = vld [vmem:[%s11011_s15 + $0xe80] sm:$0xff] }
 0x20b   : > { %6644 = vmatpush.bf16.msrb.mxu3 %v10345_v62  ;;  %9819 = vmatmul.msk.bf16.vlgmr.msrb.gmra.mxu0 %vm11732_vm11, %v9818_v1  ;;  %v6413_v20 = vadd.f32 %v6412_v17, %v6400_v15  ;;  %v10377_v62 = vld [vmem:[%s11011_s15 + $0xec0] sm:$0xff]  ;;  %v9830_v1 = vpack.c.bf16 %v670_v53, %v670_v53  ;;  %vm11832_vm11 = vmpackc.low %vm539_vm8, %vm539_vm8  ;;  %vm547_vm8 = vcmp.lt.s32.totalorder %v469_v46, 19900  ;;  %v10490_v46 = vld [vmem:[%s11011_s15 + $0x1248] sm:$0xff] }
 0x20c   : > { %6650 = vmatpush.bf16.msra.mxu0 %v10360_v58  ;;  %9822 = vmatmul.msk.bf16.vlgmr.msrb.gmra.mxu1 %vm9820_vm14, %v9821_v4  ;;  %v10392_v58 = vld [vmem:[%s11011_s15 + $0xf38] sm:$0xff]  ;;  %v9833_v4 = vpack.c.bf16 %v671_v60, %v671_v60  ;;  %v674_v53 = vld.sshfl [vmem:[#allocation1 + $0x20] sm:$0xff pattern:$0x73625140]  ;;  %vm9844_vm14 = vmpackc.low %vm540_vm10, %vm540_vm10  ;;  %vm548_vm10 = vcmp.lt.s32.totalorder %v470_v50, 19900 }
 0x20d   : > { %6663 = vmatpush.bf16.msra.mxu1 %v10368_v59  ;;  %9825 = vmatmul.msk.bf16.vlgmr.msrb.gmra.mxu2 %vm9823_vm13, %v9824_v2  ;;  %v10400_v59 = vld [vmem:[%s11011_s15 + $0xf78] sm:$0xff]  ;;  %v9836_v2 = vpack.c.bf16 %v672_v57, %v672_v57  ;;  %v676_v57 = vld.sshfl [vmem:[#allocation1 + $0x30] sm:$0xff pattern:$0x73625140]  ;;  %vm9847_vm13 = vmpackc.low %vm541_vm9, %vm541_vm9  ;;  %vm549_vm9 = vcmp.lt.s32.totalorder %v471_v48, 19900 }
 0x20e   : > { %6676 = vmatpush.bf16.msra.mxu2 %v10376_v61  ;;  %9828 = vmatmul.msk.bf16.vlgmr.msrb.gmra.mxu3 %vm9826_vm15, %v9827_v5  ;;  %v10408_v61 = vld [vmem:[%s11011_s15 + $0xfb8] sm:$0xff]  ;;  %v9839_v5 = vpack.c.bf16 %v673_v63, %v673_v63  ;;  %v675_v60 = vld.sshfl [vmem:[#allocation1 + $0x28] sm:$0xff pattern:$0x73625140]  ;;  %vm9850_vm15 = vmpackc.low %vm542_vm12, %vm542_vm12 }
 0x20f   : > { %6689 = vmatpush.bf16.msra.mxu3 %v10384_v3  ;;  %v10416_v3 = vld [vmem:[%s11011_s15 + $0xff8] sm:$0xff]  ;;  %v10506_v50 = vld [vmem:[%s11011_s15 + $0x12c8] sm:$0xff] }
 0x210   : > { %6651 = vmatpush.bf16.msra.mxu0 %v10359_v6  ;;  %v6425_v26 = vpop.f32.mrf.mxu2  ;;  %v6401_v31 = vpop.f32.mrf.mxu0  ;;  %v10391_v6 = vld [vmem:[%s11011_s15 + $0xf30] sm:$0xff]  ;;  %v677_v63 = vld.sshfl [vmem:[#allocation1 + $0x38] sm:$0xff pattern:$0x73625140] }
 0x211   : > { %6664 = vmatpush.bf16.msra.mxu1 %v10367_v7  ;;  %v6426_v27 = vadd.f32 %v6425_v26, %v6413_v20  ;;  %v6438_v30 = vpop.f32.mrf.mxu3  ;;  %v6414_v34 = vpop.f32.mrf.mxu1  ;;  %v10399_v7 = vld [vmem:[%s11011_s15 + $0xf70] sm:$0xff]  ;;  %679 = vst [vmem:[#allocation1 + $0x20] ss:$4 sm:$0xff] %v574_v43  ;;  %v392_v43 = vadd.s32 9088, %v11045_v21 }
 0x212   : > { %6677 = vmatpush.bf16.msra.mxu2 %v10375_v8  ;;  %v10407_v8 = vld [vmem:[%s11011_s15 + $0xfb0] sm:$0xff] }
 0x213   : > { %6690 = vmatpush.bf16.msra.mxu3 %v10383_v9  ;;  %v11756_v32 = vadd.f32 %v6438_v30, %v6426_v27  ;;  %v10415_v9 = vld [vmem:[%s11011_s15 + $0xff0] sm:$0xff]  ;;  %v472_v54 = vadd.s32 %v11054_v28, %v392_v43 }
 0x214   : > { %6652 = vmatpush.bf16.msra.mxu0 %v10358_v10  ;;  %v10390_v10 = vld [vmem:[%s11011_s15 + $0xf28] sm:$0xff] }
 0x215   : > { %6665 = vmatpush.bf16.msra.mxu1 %v10366_v11  ;;  %v10398_v11 = vld [vmem:[%s11011_s15 + $0xf68] sm:$0xff]  ;;  %vm550_vm12 = vcmp.lt.s32.totalorder %v472_v54, 19900  ;;  %v10497_v54 = vld [vmem:[%s11011_s15 + $0x1280] sm:$0xff] }
 0x216   : > { %6678 = vmatpush.bf16.msra.mxu2 %v10374_v12  ;;  %v10406_v12 = vld [vmem:[%s11011_s15 + $0xfa8] sm:$0xff] }
 0x217   : > { %6691 = vmatpush.bf16.msra.mxu3 %v10382_v13  ;;  %v10414_v13 = vld [vmem:[%s11011_s15 + $0xfe8] sm:$0xff] }
 0x218   : > { %6653 = vmatpush.bf16.msra.mxu0 %v10357_v16  ;;  %v6427_v47 = vpop.f32.mrf.mxu2  ;;  %v10389_v16 = vld [vmem:[%s11011_s15 + $0xf20] sm:$0xff] }
 0x219   : > { %6666 = vmatpush.bf16.msra.mxu1 %v10365_v18  ;;  %v6440_v51 = vpop.f32.mrf.mxu3  ;;  %v10397_v18 = vld [vmem:[%s11011_s15 + $0xf60] sm:$0xff] }
 0x21a   : > { %6679 = vmatpush.bf16.msra.mxu2 %v10373_v19  ;;  %v10405_v19 = vld [vmem:[%s11011_s15 + $0xfa0] sm:$0xff] }
 0x21b   : > { %6692 = vmatpush.bf16.msra.mxu3 %v10381_v22  ;;  %v10413_v22 = vld [vmem:[%s11011_s15 + $0xfe0] sm:$0xff] }
 0x21c   : > { %6654 = vmatpush.bf16.msra.mxu0 %v10356_v23  ;;  %v10388_v23 = vld [vmem:[%s11011_s15 + $0xf18] sm:$0xff] }
 0x21d   : > { %6667 = vmatpush.bf16.msra.mxu1 %v10364_v24  ;;  %v10396_v24 = vld [vmem:[%s11011_s15 + $0xf58] sm:$0xff] }
 0x21e   : > { %6680 = vmatpush.bf16.msra.mxu2 %v10372_v25  ;;  %v10404_v25 = vld [vmem:[%s11011_s15 + $0xf98] sm:$0xff] }
 0x21f   : > { %6693 = vmatpush.bf16.msra.mxu3 %v10380_v29  ;;  %v10412_v29 = vld [vmem:[%s11011_s15 + $0xfd8] sm:$0xff] }
 0x220   : > { %6655 = vmatpush.bf16.msra.mxu0 %v10355_v33  ;;  %v10387_v33 = vld [vmem:[%s11011_s15 + $0xf10] sm:$0xff] }
 0x221   : > { %6668 = vmatpush.bf16.msra.mxu1 %v10363_v35  ;;  %v10395_v35 = vld [vmem:[%s11011_s15 + $0xf50] sm:$0xff] }
 0x222   : > { %6681 = vmatpush.bf16.msra.mxu2 %v10371_v36  ;;  %v10403_v36 = vld [vmem:[%s11011_s15 + $0xf90] sm:$0xff] }
 0x223   : > { %6694 = vmatpush.bf16.msra.mxu3 %v10379_v39  ;;  %v10411_v39 = vld [vmem:[%s11011_s15 + $0xfd0] sm:$0xff] }
 0x224   : > { %6656 = vmatpush.bf16.msra.mxu0 %v10354_v41  ;;  %v10386_v41 = vld [vmem:[%s11011_s15 + $0xf08] sm:$0xff] }
 0x225   : > { %6669 = vmatpush.bf16.msra.mxu1 %v10362_v44  ;;  %v10394_v44 = vld [vmem:[%s11011_s15 + $0xf48] sm:$0xff] }
 0x226   : > { %6682 = vmatpush.bf16.msra.mxu2 %v10370_v45  ;;  %v10402_v45 = vld [vmem:[%s11011_s15 + $0xf88] sm:$0xff] }
 0x227   : > { %6695 = vmatpush.bf16.msra.mxu3 %v10378_v49  ;;  %v10410_v49 = vld [vmem:[%s11011_s15 + $0xfc8] sm:$0xff] }
 0x228   : > { %6657 = vmatpush.bf16.msra.mxu0 %v10353_v52  ;;  %v6451_v14 = vpop.f32.mrf.mxu0  ;;  %v10385_v52 = vld [vmem:[%s11011_s15 + $0xf00] sm:$0xff] }
 0x229   : > { %6670 = vmatpush.bf16.msra.mxu1 %v10361_v55  ;;  %v6452_v15 = vadd.f32 %v6451_v14, %v11756_v32  ;;  %v6464_v17 = vpop.f32.mrf.mxu1  ;;  %v10393_v55 = vld [vmem:[%s11011_s15 + $0xf40] sm:$0xff] }
 0x22a   : > { %6683 = vmatpush.bf16.msra.mxu2 %v10369_v56  ;;  %v10401_v56 = vld [vmem:[%s11011_s15 + $0xf80] sm:$0xff] }
 0x22b   : > { %6696 = vmatpush.bf16.msra.mxu3 %v10377_v62  ;;  %9831 = vmatmul.msk.bf16.vlgmr.msra.gmra.mxu0 %vm11782_vm3, %v9830_v1  ;;  %v6465_v20 = vadd.f32 %v6464_v17, %v6452_v15  ;;  %v10409_v62 = vld [vmem:[%s11011_s15 + $0xfc0] sm:$0xff]  ;;  %v9842_v1 = vpack.c.bf16 %v674_v53, %v674_v53  ;;  %vm11882_vm3 = vmpackc.low %vm543_vm0, %vm543_vm0 }
 0x22c   : > { %6702 = vmatpush.bf16.msrb.mxu0 %v10392_v58  ;;  %9834 = vmatmul.msk.bf16.vlgmr.msra.gmra.mxu1 %vm9832_vm6, %v9833_v4  ;;  %v10424_v58 = vld [vmem:[%s11011_s15 + $0x1038] sm:$0xff]  ;;  %v9845_v4 = vpack.c.bf16 %v675_v60, %v675_v60  ;;  %v680_v53 = vld.sshfl [vmem:[#allocation1] sm:$0xff pattern:$0x73625140]  ;;  %vm9856_vm6 = vmpackc.low %vm544_vm2, %vm544_vm2 }
 0x22d   : > { %6715 = vmatpush.bf16.msrb.mxu1 %v10400_v59  ;;  %9837 = vmatmul.msk.bf16.vlgmr.msra.gmra.mxu2 %vm9835_vm5, %v9836_v2  ;;  %v10432_v59 = vld [vmem:[%s11011_s15 + $0x1078] sm:$0xff]  ;;  %v9848_v2 = vpack.c.bf16 %v676_v57, %v676_v57  ;;  %v682_v57 = vld.sshfl [vmem:[#allocation1 + $0x10] sm:$0xff pattern:$0x73625140]  ;;  %vm9859_vm5 = vmpackc.low %vm545_vm1, %vm545_vm1 }
 0x22e   : > { %6728 = vmatpush.bf16.msrb.mxu2 %v10408_v61  ;;  %9840 = vmatmul.msk.bf16.vlgmr.msra.gmra.mxu3 %vm9838_vm7, %v9839_v5  ;;  %v10440_v61 = vld [vmem:[%s11011_s15 + $0x10b8] sm:$0xff]  ;;  %v9851_v5 = vpack.c.bf16 %v677_v63, %v677_v63  ;;  %v681_v60 = vld.sshfl [vmem:[#allocation1 + $0x8] sm:$0xff pattern:$0x73625140]  ;;  %vm9862_vm7 = vmpackc.low %vm546_vm4, %vm546_vm4 }
 0x22f   : > { %6741 = vmatpush.bf16.msrb.mxu3 %v10416_v3  ;;  %v10448_v3 = vld [vmem:[%s11011_s15 + $0x10f8] sm:$0xff] }
 0x230   : > { %6703 = vmatpush.bf16.msrb.mxu0 %v10391_v6  ;;  %v6477_v26 = vpop.f32.mrf.mxu2  ;;  %v6453_v31 = vpop.f32.mrf.mxu0  ;;  %v10423_v6 = vld [vmem:[%s11011_s15 + $0x1030] sm:$0xff]  ;;  %v683_v63 = vld.sshfl [vmem:[#allocation1 + $0x18] sm:$0xff pattern:$0x73625140] }
 0x231   : > { %6716 = vmatpush.bf16.msrb.mxu1 %v10399_v7  ;;  %v6478_v27 = vadd.f32 %v6477_v26, %v6465_v20  ;;  %v6490_v30 = vpop.f32.mrf.mxu3  ;;  %v6466_v34 = vpop.f32.mrf.mxu1  ;;  %v10431_v7 = vld [vmem:[%s11011_s15 + $0x1070] sm:$0xff] }
 0x232   : > { %6729 = vmatpush.bf16.msrb.mxu2 %v10407_v8  ;;  %v10439_v8 = vld [vmem:[%s11011_s15 + $0x10b0] sm:$0xff] }
 0x233   : > { %6742 = vmatpush.bf16.msrb.mxu3 %v10415_v9  ;;  %v11806_v32 = vadd.f32 %v6490_v30, %v6478_v27  ;;  %v10447_v9 = vld [vmem:[%s11011_s15 + $0x10f0] sm:$0xff] }
 0x234   : > { %6704 = vmatpush.bf16.msrb.mxu0 %v10390_v10  ;;  %v10422_v10 = vld [vmem:[%s11011_s15 + $0x1028] sm:$0xff] }
 0x235   : > { %6717 = vmatpush.bf16.msrb.mxu1 %v10398_v11  ;;  %v10430_v11 = vld [vmem:[%s11011_s15 + $0x1068] sm:$0xff] }
 0x236   : > { %6730 = vmatpush.bf16.msrb.mxu2 %v10406_v12  ;;  %v10438_v12 = vld [vmem:[%s11011_s15 + $0x10a8] sm:$0xff] }
 0x237   : > { %6743 = vmatpush.bf16.msrb.mxu3 %v10414_v13  ;;  %v10446_v13 = vld [vmem:[%s11011_s15 + $0x10e8] sm:$0xff] }
 0x238   : > { %6705 = vmatpush.bf16.msrb.mxu0 %v10389_v16  ;;  %v6479_v47 = vpop.f32.mrf.mxu2  ;;  %v10421_v16 = vld [vmem:[%s11011_s15 + $0x1020] sm:$0xff] }
 0x239   : > { %6718 = vmatpush.bf16.msrb.mxu1 %v10397_v18  ;;  %v6492_v51 = vpop.f32.mrf.mxu3  ;;  %v10429_v18 = vld [vmem:[%s11011_s15 + $0x1060] sm:$0xff] }
 0x23a   : > { %6731 = vmatpush.bf16.msrb.mxu2 %v10405_v19  ;;  %v10437_v19 = vld [vmem:[%s11011_s15 + $0x10a0] sm:$0xff] }
 0x23b   : > { %6744 = vmatpush.bf16.msrb.mxu3 %v10413_v22  ;;  %v10445_v22 = vld [vmem:[%s11011_s15 + $0x10e0] sm:$0xff] }
 0x23c   : > { %6706 = vmatpush.bf16.msrb.mxu0 %v10388_v23  ;;  %v10420_v23 = vld [vmem:[%s11011_s15 + $0x1018] sm:$0xff] }
 0x23d   : > { %6719 = vmatpush.bf16.msrb.mxu1 %v10396_v24  ;;  %v10428_v24 = vld [vmem:[%s11011_s15 + $0x1058] sm:$0xff] }
 0x23e   : > { %6732 = vmatpush.bf16.msrb.mxu2 %v10404_v25  ;;  %v10436_v25 = vld [vmem:[%s11011_s15 + $0x1098] sm:$0xff] }
 0x23f   : > { %6745 = vmatpush.bf16.msrb.mxu3 %v10412_v29  ;;  %v10444_v29 = vld [vmem:[%s11011_s15 + $0x10d8] sm:$0xff] }
 0x240   : > { %6707 = vmatpush.bf16.msrb.mxu0 %v10387_v33  ;;  %v10419_v33 = vld [vmem:[%s11011_s15 + $0x1010] sm:$0xff] }
 0x241   : > { %6720 = vmatpush.bf16.msrb.mxu1 %v10395_v35  ;;  %v10427_v35 = vld [vmem:[%s11011_s15 + $0x1050] sm:$0xff] }
 0x242   : > { %6733 = vmatpush.bf16.msrb.mxu2 %v10403_v36  ;;  %v10435_v36 = vld [vmem:[%s11011_s15 + $0x1090] sm:$0xff] }
 0x243   : > { %6746 = vmatpush.bf16.msrb.mxu3 %v10411_v39  ;;  %v10443_v39 = vld [vmem:[%s11011_s15 + $0x10d0] sm:$0xff] }
 0x244   : > { %6708 = vmatpush.bf16.msrb.mxu0 %v10386_v41  ;;  %v10418_v41 = vld [vmem:[%s11011_s15 + $0x1008] sm:$0xff] }
 0x245   : > { %6721 = vmatpush.bf16.msrb.mxu1 %v10394_v44  ;;  %v10426_v44 = vld [vmem:[%s11011_s15 + $0x1048] sm:$0xff] }
 0x246   : > { %6734 = vmatpush.bf16.msrb.mxu2 %v10402_v45  ;;  %v10434_v45 = vld [vmem:[%s11011_s15 + $0x1088] sm:$0xff] }
 0x247   : > { %6747 = vmatpush.bf16.msrb.mxu3 %v10410_v49  ;;  %v10442_v49 = vld [vmem:[%s11011_s15 + $0x10c8] sm:$0xff] }
 0x248   : > { %6709 = vmatpush.bf16.msrb.mxu0 %v10385_v52  ;;  %v6503_v14 = vpop.f32.mrf.mxu0  ;;  %v10417_v52 = vld [vmem:[%s11011_s15 + $0x1000] sm:$0xff] }
 0x249   : > { %6722 = vmatpush.bf16.msrb.mxu1 %v10393_v55  ;;  %v6504_v15 = vadd.f32 %v6503_v14, %v11806_v32  ;;  %v6516_v17 = vpop.f32.mrf.mxu1  ;;  %v10425_v55 = vld [vmem:[%s11011_s15 + $0x1040] sm:$0xff] }
 0x24a   : > { %6735 = vmatpush.bf16.msrb.mxu2 %v10401_v56  ;;  %v10433_v56 = vld [vmem:[%s11011_s15 + $0x1080] sm:$0xff] }
 0x24b   : > { %6748 = vmatpush.bf16.msrb.mxu3 %v10409_v62  ;;  %9843 = vmatmul.msk.bf16.vlgmr.msrb.gmra.mxu0 %vm11832_vm11, %v9842_v1  ;;  %v6517_v20 = vadd.f32 %v6516_v17, %v6504_v15  ;;  %v10441_v62 = vld [vmem:[%s11011_s15 + $0x10c0] sm:$0xff]  ;;  %v9854_v1 = vpack.c.bf16 %v680_v53, %v680_v53  ;;  %vm11932_vm11 = vmpackc.low %vm547_vm8, %vm547_vm8 }
 0x24c   : > { %6754 = vmatpush.bf16.msra.mxu0 %v10424_v58  ;;  %9846 = vmatmul.msk.bf16.vlgmr.msrb.gmra.mxu1 %vm9844_vm14, %v9845_v4  ;;  %v10456_v58 = vld [vmem:[%s11011_s15 + $0x1138] sm:$0xff]  ;;  %v9857_v4 = vpack.c.bf16 %v681_v60, %v681_v60  ;;  %v684_v53 = vld.sshfl [vmem:[#allocation1 + $0x20] sm:$0xff pattern:$0x73625140]  ;;  %vm9868_vm14 = vmpackc.low %vm548_vm10, %vm548_vm10 }
 0x24d   : > { %6767 = vmatpush.bf16.msra.mxu1 %v10432_v59  ;;  %9849 = vmatmul.msk.bf16.vlgmr.msrb.gmra.mxu2 %vm9847_vm13, %v9848_v2  ;;  %v10464_v59 = vld [vmem:[%s11011_s15 + $0x1178] sm:$0xff]  ;;  %v9860_v2 = vpack.c.bf16 %v682_v57, %v682_v57  ;;  %v686_v57 = vld.sshfl [vmem:[#allocation1 + $0x30] sm:$0xff pattern:$0x73625140]  ;;  %vm9871_vm13 = vmpackc.low %vm549_vm9, %vm549_vm9 }
 0x24e   : > { %6780 = vmatpush.bf16.msra.mxu2 %v10440_v61  ;;  %9852 = vmatmul.msk.bf16.vlgmr.msrb.gmra.mxu3 %vm9850_vm15, %v9851_v5  ;;  %v10472_v61 = vld [vmem:[%s11011_s15 + $0x11b8] sm:$0xff]  ;;  %v9863_v5 = vpack.c.bf16 %v683_v63, %v683_v63  ;;  %v685_v60 = vld.sshfl [vmem:[#allocation1 + $0x28] sm:$0xff pattern:$0x73625140]  ;;  %vm9874_vm15 = vmpackc.low %vm550_vm12, %vm550_vm12 }
 0x24f   : > { %6793 = vmatpush.bf16.msra.mxu3 %v10448_v3  ;;  %v10480_v3 = vld [vmem:[%s11011_s15 + $0x11f8] sm:$0xff] }
 0x250   : > { %6755 = vmatpush.bf16.msra.mxu0 %v10423_v6  ;;  %v6529_v26 = vpop.f32.mrf.mxu2  ;;  %v6505_v31 = vpop.f32.mrf.mxu0  ;;  %v10455_v6 = vld [vmem:[%s11011_s15 + $0x1130] sm:$0xff]  ;;  %v687_v63 = vld.sshfl [vmem:[#allocation1 + $0x38] sm:$0xff pattern:$0x73625140] }
 0x251   : > { %6768 = vmatpush.bf16.msra.mxu1 %v10431_v7  ;;  %v6530_v27 = vadd.f32 %v6529_v26, %v6517_v20  ;;  %v6542_v30 = vpop.f32.mrf.mxu3  ;;  %v6518_v34 = vpop.f32.mrf.mxu1  ;;  %v10463_v7 = vld [vmem:[%s11011_s15 + $0x1170] sm:$0xff] }
 0x252   : > { %6781 = vmatpush.bf16.msra.mxu2 %v10439_v8  ;;  %v10471_v8 = vld [vmem:[%s11011_s15 + $0x11b0] sm:$0xff] }
 0x253   : > { %6794 = vmatpush.bf16.msra.mxu3 %v10447_v9  ;;  %v11856_v32 = vadd.f32 %v6542_v30, %v6530_v27  ;;  %v10479_v9 = vld [vmem:[%s11011_s15 + $0x11f0] sm:$0xff] }
 0x254   : > { %6756 = vmatpush.bf16.msra.mxu0 %v10422_v10  ;;  %v10454_v10 = vld [vmem:[%s11011_s15 + $0x1128] sm:$0xff] }
 0x255   : > { %6769 = vmatpush.bf16.msra.mxu1 %v10430_v11  ;;  %v10462_v11 = vld [vmem:[%s11011_s15 + $0x1168] sm:$0xff] }
 0x256   : > { %6782 = vmatpush.bf16.msra.mxu2 %v10438_v12  ;;  %v10470_v12 = vld [vmem:[%s11011_s15 + $0x11a8] sm:$0xff] }
 0x257   : > { %6795 = vmatpush.bf16.msra.mxu3 %v10446_v13  ;;  %v10478_v13 = vld [vmem:[%s11011_s15 + $0x11e8] sm:$0xff] }
 0x258   : > { %6757 = vmatpush.bf16.msra.mxu0 %v10421_v16  ;;  %v6531_v47 = vpop.f32.mrf.mxu2  ;;  %v10453_v16 = vld [vmem:[%s11011_s15 + $0x1120] sm:$0xff] }
 0x259   : > { %6770 = vmatpush.bf16.msra.mxu1 %v10429_v18  ;;  %v6544_v51 = vpop.f32.mrf.mxu3  ;;  %v10461_v18 = vld [vmem:[%s11011_s15 + $0x1160] sm:$0xff] }
 0x25a   : > { %6783 = vmatpush.bf16.msra.mxu2 %v10437_v19  ;;  %v10469_v19 = vld [vmem:[%s11011_s15 + $0x11a0] sm:$0xff] }
 0x25b   : > { %6796 = vmatpush.bf16.msra.mxu3 %v10445_v22  ;;  %v10477_v22 = vld [vmem:[%s11011_s15 + $0x11e0] sm:$0xff] }
 0x25c   : > { %6758 = vmatpush.bf16.msra.mxu0 %v10420_v23  ;;  %v10452_v23 = vld [vmem:[%s11011_s15 + $0x1118] sm:$0xff] }
 0x25d   : > { %6771 = vmatpush.bf16.msra.mxu1 %v10428_v24  ;;  %v10460_v24 = vld [vmem:[%s11011_s15 + $0x1158] sm:$0xff] }
 0x25e   : > { %6784 = vmatpush.bf16.msra.mxu2 %v10436_v25  ;;  %v10468_v25 = vld [vmem:[%s11011_s15 + $0x1198] sm:$0xff] }
 0x25f   : > { %6797 = vmatpush.bf16.msra.mxu3 %v10444_v29  ;;  %v10476_v29 = vld [vmem:[%s11011_s15 + $0x11d8] sm:$0xff] }
 0x260   : > { %6759 = vmatpush.bf16.msra.mxu0 %v10419_v33  ;;  %v10451_v33 = vld [vmem:[%s11011_s15 + $0x1110] sm:$0xff] }
 0x261   : > { %6772 = vmatpush.bf16.msra.mxu1 %v10427_v35  ;;  %v10459_v35 = vld [vmem:[%s11011_s15 + $0x1150] sm:$0xff] }
 0x262   : > { %6785 = vmatpush.bf16.msra.mxu2 %v10435_v36  ;;  %v10467_v36 = vld [vmem:[%s11011_s15 + $0x1190] sm:$0xff] }
 0x263   : > { %6798 = vmatpush.bf16.msra.mxu3 %v10443_v39  ;;  %v10475_v39 = vld [vmem:[%s11011_s15 + $0x11d0] sm:$0xff] }
 0x264   : > { %6760 = vmatpush.bf16.msra.mxu0 %v10418_v41  ;;  %v575_v41 = vld [vmem:[%s11004_s17 + $0x90] sm:$0xff] }
 0x265   : > { %6773 = vmatpush.bf16.msra.mxu1 %v10426_v44  ;;  %688 = vst [vmem:[#allocation1] ss:$4 sm:$0xff] %v575_v41  ;;  %v10458_v44 = vld [vmem:[%s11011_s15 + $0x1148] sm:$0xff]  ;;  %v576_v41 = vld [vmem:[%s11004_s17 + $0x98] sm:$0xf] }
 0x266   : > { %6786 = vmatpush.bf16.msra.mxu2 %v10434_v45  ;;  %v10466_v45 = vld [vmem:[%s11011_s15 + $0x1188] sm:$0xff]  ;;  %689 = vst [vmem:[#allocation1 + $0x20] ss:$4 sm:$0xff] %v576_v41 }
 0x267   : > { %6799 = vmatpush.bf16.msra.mxu3 %v10442_v49  ;;  %v10474_v49 = vld [vmem:[%s11011_s15 + $0x11c8] sm:$0xff] }
 0x268   : > { %6761 = vmatpush.bf16.msra.mxu0 %v10417_v52  ;;  %v6555_v14 = vpop.f32.mrf.mxu0  ;;  %v10449_v52 = vld [vmem:[%s11011_s15 + $0x1100] sm:$0xff] }
 0x269   : > { %6774 = vmatpush.bf16.msra.mxu1 %v10425_v55  ;;  %v6556_v15 = vadd.f32 %v6555_v14, %v11856_v32  ;;  %v6568_v17 = vpop.f32.mrf.mxu1  ;;  %v10457_v55 = vld [vmem:[%s11011_s15 + $0x1140] sm:$0xff] }
 0x26a   : > { %6787 = vmatpush.bf16.msra.mxu2 %v10433_v56  ;;  %v10465_v56 = vld [vmem:[%s11011_s15 + $0x1180] sm:$0xff] }
 0x26b   : > { %6800 = vmatpush.bf16.msra.mxu3 %v10441_v62  ;;  %9855 = vmatmul.msk.bf16.vlgmr.msra.gmra.mxu0 %vm11882_vm3, %v9854_v1  ;;  %v6569_v20 = vadd.f32 %v6568_v17, %v6556_v15  ;;  %v10473_v62 = vld [vmem:[%s11011_s15 + $0x11c0] sm:$0xff]  ;;  %v9866_v1 = vpack.c.bf16 %v684_v53, %v684_v53 }
 0x26c   : > { %6806 = vmatpush.bf16.msrb.mxu0 %v10456_v58  ;;  %9858 = vmatmul.msk.bf16.vlgmr.msra.gmra.mxu1 %vm9856_vm6, %v9857_v4  ;;  %v10488_v58 = vld [vmem:[%s11011_s15 + $0x1238] sm:$0xff]  ;;  %v9869_v4 = vpack.c.bf16 %v685_v60, %v685_v60 }
 0x26d   : > { %6819 = vmatpush.bf16.msrb.mxu1 %v10464_v59  ;;  %9861 = vmatmul.msk.bf16.vlgmr.msra.gmra.mxu2 %vm9859_vm5, %v9860_v2  ;;  %v10496_v59 = vld [vmem:[%s11011_s15 + $0x1278] sm:$0xff]  ;;  %v9872_v2 = vpack.c.bf16 %v686_v57, %v686_v57  ;;  %v692_v57 = vld.sshfl [vmem:[#allocation1 + $0x10] sm:$0xff pattern:$0x73625140] }
 0x26e   : > { %6832 = vmatpush.bf16.msrb.mxu2 %v10472_v61  ;;  %9864 = vmatmul.msk.bf16.vlgmr.msra.gmra.mxu3 %vm9862_vm7, %v9863_v5  ;;  %v10504_v61 = vld [vmem:[%s11011_s15 + $0x12b8] sm:$0xff]  ;;  %v9875_v5 = vpack.c.bf16 %v687_v63, %v687_v63 }
 0x26f   : > { %6845 = vmatpush.bf16.msrb.mxu3 %v10480_v3  ;;  %v10512_v3 = vld [vmem:[%s11011_s15 + $0x12f8] sm:$0xff] }
 0x270   : > { %6807 = vmatpush.bf16.msrb.mxu0 %v10455_v6  ;;  %v6581_v26 = vpop.f32.mrf.mxu2  ;;  %v6557_v31 = vpop.f32.mrf.mxu0  ;;  %v10487_v6 = vld [vmem:[%s11011_s15 + $0x1230] sm:$0xff]  ;;  %v10528_v60 = vld [vmem:[%s11011_s15 + $0x1378] sm:$0xff] }
 0x271   : > { %6820 = vmatpush.bf16.msrb.mxu1 %v10463_v7  ;;  %v6582_v27 = vadd.f32 %v6581_v26, %v6569_v20  ;;  %v6594_v30 = vpop.f32.mrf.mxu3  ;;  %v6570_v34 = vpop.f32.mrf.mxu1  ;;  %v10495_v7 = vld [vmem:[%s11011_s15 + $0x1270] sm:$0xff]  ;;  %v693_v0 = vld.sshfl [vmem:[#allocation1 + $0x18] sm:$0xff pattern:$0x73625140] }
 0x272   : > { %6833 = vmatpush.bf16.msrb.mxu2 %v10471_v8  ;;  %v10503_v8 = vld [vmem:[%s11011_s15 + $0x12b0] sm:$0xff]  ;;  %v393_v34 = vadd.s32 9216, %v11045_v21 }
 0x273   : > { %6846 = vmatpush.bf16.msrb.mxu3 %v10479_v9  ;;  %v11906_v32 = vadd.f32 %v6594_v30, %v6582_v27  ;;  %v10511_v9 = vld [vmem:[%s11011_s15 + $0x12f0] sm:$0xff] }
 0x274   : > { %6808 = vmatpush.bf16.msrb.mxu0 %v10454_v10  ;;  %v10486_v10 = vld [vmem:[%s11011_s15 + $0x1228] sm:$0xff]  ;;  %v473_v43 = vadd.s32 %v11054_v28, %v393_v34  ;;  %v10513_v34 = vld [vmem:[%s11011_s15 + $0x1300] sm:$0xff] }
 0x275   : > { %6821 = vmatpush.bf16.msrb.mxu1 %v10462_v11  ;;  %v10494_v11 = vld [vmem:[%s11011_s15 + $0x1268] sm:$0xff] }
 0x276   : > { %6834 = vmatpush.bf16.msrb.mxu2 %v10470_v12  ;;  %v10502_v12 = vld [vmem:[%s11011_s15 + $0x12a8] sm:$0xff]  ;;  %vm551_vm0 = vcmp.lt.s32.totalorder %v473_v43, 19900 }
 0x277   : > { %6847 = vmatpush.bf16.msrb.mxu3 %v10478_v13  ;;  %v10510_v13 = vld [vmem:[%s11011_s15 + $0x12e8] sm:$0xff]  ;;  %vm11981_vm3 = vmpackc.low %vm551_vm0, %vm551_vm0 }
 0x278   : > { %6809 = vmatpush.bf16.msrb.mxu0 %v10453_v16  ;;  %v6583_v47 = vpop.f32.mrf.mxu2  ;;  %v10485_v16 = vld [vmem:[%s11011_s15 + $0x1220] sm:$0xff] }
 0x279   : > { %6822 = vmatpush.bf16.msrb.mxu1 %v10461_v18  ;;  %v6596_v51 = vpop.f32.mrf.mxu3  ;;  %v10493_v18 = vld [vmem:[%s11011_s15 + $0x1260] sm:$0xff]  ;;  %v10498_v47 = vld [vmem:[%s11011_s15 + $0x1288] sm:$0xff] }
 0x27a   : > { %6835 = vmatpush.bf16.msrb.mxu2 %v10469_v19  ;;  %v10501_v19 = vld [vmem:[%s11011_s15 + $0x12a0] sm:$0xff] }
 0x27b   : > { %6848 = vmatpush.bf16.msrb.mxu3 %v10477_v22  ;;  %v10509_v22 = vld [vmem:[%s11011_s15 + $0x12e0] sm:$0xff] }
 0x27c   : > { %6810 = vmatpush.bf16.msrb.mxu0 %v10452_v23  ;;  %v10484_v23 = vld [vmem:[%s11011_s15 + $0x1218] sm:$0xff]  ;;  %v10481_v51 = vld [vmem:[%s11011_s15 + $0x1200] sm:$0xff] }
 0x27d   : > { %6823 = vmatpush.bf16.msrb.mxu1 %v10460_v24  ;;  %v10492_v24 = vld [vmem:[%s11011_s15 + $0x1258] sm:$0xff] }
 0x27e   : > { %6836 = vmatpush.bf16.msrb.mxu2 %v10468_v25  ;;  %v10500_v25 = vld [vmem:[%s11011_s15 + $0x1298] sm:$0xff] }
 0x27f   : > { %6849 = vmatpush.bf16.msrb.mxu3 %v10476_v29  ;;  %v10508_v29 = vld [vmem:[%s11011_s15 + $0x12d8] sm:$0xff] }
 0x280   : > { %6811 = vmatpush.bf16.msrb.mxu0 %v10451_v33  ;;  %v10483_v33 = vld [vmem:[%s11011_s15 + $0x1210] sm:$0xff] }
 0x281   : > { %6824 = vmatpush.bf16.msrb.mxu1 %v10459_v35  ;;  %v395_v35 = vadd.s32 9472, %v11045_v21 }
 0x282   : > { %6837 = vmatpush.bf16.msrb.mxu2 %v10467_v36 }
 0x283   : > { %6850 = vmatpush.bf16.msrb.mxu3 %v10475_v39  ;;  %v394_v39 = vadd.s32 9344, %v11045_v21 }
 0x284   : > { %6812 = vmatpush.bf16.msrb.mxu0 %v10450_v42  ;;  %v10482_v42 = vld [vmem:[%s11011_s15 + $0x1208] sm:$0xff] }
 0x285   : > { %6825 = vmatpush.bf16.msrb.mxu1 %v10458_v44  ;;  %v475_v44 = vadd.s32 %v11054_v28, %v395_v35  ;;  %v694_v35 = vld.sshfl [vmem:[#allocation1 + $0x20] sm:$0xff pattern:$0x73625140] }
 0x286   : > { %6838 = vmatpush.bf16.msrb.mxu2 %v10466_v45  ;;  %v396_v45 = vadd.s32 9600, %v11045_v21 }
 0x287   : > { %6851 = vmatpush.bf16.msrb.mxu3 %v10474_v49  ;;  %v474_v49 = vadd.s32 %v11054_v28, %v394_v39  ;;  %vm553_vm1 = vcmp.lt.s32.totalorder %v475_v44, 19900 }
 0x288   : > { %6813 = vmatpush.bf16.msrb.mxu0 %v10449_v52  ;;  %v6607_v14 = vpop.f32.mrf.mxu0  ;;  %v10489_v52 = vld [vmem:[%s11011_s15 + $0x1240] sm:$0xff]  ;;  %vm9883_vm4 = vmpackc.low %vm553_vm1, %vm553_vm1 }
 0x289   : > { %6826 = vmatpush.bf16.msrb.mxu1 %v10457_v55  ;;  %v6608_v15 = vadd.f32 %v6607_v14, %v11906_v32  ;;  %v6620_v17 = vpop.f32.mrf.mxu1  ;;  %v690_v55 = vld.sshfl [vmem:[#allocation1] sm:$0xff pattern:$0x73625140]  ;;  %vm552_vm2 = vcmp.lt.s32.totalorder %v474_v49, 19900  ;;  %v10516_v14 = vld [vmem:[%s11011_s15 + $0x1318] sm:$0xff] }
 0x28a   : > { %6839 = vmatpush.bf16.msrb.mxu2 %v10465_v56  ;;  %v476_v56 = vadd.s32 %v11054_v28, %v396_v45  ;;  %v9878_v63 = vpack.c.bf16 %v690_v55, %v690_v55  ;;  %vm9880_vm6 = vmpackc.low %vm552_vm2, %vm552_vm2 }
 0x28b   : > { %6852 = vmatpush.bf16.msrb.mxu3 %v10473_v62  ;;  %9867 = vmatmul.msk.bf16.vlgmr.msrb.gmra.mxu0 %vm11932_vm11, %v9866_v1  ;;  %v6621_v20 = vadd.f32 %v6620_v17, %v6608_v15  ;;  %v9884_v1 = vpack.c.bf16 %v692_v57, %v692_v57  ;;  %v10524_v15 = vld [vmem:[%s11011_s15 + $0x1358] sm:$0xff] }
 0x28c   : > { %6858 = vmatpush.bf16.msra.mxu0 %v10488_v58  ;;  %9870 = vmatmul.msk.bf16.vlgmr.msrb.gmra.mxu1 %vm9868_vm14, %v9869_v4  ;;  %v691_v58 = vld.sshfl [vmem:[#allocation1 + $0x8] sm:$0xff pattern:$0x73625140]  ;;  %vm554_vm5 = vcmp.lt.s32.totalorder %v476_v56, 19900  ;;  %v10519_v4 = vld [vmem:[%s11011_s15 + $0x1330] sm:$0xff] }
 0x28d   : > { %6871 = vmatpush.bf16.msra.mxu1 %v10496_v59  ;;  %9873 = vmatmul.msk.bf16.vlgmr.msrb.gmra.mxu2 %vm9871_vm13, %v9872_v2  ;;  %v10520_v59 = vld [vmem:[%s11011_s15 + $0x1338] sm:$0xff]  ;;  %v9881_v2 = vpack.c.bf16 %v691_v58, %v691_v58  ;;  %vm9886_vm7 = vmpackc.low %vm554_vm5, %vm554_vm5 }
 0x28e   : > { %6884 = vmatpush.bf16.msra.mxu2 %v10504_v61  ;;  %9876 = vmatmul.msk.bf16.vlgmr.msrb.gmra.mxu3 %vm9874_vm15, %v9875_v5  ;;  %v10505_v61 = vld [vmem:[%s11011_s15 + $0x12c0] sm:$0xff]  ;;  %v10527_v5 = vld [vmem:[%s11011_s15 + $0x1370] sm:$0xff] }
 0x28f   : > { %6897 = vmatpush.bf16.msra.mxu3 %v10512_v3  ;;  %v9887_v3 = vpack.c.bf16 %v693_v0, %v693_v0 }
 0x290   : > { %6859 = vmatpush.bf16.msra.mxu0 %v10487_v6  ;;  %v6633_v26 = vpop.f32.mrf.mxu2  ;;  %v6609_v31 = vpop.f32.mrf.mxu0  ;;  %v10518_v6 = vld [vmem:[%s11011_s15 + $0x1328] sm:$0xff] }
 0x291   : > { %6872 = vmatpush.bf16.msra.mxu1 %v10495_v7  ;;  %v6634_v27 = vadd.f32 %v6633_v26, %v6621_v20  ;;  %v6646_v30 = vpop.f32.mrf.mxu3  ;;  %v6622_v36 = vpop.f32.mrf.mxu1  ;;  %v10526_v7 = vld [vmem:[%s11011_s15 + $0x1368] sm:$0xff]  ;;  %v398_v26 = vadd.s32 9856, %v11045_v21 }
 0x292   : > { %6885 = vmatpush.bf16.msra.mxu2 %v10503_v8  ;;  %v10521_v36 = vld [vmem:[%s11011_s15 + $0x1340] sm:$0xff] }
 0x293   : > { %6898 = vmatpush.bf16.msra.mxu3 %v10511_v9  ;;  %v11956_v32 = vadd.f32 %v6646_v30, %v6634_v27  ;;  %v10514_v27 = vld [vmem:[%s11011_s15 + $0x1308] sm:$0xff] }
 0x294   : > { %6860 = vmatpush.bf16.msra.mxu0 %v10486_v10  ;;  %v10517_v10 = vld [vmem:[%s11011_s15 + $0x1320] sm:$0xff] }
 0x295   : > { %6873 = vmatpush.bf16.msra.mxu1 %v10494_v11 }
 0x296   : > { %6886 = vmatpush.bf16.msra.mxu2 %v10502_v12  ;;  %v10525_v12 = vld [vmem:[%s11011_s15 + $0x1360] sm:$0xff] }
 0x297   : > { %6899 = vmatpush.bf16.msra.mxu3 %v10510_v13 }
 0x298   : > { %6861 = vmatpush.bf16.msra.mxu0 %v10485_v16  ;;  %v6635_v48 = vpop.f32.mrf.mxu2 }
 0x299   : > { %6874 = vmatpush.bf16.msra.mxu1 %v10493_v18  ;;  %v6648_v53 = vpop.f32.mrf.mxu3 }
 0x29a   : > { %6887 = vmatpush.bf16.msra.mxu2 %v10501_v19 }
 0x29b   : > { %6900 = vmatpush.bf16.msra.mxu3 %v10509_v22  ;;  %v10515_v22 = vld [vmem:[%s11011_s15 + $0x1310] sm:$0xff] }
 0x29c   : > { %6862 = vmatpush.bf16.msra.mxu0 %v10484_v23 }
 0x29d   : > { %6875 = vmatpush.bf16.msra.mxu1 %v10492_v24  ;;  %v10523_v24 = vld [vmem:[%s11011_s15 + $0x1350] sm:$0xff] }
 0x29e   : > { %6888 = vmatpush.bf16.msra.mxu2 %v10500_v25  ;;  %v397_v25 = vadd.s32 9728, %v11045_v21 }
 0x29f   : > { %6901 = vmatpush.bf16.msra.mxu3 %v10508_v29  ;;  %v10522_v29 = vld [vmem:[%s11011_s15 + $0x1348] sm:$0xff] }
 0x2a0   : > { %6863 = vmatpush.bf16.msra.mxu0 %v10483_v33  ;;  %v477_v30 = vadd.s32 %v11054_v28, %v397_v25 }
 0x2a1   : > { %6876 = vmatpush.bf16.msra.mxu1 %v10491_v37  ;;  %v695_v37 = vld.sshfl [vmem:[#allocation1 + $0x28] sm:$0xff pattern:$0x73625140] }
 0x2a2   : > { %6889 = vmatpush.bf16.msra.mxu2 %v10499_v38  ;;  %vm555_vm8 = vcmp.lt.s32.totalorder %v477_v30, 19900  ;;  %v9890_v38 = vpack.c.bf16 %v694_v35, %v694_v35  ;;  %v9893_v21 = vpack.c.bf16 %v695_v37, %v695_v37 }
 0x2a3   : > { %6902 = vmatpush.bf16.msra.mxu3 %v10507_v40  ;;  %vm9889_vm10 = vmpackc.low %vm555_vm8, %vm555_vm8 }
 0x2a4   : > { %6864 = vmatpush.bf16.msra.mxu0 %v10482_v42 }
 0x2a5   : > { %6877 = vmatpush.bf16.msra.mxu1 %v10490_v46 }
 0x2a6   : > { %6890 = vmatpush.bf16.msra.mxu2 %v10498_v47 }
 0x2a7   : > { %6903 = vmatpush.bf16.msra.mxu3 %v10506_v50 }
 0x2a8   : > { %6865 = vmatpush.bf16.msra.mxu0 %v10481_v51  ;;  %v6659_v8 = vpop.f32.mrf.mxu0 }
 0x2a9   : > { %6878 = vmatpush.bf16.msra.mxu1 %v10489_v52  ;;  %v6660_v9 = vadd.f32 %v6659_v8, %v11956_v32  ;;  %v6672_v11 = vpop.f32.mrf.mxu1  ;;  %v478_v32 = vadd.s32 %v11054_v28, %v398_v26 }
 0x2aa   : > { %6891 = vmatpush.bf16.msra.mxu2 %v10497_v54 }
 0x2ab   : > { %6904 = vmatpush.bf16.msra.mxu3 %v10505_v61  ;;  %9879 = vmatmul.msk.bf16.vlgmr.msra.gmra.mxu0 %vm11981_vm3, %v9878_v63  ;;  %v6673_v13 = vadd.f32 %v6672_v11, %v6660_v9  ;;  %vm556_vm9 = vcmp.lt.s32.totalorder %v478_v32, 19900 }
 0x2ac   : > { %6910 = vmatpush.bf16.msrb.mxu0 %v10520_v59  ;;  %9882 = vmatmul.msk.bf16.vlgmr.msra.gmra.mxu1 %vm9880_vm6, %v9881_v2  ;;  %vm9892_vm11 = vmpackc.low %vm556_vm9, %vm556_vm9 }
 0x2ad   : > { %6923 = vmatpush.bf16.msrb.mxu1 %v10528_v60  ;;  %9885 = vmatmul.msk.bf16.vlgmr.msra.gmra.mxu2 %vm9883_vm4, %v9884_v1 }
 0x2ae   : > { %9888 = vmatmul.msk.bf16.vlgmr.msra.gmra.mxu3 %vm9886_vm7, %v9887_v3 }
 0x2b0   : > { %6911 = vmatpush.bf16.msrb.mxu0 %v10519_v4  ;;  %v6685_v16 = vpop.f32.mrf.mxu2  ;;  %v6661_v19 = vpop.f32.mrf.mxu0 }
 0x2b1   : > { %6924 = vmatpush.bf16.msrb.mxu1 %v10527_v5  ;;  %v6686_v17 = vadd.f32 %v6685_v16, %v6673_v13  ;;  %v6698_v18 = vpop.f32.mrf.mxu3  ;;  %v6674_v23 = vpop.f32.mrf.mxu1 }
 0x2b3   : > { %v6699_v20 = vadd.f32 %v6698_v18, %v6686_v17 }
 0x2b4   : > { %6912 = vmatpush.bf16.msrb.mxu0 %v10518_v6 }
 0x2b5   : > { %6925 = vmatpush.bf16.msrb.mxu1 %v10526_v7 }
 0x2b8   : > { %6913 = vmatpush.bf16.msrb.mxu0 %v10517_v10  ;;  %v6687_v31 = vpop.f32.mrf.mxu2 }
 0x2b9   : > { %6926 = vmatpush.bf16.msrb.mxu1 %v10525_v12  ;;  %v6700_v33 = vpop.f32.mrf.mxu3 }
 0x2bc   : > { %6914 = vmatpush.bf16.msrb.mxu0 %v10516_v14 }
 0x2bd   : > { %6927 = vmatpush.bf16.msrb.mxu1 %v10524_v15 }
 0x2c0   : > { %6915 = vmatpush.bf16.msrb.mxu0 %v10515_v22 }
 0x2c1   : > { %6928 = vmatpush.bf16.msrb.mxu1 %v10523_v24 }
 0x2c4   : > { %6916 = vmatpush.bf16.msrb.mxu0 %v10514_v27 }
 0x2c5   : > { %6929 = vmatpush.bf16.msrb.mxu1 %v10522_v29 }
 0x2c8   : > { %6917 = vmatpush.bf16.msrb.mxu0 %v10513_v34  ;;  %v6711_v39 = vpop.f32.mrf.mxu0 }
 0x2c9   : > { %6930 = vmatpush.bf16.msrb.mxu1 %v10521_v36  ;;  %v6712_v40 = vadd.f32 %v6711_v39, %v6699_v20  ;;  %v6724_v28 = vpop.f32.mrf.mxu1 }
 0x2cb   : > { %9891 = vmatmul.msk.bf16.vlgmr.msrb.gmra.mxu0 %vm9889_vm10, %v9890_v38  ;;  %v6725_v41 = vadd.f32 %v6724_v28, %v6712_v40 }
 0x2cc   : > { %9894 = vmatmul.msk.bf16.vlgmr.msrb.gmra.mxu1 %vm9892_vm11, %v9893_v21 }
 0x2d0   : > { %v6737_v42 = vpop.f32.mrf.mxu2  ;;  %v6713_v45 = vpop.f32.mrf.mxu0 }
 0x2d1   : > { %v6738_v43 = vadd.f32 %v6737_v42, %v6725_v41  ;;  %v6750_v44 = vpop.f32.mrf.mxu3  ;;  %v6726_v47 = vpop.f32.mrf.mxu1 }
 0x2d3   : > { %v6751_v46 = vadd.f32 %v6750_v44, %v6738_v43 }
 0x2d8   : > { %v6739_v48 = vpop.f32.mrf.mxu2 }
 0x2d9   : > { %v6752_v49 = vpop.f32.mrf.mxu3 }
 0x2e8   : > { %v6763_v50 = vpop.f32.mrf.mxu0 }
 0x2e9   : > { %v6764_v51 = vadd.f32 %v6763_v50, %v6751_v46  ;;  %v6776_v52 = vpop.f32.mrf.mxu1 }
 0x2eb   : > { %v6777_v53 = vadd.f32 %v6776_v52, %v6764_v51 }
 0x2f0   : > { %v6789_v54 = vpop.f32.mrf.mxu2  ;;  %v6765_v57 = vpop.f32.mrf.mxu0 }
 0x2f1   : > { %v6790_v55 = vadd.f32 %v6789_v54, %v6777_v53  ;;  %v6802_v56 = vpop.f32.mrf.mxu3  ;;  %v6778_v59 = vpop.f32.mrf.mxu1 }
 0x2f3   : > { %v6803_v58 = vadd.f32 %v6802_v56, %v6790_v55 }
 0x2f8   : > { %v6791_v60 = vpop.f32.mrf.mxu2 }
 0x2f9   : > { %v6804_v61 = vpop.f32.mrf.mxu3 }
 0x308   : > { %v6815_v62 = vpop.f32.mrf.mxu0 }
 0x309   : > { %v6828_v63 = vpop.f32.mrf.mxu1  ;;  %v6816_v8 = vadd.f32 %v6815_v62, %v6803_v58 }
 0x30b   : > { %v6829_v13 = vadd.f32 %v6828_v63, %v6816_v8 }
 0x310   : > { %v6841_v0 = vpop.f32.mrf.mxu2  ;;  %v6817_v2 = vpop.f32.mrf.mxu0 }
 0x311   : > { %v6854_v1 = vpop.f32.mrf.mxu3  ;;  %v6830_v3 = vpop.f32.mrf.mxu1  ;;  %v6842_v14 = vadd.f32 %v6841_v0, %v6829_v13 }
 0x313   : > { %v6855_v16 = vadd.f32 %v6854_v1, %v6842_v14 }
 0x318   : > { %v6843_v4 = vpop.f32.mrf.mxu2 }
 0x319   : > { %v6856_v5 = vpop.f32.mrf.mxu3 }
 0x328   : > { %v6867_v6 = vpop.f32.mrf.mxu0 }
 0x329   : > { %v6880_v7 = vpop.f32.mrf.mxu1  ;;  %v6868_v18 = vadd.f32 %v6867_v6, %v6855_v16 }
 0x32b   : > { %v6881_v19 = vadd.f32 %v6880_v7, %v6868_v18 }
 0x330   : > { %v6893_v9 = vpop.f32.mrf.mxu2  ;;  %v6869_v10 = vpop.f32.mrf.mxu0 }
 0x331   : > { %v6906_v11 = vpop.f32.mrf.mxu3  ;;  %v6882_v12 = vpop.f32.mrf.mxu1  ;;  %v6894_v20 = vadd.f32 %v6893_v9, %v6881_v19 }
 0x333   : > { %v6907_v22 = vadd.f32 %v6906_v11, %v6894_v20 }
 0x338   : > { %v6895_v15 = vpop.f32.mrf.mxu2 }
 0x339   : > { %v6908_v17 = vpop.f32.mrf.mxu3 }
 0x348   : > { %v6919_v23 = vpop.f32.mrf.mxu0 }
 0x349   : > { %v6920_v24 = vadd.f32 %v6919_v23, %v6907_v22  ;;  %v6932_v25 = vpop.f32.mrf.mxu1 }
 0x34b   : > { %v6933_v26 = vadd.f32 %v6932_v25, %v6920_v24 }
 0x34d   : > { %6939 = sbr.rel (%p7155_p4) target bundleno = 851 (0x353), region = 64 }
 0x350   : > { %v6921_v27 = vpop.f32.mrf.mxu0 }
 0x351   : > { %v6934_v29 = vpop.f32.mrf.mxu1 }
 0x352   : > { %6940 = vst [vmem:[#allocation11] sm:$0x3] %v6933_v26 }
 0x353 PF: > { %p9896_p1 = scmp.le.s32.totalorder %s10910_s22, 0 }
 0x355   : > { %6944 = sbr.rel (%p9896_p1) target bundleno = 862 (0x35e), region = 68 }
 0x35a   : > { %v6945_v30 = vld [vmem:[#allocation11] sm:$0x3] }
 0x35b   : > { %v6946_v31 = vadd.f32 %v6945_v30, %v6933_v26 }
 0x35d   : > { %6947 = vst [vmem:[#allocation11] sm:$0x3] %v6946_v31 }
 0x35e PF: > { %p9897_p5 = scmp.ne.s32.totalorder %s10910_s22, 1 }
 0x360   : > { %6951 = sbr.rel (%p9897_p5) target bundleno = 1054 (0x41e), region = 72 }
 0x365   : > { %v7017_v32 = vld [vmem:[#allocation8 + $0x78] sm:$0xff]  ;;  %v7016_v33 = vld [vmem:[#allocation8 + $0x70] sm:$0xff]  ;;  %v7015_v34 = vld [vmem:[#allocation8 + $0x68] sm:$0xff] }
 0x366   : > { %7022 = vmatpush.msra.mxu0 %v7017_v32  ;;  %v7014_v35 = vld [vmem:[#allocation8 + $0x60] sm:$0xff]  ;;  %v7013_v37 = vld [vmem:[#allocation8 + $0x58] sm:$0xff]  ;;  %v7012_v21 = vld [vmem:[#allocation8 + $0x50] sm:$0xff] }
 0x367   : > { %v6952_v36 = vld [vmem:[#allocation11] sm:$0x3]  ;;  %v10619_v38 = vld [vmem:[#allocation7] ss:$0 sm:$0xff]  ;;  %v7011_v40 = vld [vmem:[#allocation8 + $0x48] sm:$0xff] }
 0x368   : > { %7023 = vmatpush.msra.mxu0 %v7016_v33  ;;  %v12010_v39 = vadd.f32 %v10619_v38, %v6952_v36  ;;  %v7010_v41 = vld [vmem:[#allocation8 + $0x40] sm:$0xff]  ;;  %v7009_v43 = vld [vmem:[#allocation8 + $0x38] sm:$0xff]  ;;  %v7008_v45 = vld [vmem:[#allocation8 + $0x30] sm:$0xff] }
 0x369   : > { %v7007_v48 = vld [vmem:[#allocation8 + $0x28] sm:$0xff]  ;;  %v7006_v51 = vld [vmem:[#allocation8 + $0x20] sm:$0xff]  ;;  %v7005_v54 = vld [vmem:[#allocation8 + $0x18] sm:$0xff] }
 0x36a   : > { %7024 = vmatpush.msra.mxu0 %v7015_v34  ;;  %v6959_v28 = vmul.f32 0.70710677, %v12010_v39  ;;  %v7004_v57 = vld [vmem:[#allocation8 + $0x10] sm:$0xff]  ;;  %v7003_v60 = vld [vmem:[#allocation8 + $0x8] sm:$0xff]  ;;  %v7002_v62 = vld [vmem:[#allocation8] sm:$0xff]  ;;  %v6958_v20 = vmul.f32 0.5, %v12010_v39 }
 0x36b   : > { %v10620_v25 = vld [vmem:[#allocation10] ss:$0 sm:$0xff] }
 0x36c   : > { %7025 = vmatpush.msra.mxu0 %v7014_v35  ;;  %v6960_v42 = vmul.f32 %v6959_v28, %v6959_v28 }
 0x36e   : > { %7026 = vmatpush.msra.mxu0 %v7013_v37  ;;  %v6961_v44 = vmin.f32 %v6960_v42, 16.0 }
 0x370   : > { %7027 = vmatpush.msra.mxu0 %v7012_v21  ;;  %v6962_v46 = vmul.f32 2.1237322e-06, %v6961_v44  ;;  %v6973_v47 = vmul.f32 3.8918573e-05, %v6961_v44 }
 0x372   : > { %7028 = vmatpush.msra.mxu0 %v7011_v40  ;;  %v6963_v49 = vadd.f32 0.00028619796, %v6962_v46  ;;  %v6974_v50 = vadd.f32 0.001143296, %v6973_v47 }
 0x374   : > { %7029 = vmatpush.msra.mxu0 %v7010_v41  ;;  %v6964_v52 = vmul.f32 %v6963_v49, %v6961_v44  ;;  %v6975_v53 = vmul.f32 %v6974_v50, %v6961_v44 }
 0x376   : > { %7030 = vmatpush.msra.mxu0 %v7009_v43  ;;  %v6965_v55 = vadd.f32 0.0036580483, %v6964_v52  ;;  %v6976_v56 = vadd.f32 0.014752088, %v6975_v53 }
 0x378   : > { %7031 = vmatpush.msra.mxu0 %v7008_v45  ;;  %v6966_v58 = vmul.f32 %v6965_v55, %v6961_v44  ;;  %v6977_v59 = vmul.f32 %v6976_v56, %v6961_v44 }
 0x37a   : > { %7032 = vmatpush.msra.mxu0 %v7007_v48  ;;  %v6978_v61 = vadd.f32 0.112945676, %v6977_v59  ;;  %v6967_v63 = vadd.f32 0.05243302, %v6966_v58 }
 0x37c   : > { %7033 = vmatpush.msra.mxu0 %v7006_v51  ;;  %v6979_v0 = vmul.f32 %v6978_v61, %v6961_v44  ;;  %v6968_v2 = vmul.f32 %v6967_v63, %v6961_v44 }
 0x37e   : > { %7034 = vmatpush.msra.mxu0 %v7005_v54  ;;  %v6980_v1 = vadd.f32 0.4994258, %v6979_v0  ;;  %v6969_v5 = vadd.f32 0.18741608, %v6968_v2 }
 0x380   : > { %7035 = vmatpush.msra.mxu0 %v7004_v57  ;;  %v6981_v3 = vmul.f32 %v6980_v1, %v6961_v44  ;;  %v6970_v6 = vmul.f32 %v6969_v5, %v6961_v44 }
 0x382   : > { %7036 = vmatpush.msra.mxu0 %v7003_v60  ;;  %v6982_v4 = vadd.f32 1.0, %v6981_v3  ;;  %v6971_v9 = vadd.f32 1.1283791, %v6970_v6 }
 0x384   : > { %7037 = vmatpush.msra.mxu0 %v7002_v62  ;;  %10621 = vrcp.f32 %v6982_v4  ;;  %v6994_v10 = vand.u32 2147483648, %v6982_v4  ;;  %vm6988_vm12 = vweird.f32 %v6982_v4  ;;  %v6992_v12 = vand.u32 2147483647, %v6982_v4 }
 0x385   : > { %v6972_v15 = vmul.f32 %v6971_v9, %v6959_v28 }
 0x386   : > { %v6995_v14 = vor.u32 1.1754944e-38, %v6994_v10  ;;  %vm6993_vm15 = vcmp.eq.f32.partialorder %v6992_v12, 8.507059e+37 }
 0x38a   : > { %v10622_v7 = vpop.eup %10621 }
 0x38b   : > { %v6984_v8 = vmul.f32 %v10622_v7, %v6982_v4  ;;  %vm6989_vm13 = vweird.f32 %v10622_v7 }
 0x38c   : > { %vm6990_vm14 = vmor %vm6988_vm12, %vm6989_vm13 }
 0x38d   : > { %v6985_v11 = vsub.f32 1.0, %v6984_v8 }
 0x38f   : > { %v6986_v13 = vmul.f32 %v10622_v7, %v6985_v11 }
 0x391   : > { %v6987_v16 = vadd.f32 %v10622_v7, %v6986_v13 }
 0x393   : > { %v6991_v17 = vsel %vm6990_vm14, %v10622_v7, %v6987_v16 }
 0x394   : > { %v6996_v18 = vsel %vm6993_vm15, %v6995_v14, %v6991_v17 }
 0x395   : > { %v6997_v19 = vmul.f32 %v6996_v18, %v6972_v15 }
 0x397   : > { %v9898_v22 = vclamps-f32 %v6997_v19, 1.0 }
 0x399   : > { %v7000_v23 = vadd.f32 1.0, %v9898_v22 }
 0x39b   : > { %v7001_v24 = vmul.f32 %v7000_v23, %v6958_v20 }
 0x39d   : > { %7038 = vmatmul.f32.vlgmr.msra.gmra.mxu0 %v7001_v24 }
 0x41a   : > { %v7039_v26 = vpop.f32.mrf.mxu0 }
 0x41b   : > { %v7040_v27 = vadd.f32 %v10620_v25, %v7039_v26 }
 0x41d   : > { %7042 = vst [vmem:[#allocation11] sm:$0x3] %v7040_v27 }
 0x41e PF: > { %p10577_p4 = scmp.eq.s32.totalorder %s10910_s22, 1  ;;  %s10860_s27 = smov [#allocation11]  }
 0x41f   : > { %s7049_s16 = sshll.u32 %s10860_s27, 4  ;;  %s7051_s12 = sshll.u32 %s12036_s5, 4  ;;  %s7050_s16 = int_to_ptr.vmem [resolvable:$true] %s7049_s16  ;;  %s7052_s12 = int_to_ptr.hbm [resolvable:$true] %s7051_s12 }
 0x420   : > { %10550 = dma.vmem_to_hbm [thread:$0]  (%p10577_p4), %s7050_s16, 32, %s7052_s12, [#allocation4]  }
 0x421   : > { %10834 = dma.done.wait (%p10577_p4), [#allocation4], 32  }
 0x422   : > { %10836 = vsyncadd (%p10577_p4), [#allocation4], 4294967264 }
 0x423 PF: > { %s12079_s7 = smov %s10951_s18  ;;  %p20_p6 = scmp.ge.s32.totalorder %s10951_s18, 4  }
 0x424   : > { %s12080_s18 = smov %s10843_s19  ;;  %s12081_s19 = smov %s10847_s20 }
 0x425   : > { %s12082_s20 = smov %s10961_s26  ;;  %s12083_s21 = smov %s12079_s7 }
 0x426   :  { %22 = sbr.rel (!%p20_p6) target bundleno = 7 (0x7), region = 115 }
 0x42b   :  { %7065 = vsyncpa [#allocation3], 1 }
 0x42c   :  { %7067 = vsyncpa [#allocation3 + $0x1], 1 }
 0x42d   :  { %7068 = vsyncpa [#allocation6], 1 }
 0x42e   :  { %7070 = vsyncpa [#allocation6 + $0x1], 1 }
 0x42f   :  { %7071 = vsyncpa [#allocation9], 1 }
 0x430   :  { %7072 = vsyncpa [#allocation4], 1 }
 0x431   :  { %7074 = vsyncpa [#allocation4 + $0x1], 1 }

</bundles_post_ra>
